<compile_context>
chip_gen: v5e
topology: v5e:2x2
jax: 0.10.0
libtpu: 0.0.40
codegen_flags: <defaults>
</compile_context>

<pallas_src>
import functools

import jax
import jax.numpy as jnp
from jax.experimental import pallas as pl
from jax.experimental.pallas import tpu as pltpu


def _lstm_cell(xg, h, c, whh, H):
    """One LSTM cell update. xg already contains x@W_ih + (b_ih + b_hh)."""
    gates = xg + jnp.dot(h, whh, preferred_element_type=jnp.float32)   # (B, 4H)
    # Full-vreg activations (4H = 128 lanes) once per step; slice pre-activated values.
    sg = jax.nn.sigmoid(gates)
    tg = jnp.tanh(gates)
    i = sg[:, 0 * H:1 * H]
    f = sg[:, 1 * H:2 * H]
    g = tg[:, 2 * H:3 * H]
    o = sg[:, 3 * H:4 * H]
    c_new = f * c + i * g
    h_new = o * jnp.tanh(c_new)
    return h_new, c_new


def _fused_rnn_kernel(*refs, num_layers, bidirectional):
    """Fused multi-layer bidirectional LSTM + Linear head.

    refs layout (inputs then output):
      x_ref (T, B, 1)
      for each layer, for each direction: wih (In, 4H), whh (H, 4H), b (1, 4H)
      fc_w (F, 1), fc_b (1, 1)
      out_ref (B, 1)
    """
    ndirs = 2 if bidirectional else 1
    x_ref = refs[0]
    idx = 1
    layer_params = []
    for _ in range(num_layers):
        dirs = []
        for _ in range(ndirs):
            dirs.append((refs[idx], refs[idx + 1], refs[idx + 2]))
            idx += 3
        layer_params.append(dirs)
    fcw_ref, fcb_ref, out_ref = refs[idx], refs[idx + 1], refs[idx + 2]

    T, B, _ = x_ref.shape
    H = layer_params[0][0][1].shape[0]          # whh is (H, 4H)

    prev_streams = None        # per-direction lists of (B, H) hidden states of prev layer
    head_parts = None

    for l in range(num_layers):
        # ---- Precompute input-gate terms per direction / timestep (off the serial chain).
        xg_dirs = []
        whh_dirs = []
        for (wih_ref, whh_ref, b_ref) in layer_params[l]:
            wih = wih_ref[...]
            b = b_ref[...]
            if l == 0:
                # In == 1: K=1 contraction == broadcast multiply (exact same math).
                xg = [x_ref[t] * wih + b for t in range(T)]          # (B,1)*(1,4H)
            else:
                # Split W_ih by source direction (sublane-aligned rows) instead of
                # concatenating hidden states along lanes.
                xg = []
                for t in range(T):
                    acc = b
                    for si, stream in enumerate(prev_streams):
                        acc = acc + jnp.dot(stream[t],
                                            wih[si * H:(si + 1) * H, :],
                                            preferred_element_type=jnp.float32)
                    xg.append(acc)                                   # (B, 4H)
            xg_dirs.append(xg)
            whh_dirs.append(whh_ref[...])

        # ---- Recurrences: fully unrolled, forward/backward chains interleaved.
        zeros = jnp.zeros((B, H), jnp.float32)
        h = [zeros] * ndirs
        c = [zeros] * ndirs
        outs = [[None] * T for _ in range(ndirs)]
        for s in range(T):
            for d in range(ndirs):
                t = s if d == 0 else T - 1 - s
                h[d], c[d] = _lstm_cell(xg_dirs[d][t], h[d], c[d], whh_dirs[d], H)
                outs[d][t] = h[d]

        if l == num_layers - 1:
            # Head only needs t=0 and t=T-1 (feature order matches torch.cat([out[0], out[-1]], dim=1)).
            if bidirectional:
                head_parts = [outs[0][0], outs[1][0], outs[0][T - 1], outs[1][T - 1]]
            else:
                head_parts = [outs[0][T - 1]]
        else:
            prev_streams = outs
        # TODO(synk): inter-layer dropout (p=0.2) is train-mode only; omitted (eval semantics).

    # ---- Fused FC head: y = feat @ fc_w^T + fc_b, with fc_w^T split per head part.
    fc_w = fcw_ref[...]                 # (F, 1)
    y = fcb_ref[...]                    # (1, 1) -> broadcasts to (B, 1)
    for k, part in enumerate(head_parts):
        y = y + jnp.dot(part, fc_w[k * H:(k + 1) * H, :],
                        preferred_element_type=jnp.float32)
    out_ref[...] = y


def rnn_model_forward(x, params, bidirectional=True):
    """x: (batch, seq_len, 1) -> (batch, 1). Mirrors RNNModel.forward (eval mode)."""
    B, T, _ = x.shape
    seq = jnp.transpose(x, (1, 0, 2)).astype(jnp.float32)     # x.transpose(0,1): (T, B, 1)
    num_layers = len(params["lstm"])
    ndirs = 2 if bidirectional else 1

    flat = [seq]
    in_specs = [pl.BlockSpec(seq.shape, lambda i: (0, 0, 0))]

    def add_2d(arr):
        flat.append(arr)
        in_specs.append(pl.BlockSpec(arr.shape, lambda i: (0, 0)))

    for dir_params in params["lstm"]:
        for (w_ih, w_hh, b_ih, b_hh) in dir_params[:ndirs]:
            add_2d(w_ih.T)                       # (In, 4H)
            add_2d(w_hh.T)                       # (H, 4H)
            add_2d((b_ih + b_hh)[None, :])       # (1, 4H)
    add_2d(params["fc_w"].T)                     # (F, 1)
    add_2d(params["fc_b"][None, :])              # (1, 1)

    kernel = functools.partial(_fused_rnn_kernel,
                               num_layers=num_layers,
                               bidirectional=bidirectional)

    # NOTE: shapes here are tiny (few KB); if T/H ever scale up, add a grid over T
    # (time-chunked specs) and set vmem_limit_bytes explicitly (v7x has half the VMEM).
    return pl.pallas_call(
        kernel,
        out_shape=jax.ShapeDtypeStruct((B, 1), jnp.float32),
        grid=(1,),
        in_specs=in_specs,
        out_specs=pl.BlockSpec((B, 1), lambda i: (0, 0)),
        compiler_params=pltpu.CompilerParams(
            dimension_semantics=("arbitrary",)),
    )(*flat)


def init_params(key, hidden_size, num_layers, bidirectional=True):
    """Deterministic params matching nn.LSTM(1, hidden_size, num_layers, bidirectional)
    + nn.Linear(4*hidden or hidden, 1) shapes; PyTorch-style U(-1/sqrt(H), 1/sqrt(H))."""
    dirs = 2 if bidirectional else 1
    k = 1.0 / float(hidden_size) ** 0.5
    layers = []
    for layer in range(num_layers):
        in_size = 1 if layer == 0 else dirs * hidden_size
        dir_params = []
        for _ in range(dirs):
            key, k0, k1, k2, k3 = jax.random.split(key, 5)
            w_ih = jax.random.uniform(k0, (4 * hidden_size, in_size), jnp.float32, -k, k)
            w_hh = jax.random.uniform(k1, (4 * hidden_size, hidden_size), jnp.float32, -k, k)
            b_ih = jax.random.uniform(k2, (4 * hidden_size,), jnp.float32, -k, k)
            b_hh = jax.random.uniform(k3, (4 * hidden_size,), jnp.float32, -k, k)
            dir_params.append((w_ih, w_hh, b_ih, b_hh))
        layers.append(dir_params)
    fc_in = 4 * hidden_size if bidirectional else hidden_size
    kf = 1.0 / float(fc_in) ** 0.5
    key, kw, kb = jax.random.split(key, 3)
    fc_w = jax.random.uniform(kw, (1, fc_in), jnp.float32, -kf, kf)
    fc_b = jax.random.uniform(kb, (1,), jnp.float32, -kf, kf)
    return {"lstm": layers, "fc_w": fc_w, "fc_b": fc_b}


if __name__ == "__main__":
    batch, seq_len, hidden, num_layers = 2, 8, 32, 2
    key = jax.random.PRNGKey(0)
    key, kx = jax.random.split(key)
    x = jax.random.normal(kx, (batch, seq_len, 1), jnp.float32)
    params = init_params(key, hidden, num_layers, bidirectional=True)

    fwd = jax.jit(functools.partial(rnn_model_forward, bidirectional=True))
    y = fwd(x, params)
    jax.block_until_ready(y)
    assert y.shape == (batch, 1) and y.dtype == jnp.float32
    assert bool(jnp.all(jnp.isfinite(y)))
    print("KERNEL_OK")
</pallas_src>

<mosaic_0001>
module attributes {stable_mosaic.version = 11 : i64} {
  func.func @_fused_rnn_kernel(%arg0: i32, %arg1: memref<8x2x1xf32, #tpu.memory_space<vmem>>, %arg2: memref<1x128xf32, #tpu.memory_space<vmem>>, %arg3: memref<32x128xf32, #tpu.memory_space<vmem>>, %arg4: memref<1x128xf32, #tpu.memory_space<vmem>>, %arg5: memref<1x128xf32, #tpu.memory_space<vmem>>, %arg6: memref<32x128xf32, #tpu.memory_space<vmem>>, %arg7: memref<1x128xf32, #tpu.memory_space<vmem>>, %arg8: memref<64x128xf32, #tpu.memory_space<vmem>>, %arg9: memref<32x128xf32, #tpu.memory_space<vmem>>, %arg10: memref<1x128xf32, #tpu.memory_space<vmem>>, %arg11: memref<64x128xf32, #tpu.memory_space<vmem>>, %arg12: memref<32x128xf32, #tpu.memory_space<vmem>>, %arg13: memref<1x128xf32, #tpu.memory_space<vmem>>, %arg14: memref<128x1xf32, #tpu.memory_space<vmem>>, %arg15: memref<1x1xf32, #tpu.memory_space<vmem>>, %arg16: memref<2x1xf32, #tpu.memory_space<vmem>>) attributes {dimension_semantics = [#tpu.dimension_semantics<arbitrary>], iteration_bounds = array<i64: 1>, scalar_prefetch = 0 : i64, scratch_operands = 0 : i64, tpu.core_type = #tpu.core_type<tc>, window_params = [{pipeline_mode = #tpu.pipeline_mode<synchronous>, transform_indices = @transform_0, window_bounds = array<i64: 8, 2, 1>}, {pipeline_mode = #tpu.pipeline_mode<synchronous>, transform_indices = @transform_1, window_bounds = array<i64: 1, 128>}, {pipeline_mode = #tpu.pipeline_mode<synchronous>, transform_indices = @transform_2, window_bounds = array<i64: 32, 128>}, {pipeline_mode = #tpu.pipeline_mode<synchronous>, transform_indices = @transform_3, window_bounds = array<i64: 1, 128>}, {pipeline_mode = #tpu.pipeline_mode<synchronous>, transform_indices = @transform_4, window_bounds = array<i64: 1, 128>}, {pipeline_mode = #tpu.pipeline_mode<synchronous>, transform_indices = @transform_5, window_bounds = array<i64: 32, 128>}, {pipeline_mode = #tpu.pipeline_mode<synchronous>, transform_indices = @transform_6, window_bounds = array<i64: 1, 128>}, {pipeline_mode = #tpu.pipeline_mode<synchronous>, transform_indices = @transform_7, window_bounds = array<i64: 64, 128>}, {pipeline_mode = #tpu.pipeline_mode<synchronous>, transform_indices = @transform_8, window_bounds = array<i64: 32, 128>}, {pipeline_mode = #tpu.pipeline_mode<synchronous>, transform_indices = @transform_9, window_bounds = array<i64: 1, 128>}, {pipeline_mode = #tpu.pipeline_mode<synchronous>, transform_indices = @transform_10, window_bounds = array<i64: 64, 128>}, {pipeline_mode = #tpu.pipeline_mode<synchronous>, transform_indices = @transform_11, window_bounds = array<i64: 32, 128>}, {pipeline_mode = #tpu.pipeline_mode<synchronous>, transform_indices = @transform_12, window_bounds = array<i64: 1, 128>}, {pipeline_mode = #tpu.pipeline_mode<synchronous>, transform_indices = @transform_13, window_bounds = array<i64: 128, 1>}, {pipeline_mode = #tpu.pipeline_mode<synchronous>, transform_indices = @transform_14, window_bounds = array<i64: 1, 1>}, {pipeline_mode = #tpu.pipeline_mode<synchronous>, transform_indices = @transform_15, window_bounds = array<i64: 2, 1>}]} {
    %c0 = arith.constant 0 : index
    %c0_0 = arith.constant 0 : index
    %0 = vector.load %arg2[%c0, %c0_0] : memref<1x128xf32, #tpu.memory_space<vmem>>, vector<1x128xf32>
    %c0_1 = arith.constant 0 : index
    %c0_2 = arith.constant 0 : index
    %1 = vector.load %arg4[%c0_1, %c0_2] : memref<1x128xf32, #tpu.memory_space<vmem>>, vector<1x128xf32>
    %c0_3 = arith.constant 0 : index
    %c0_4 = arith.constant 0 : index
    %c0_5 = arith.constant 0 : index
    %2 = vector.load %arg1[%c0_3, %c0_4, %c0_5] : memref<8x2x1xf32, #tpu.memory_space<vmem>>, vector<1x2x1xf32>
    %3 = vector.shape_cast %2 : vector<1x2x1xf32> to vector<2x1xf32>
    %4 = vector.broadcast %3 : vector<2x1xf32> to vector<2x128xf32>
    %5 = vector.broadcast %0 : vector<1x128xf32> to vector<2x128xf32>
    %6 = arith.mulf %4, %5 : vector<2x128xf32>
    %7 = vector.broadcast %1 : vector<1x128xf32> to vector<2x128xf32>
    %8 = arith.addf %6, %7 : vector<2x128xf32>
    %c1 = arith.constant 1 : index
    %c0_6 = arith.constant 0 : index
    %c0_7 = arith.constant 0 : index
    %9 = vector.load %arg1[%c1, %c0_6, %c0_7] : memref<8x2x1xf32, #tpu.memory_space<vmem>>, vector<1x2x1xf32>
    %10 = vector.shape_cast %9 : vector<1x2x1xf32> to vector<2x1xf32>
    %11 = vector.broadcast %10 : vector<2x1xf32> to vector<2x128xf32>
    %12 = vector.broadcast %0 : vector<1x128xf32> to vector<2x128xf32>
    %13 = arith.mulf %11, %12 : vector<2x128xf32>
    %14 = vector.broadcast %1 : vector<1x128xf32> to vector<2x128xf32>
    %15 = arith.addf %13, %14 : vector<2x128xf32>
    %c2 = arith.constant 2 : index
    %c0_8 = arith.constant 0 : index
    %c0_9 = arith.constant 0 : index
    %16 = vector.load %arg1[%c2, %c0_8, %c0_9] : memref<8x2x1xf32, #tpu.memory_space<vmem>>, vector<1x2x1xf32>
    %17 = vector.shape_cast %16 : vector<1x2x1xf32> to vector<2x1xf32>
    %18 = vector.broadcast %17 : vector<2x1xf32> to vector<2x128xf32>
    %19 = vector.broadcast %0 : vector<1x128xf32> to vector<2x128xf32>
    %20 = arith.mulf %18, %19 : vector<2x128xf32>
    %21 = vector.broadcast %1 : vector<1x128xf32> to vector<2x128xf32>
    %22 = arith.addf %20, %21 : vector<2x128xf32>
    %c3 = arith.constant 3 : index
    %c0_10 = arith.constant 0 : index
    %c0_11 = arith.constant 0 : index
    %23 = vector.load %arg1[%c3, %c0_10, %c0_11] : memref<8x2x1xf32, #tpu.memory_space<vmem>>, vector<1x2x1xf32>
    %24 = vector.shape_cast %23 : vector<1x2x1xf32> to vector<2x1xf32>
    %25 = vector.broadcast %24 : vector<2x1xf32> to vector<2x128xf32>
    %26 = vector.broadcast %0 : vector<1x128xf32> to vector<2x128xf32>
    %27 = arith.mulf %25, %26 : vector<2x128xf32>
    %28 = vector.broadcast %1 : vector<1x128xf32> to vector<2x128xf32>
    %29 = arith.addf %27, %28 : vector<2x128xf32>
    %c4 = arith.constant 4 : index
    %c0_12 = arith.constant 0 : index
    %c0_13 = arith.constant 0 : index
    %30 = vector.load %arg1[%c4, %c0_12, %c0_13] : memref<8x2x1xf32, #tpu.memory_space<vmem>>, vector<1x2x1xf32>
    %31 = vector.shape_cast %30 : vector<1x2x1xf32> to vector<2x1xf32>
    %32 = vector.broadcast %31 : vector<2x1xf32> to vector<2x128xf32>
    %33 = vector.broadcast %0 : vector<1x128xf32> to vector<2x128xf32>
    %34 = arith.mulf %32, %33 : vector<2x128xf32>
    %35 = vector.broadcast %1 : vector<1x128xf32> to vector<2x128xf32>
    %36 = arith.addf %34, %35 : vector<2x128xf32>
    %c5 = arith.constant 5 : index
    %c0_14 = arith.constant 0 : index
    %c0_15 = arith.constant 0 : index
    %37 = vector.load %arg1[%c5, %c0_14, %c0_15] : memref<8x2x1xf32, #tpu.memory_space<vmem>>, vector<1x2x1xf32>
    %38 = vector.shape_cast %37 : vector<1x2x1xf32> to vector<2x1xf32>
    %39 = vector.broadcast %38 : vector<2x1xf32> to vector<2x128xf32>
    %40 = vector.broadcast %0 : vector<1x128xf32> to vector<2x128xf32>
    %41 = arith.mulf %39, %40 : vector<2x128xf32>
    %42 = vector.broadcast %1 : vector<1x128xf32> to vector<2x128xf32>
    %43 = arith.addf %41, %42 : vector<2x128xf32>
    %c6 = arith.constant 6 : index
    %c0_16 = arith.constant 0 : index
    %c0_17 = arith.constant 0 : index
    %44 = vector.load %arg1[%c6, %c0_16, %c0_17] : memref<8x2x1xf32, #tpu.memory_space<vmem>>, vector<1x2x1xf32>
    %45 = vector.shape_cast %44 : vector<1x2x1xf32> to vector<2x1xf32>
    %46 = vector.broadcast %45 : vector<2x1xf32> to vector<2x128xf32>
    %47 = vector.broadcast %0 : vector<1x128xf32> to vector<2x128xf32>
    %48 = arith.mulf %46, %47 : vector<2x128xf32>
    %49 = vector.broadcast %1 : vector<1x128xf32> to vector<2x128xf32>
    %50 = arith.addf %48, %49 : vector<2x128xf32>
    %c7 = arith.constant 7 : index
    %c0_18 = arith.constant 0 : index
    %c0_19 = arith.constant 0 : index
    %51 = vector.load %arg1[%c7, %c0_18, %c0_19] : memref<8x2x1xf32, #tpu.memory_space<vmem>>, vector<1x2x1xf32>
    %52 = vector.shape_cast %51 : vector<1x2x1xf32> to vector<2x1xf32>
    %53 = vector.broadcast %52 : vector<2x1xf32> to vector<2x128xf32>
    %54 = vector.broadcast %0 : vector<1x128xf32> to vector<2x128xf32>
    %55 = arith.mulf %53, %54 : vector<2x128xf32>
    %56 = vector.broadcast %1 : vector<1x128xf32> to vector<2x128xf32>
    %57 = arith.addf %55, %56 : vector<2x128xf32>
    %c0_20 = arith.constant 0 : index
    %c0_21 = arith.constant 0 : index
    %58 = vector.load %arg3[%c0_20, %c0_21] : memref<32x128xf32, #tpu.memory_space<vmem>>, vector<32x128xf32>
    %c0_22 = arith.constant 0 : index
    %c0_23 = arith.constant 0 : index
    %59 = vector.load %arg5[%c0_22, %c0_23] : memref<1x128xf32, #tpu.memory_space<vmem>>, vector<1x128xf32>
    %c0_24 = arith.constant 0 : index
    %c0_25 = arith.constant 0 : index
    %60 = vector.load %arg7[%c0_24, %c0_25] : memref<1x128xf32, #tpu.memory_space<vmem>>, vector<1x128xf32>
    %c0_26 = arith.constant 0 : index
    %c0_27 = arith.constant 0 : index
    %c0_28 = arith.constant 0 : index
    %61 = vector.load %arg1[%c0_26, %c0_27, %c0_28] : memref<8x2x1xf32, #tpu.memory_space<vmem>>, vector<1x2x1xf32>
    %62 = vector.shape_cast %61 : vector<1x2x1xf32> to vector<2x1xf32>
    %63 = vector.broadcast %62 : vector<2x1xf32> to vector<2x128xf32>
    %64 = vector.broadcast %59 : vector<1x128xf32> to vector<2x128xf32>
    %65 = arith.mulf %63, %64 : vector<2x128xf32>
    %66 = vector.broadcast %60 : vector<1x128xf32> to vector<2x128xf32>
    %67 = arith.addf %65, %66 : vector<2x128xf32>
    %c1_29 = arith.constant 1 : index
    %c0_30 = arith.constant 0 : index
    %c0_31 = arith.constant 0 : index
    %68 = vector.load %arg1[%c1_29, %c0_30, %c0_31] : memref<8x2x1xf32, #tpu.memory_space<vmem>>, vector<1x2x1xf32>
    %69 = vector.shape_cast %68 : vector<1x2x1xf32> to vector<2x1xf32>
    %70 = vector.broadcast %69 : vector<2x1xf32> to vector<2x128xf32>
    %71 = vector.broadcast %59 : vector<1x128xf32> to vector<2x128xf32>
    %72 = arith.mulf %70, %71 : vector<2x128xf32>
    %73 = vector.broadcast %60 : vector<1x128xf32> to vector<2x128xf32>
    %74 = arith.addf %72, %73 : vector<2x128xf32>
    %c2_32 = arith.constant 2 : index
    %c0_33 = arith.constant 0 : index
    %c0_34 = arith.constant 0 : index
    %75 = vector.load %arg1[%c2_32, %c0_33, %c0_34] : memref<8x2x1xf32, #tpu.memory_space<vmem>>, vector<1x2x1xf32>
    %76 = vector.shape_cast %75 : vector<1x2x1xf32> to vector<2x1xf32>
    %77 = vector.broadcast %76 : vector<2x1xf32> to vector<2x128xf32>
    %78 = vector.broadcast %59 : vector<1x128xf32> to vector<2x128xf32>
    %79 = arith.mulf %77, %78 : vector<2x128xf32>
    %80 = vector.broadcast %60 : vector<1x128xf32> to vector<2x128xf32>
    %81 = arith.addf %79, %80 : vector<2x128xf32>
    %c3_35 = arith.constant 3 : index
    %c0_36 = arith.constant 0 : index
    %c0_37 = arith.constant 0 : index
    %82 = vector.load %arg1[%c3_35, %c0_36, %c0_37] : memref<8x2x1xf32, #tpu.memory_space<vmem>>, vector<1x2x1xf32>
    %83 = vector.shape_cast %82 : vector<1x2x1xf32> to vector<2x1xf32>
    %84 = vector.broadcast %83 : vector<2x1xf32> to vector<2x128xf32>
    %85 = vector.broadcast %59 : vector<1x128xf32> to vector<2x128xf32>
    %86 = arith.mulf %84, %85 : vector<2x128xf32>
    %87 = vector.broadcast %60 : vector<1x128xf32> to vector<2x128xf32>
    %88 = arith.addf %86, %87 : vector<2x128xf32>
    %c4_38 = arith.constant 4 : index
    %c0_39 = arith.constant 0 : index
    %c0_40 = arith.constant 0 : index
    %89 = vector.load %arg1[%c4_38, %c0_39, %c0_40] : memref<8x2x1xf32, #tpu.memory_space<vmem>>, vector<1x2x1xf32>
    %90 = vector.shape_cast %89 : vector<1x2x1xf32> to vector<2x1xf32>
    %91 = vector.broadcast %90 : vector<2x1xf32> to vector<2x128xf32>
    %92 = vector.broadcast %59 : vector<1x128xf32> to vector<2x128xf32>
    %93 = arith.mulf %91, %92 : vector<2x128xf32>
    %94 = vector.broadcast %60 : vector<1x128xf32> to vector<2x128xf32>
    %95 = arith.addf %93, %94 : vector<2x128xf32>
    %c5_41 = arith.constant 5 : index
    %c0_42 = arith.constant 0 : index
    %c0_43 = arith.constant 0 : index
    %96 = vector.load %arg1[%c5_41, %c0_42, %c0_43] : memref<8x2x1xf32, #tpu.memory_space<vmem>>, vector<1x2x1xf32>
    %97 = vector.shape_cast %96 : vector<1x2x1xf32> to vector<2x1xf32>
    %98 = vector.broadcast %97 : vector<2x1xf32> to vector<2x128xf32>
    %99 = vector.broadcast %59 : vector<1x128xf32> to vector<2x128xf32>
    %100 = arith.mulf %98, %99 : vector<2x128xf32>
    %101 = vector.broadcast %60 : vector<1x128xf32> to vector<2x128xf32>
    %102 = arith.addf %100, %101 : vector<2x128xf32>
    %c6_44 = arith.constant 6 : index
    %c0_45 = arith.constant 0 : index
    %c0_46 = arith.constant 0 : index
    %103 = vector.load %arg1[%c6_44, %c0_45, %c0_46] : memref<8x2x1xf32, #tpu.memory_space<vmem>>, vector<1x2x1xf32>
    %104 = vector.shape_cast %103 : vector<1x2x1xf32> to vector<2x1xf32>
    %105 = vector.broadcast %104 : vector<2x1xf32> to vector<2x128xf32>
    %106 = vector.broadcast %59 : vector<1x128xf32> to vector<2x128xf32>
    %107 = arith.mulf %105, %106 : vector<2x128xf32>
    %108 = vector.broadcast %60 : vector<1x128xf32> to vector<2x128xf32>
    %109 = arith.addf %107, %108 : vector<2x128xf32>
    %c7_47 = arith.constant 7 : index
    %c0_48 = arith.constant 0 : index
    %c0_49 = arith.constant 0 : index
    %110 = vector.load %arg1[%c7_47, %c0_48, %c0_49] : memref<8x2x1xf32, #tpu.memory_space<vmem>>, vector<1x2x1xf32>
    %111 = vector.shape_cast %110 : vector<1x2x1xf32> to vector<2x1xf32>
    %112 = vector.broadcast %111 : vector<2x1xf32> to vector<2x128xf32>
    %113 = vector.broadcast %59 : vector<1x128xf32> to vector<2x128xf32>
    %114 = arith.mulf %112, %113 : vector<2x128xf32>
    %115 = vector.broadcast %60 : vector<1x128xf32> to vector<2x128xf32>
    %116 = arith.addf %114, %115 : vector<2x128xf32>
    %c0_50 = arith.constant 0 : index
    %c0_51 = arith.constant 0 : index
    %117 = vector.load %arg6[%c0_50, %c0_51] : memref<32x128xf32, #tpu.memory_space<vmem>>, vector<32x128xf32>
    %cst = arith.constant 0.000000e+00 : f32
    %118 = vector.broadcast %cst : f32 to vector<2x32xf32>
    %cst_52 = arith.constant dense<0.000000e+00> : vector<2x128xf32>
    %119 = tpu.matmul %118, %58, %cst_52 {dimension_numbers = #tpu.dot_dimension_numbers<[1], [0], [0], [1], [0, 0, 1, 1], [], []>} : vector<2x32xf32>, vector<32x128xf32>, vector<2x128xf32> -> vector<2x128xf32>
    %120 = arith.addf %8, %119 : vector<2x128xf32>
    %121 = arith.negf %120 : vector<2x128xf32>
    %122 = math.exp %121 : vector<2x128xf32>
    %cst_53 = arith.constant 1.000000e+00 : f32
    %123 = vector.broadcast %cst_53 : f32 to vector<2x128xf32>
    %124 = arith.addf %123, %122 : vector<2x128xf32>
    %125 = arith.divf %123, %124 : vector<2x128xf32>
    %126 = math.tanh %120 : vector<2x128xf32>
    %127 = vector.extract_strided_slice %125 {offsets = [0, 0], sizes = [2, 32], strides = [1, 1]} : vector<2x128xf32> to vector<2x32xf32>
    %128 = vector.extract_strided_slice %125 {offsets = [0, 32], sizes = [2, 32], strides = [1, 1]} : vector<2x128xf32> to vector<2x32xf32>
    %129 = vector.extract_strided_slice %126 {offsets = [0, 64], sizes = [2, 32], strides = [1, 1]} : vector<2x128xf32> to vector<2x32xf32>
    %130 = vector.extract_strided_slice %125 {offsets = [0, 96], sizes = [2, 32], strides = [1, 1]} : vector<2x128xf32> to vector<2x32xf32>
    %131 = arith.mulf %128, %118 : vector<2x32xf32>
    %132 = arith.mulf %127, %129 : vector<2x32xf32>
    %133 = arith.addf %131, %132 : vector<2x32xf32>
    %134 = math.tanh %133 : vector<2x32xf32>
    %135 = arith.mulf %130, %134 : vector<2x32xf32>
    %cst_54 = arith.constant dense<0.000000e+00> : vector<2x128xf32>
    %136 = tpu.matmul %118, %117, %cst_54 {dimension_numbers = #tpu.dot_dimension_numbers<[1], [0], [0], [1], [0, 0, 1, 1], [], []>} : vector<2x32xf32>, vector<32x128xf32>, vector<2x128xf32> -> vector<2x128xf32>
    %137 = arith.addf %116, %136 : vector<2x128xf32>
    %138 = arith.negf %137 : vector<2x128xf32>
    %139 = math.exp %138 : vector<2x128xf32>
    %cst_55 = arith.constant 1.000000e+00 : f32
    %140 = vector.broadcast %cst_55 : f32 to vector<2x128xf32>
    %141 = arith.addf %140, %139 : vector<2x128xf32>
    %142 = arith.divf %140, %141 : vector<2x128xf32>
    %143 = math.tanh %137 : vector<2x128xf32>
    %144 = vector.extract_strided_slice %142 {offsets = [0, 0], sizes = [2, 32], strides = [1, 1]} : vector<2x128xf32> to vector<2x32xf32>
    %145 = vector.extract_strided_slice %142 {offsets = [0, 32], sizes = [2, 32], strides = [1, 1]} : vector<2x128xf32> to vector<2x32xf32>
    %146 = vector.extract_strided_slice %143 {offsets = [0, 64], sizes = [2, 32], strides = [1, 1]} : vector<2x128xf32> to vector<2x32xf32>
    %147 = vector.extract_strided_slice %142 {offsets = [0, 96], sizes = [2, 32], strides = [1, 1]} : vector<2x128xf32> to vector<2x32xf32>
    %148 = arith.mulf %145, %118 : vector<2x32xf32>
    %149 = arith.mulf %144, %146 : vector<2x32xf32>
    %150 = arith.addf %148, %149 : vector<2x32xf32>
    %151 = math.tanh %150 : vector<2x32xf32>
    %152 = arith.mulf %147, %151 : vector<2x32xf32>
    %cst_56 = arith.constant dense<0.000000e+00> : vector<2x128xf32>
    %153 = tpu.matmul %135, %58, %cst_56 {dimension_numbers = #tpu.dot_dimension_numbers<[1], [0], [0], [1], [0, 0, 1, 1], [], []>} : vector<2x32xf32>, vector<32x128xf32>, vector<2x128xf32> -> vector<2x128xf32>
    %154 = arith.addf %15, %153 : vector<2x128xf32>
    %155 = arith.negf %154 : vector<2x128xf32>
    %156 = math.exp %155 : vector<2x128xf32>
    %cst_57 = arith.constant 1.000000e+00 : f32
    %157 = vector.broadcast %cst_57 : f32 to vector<2x128xf32>
    %158 = arith.addf %157, %156 : vector<2x128xf32>
    %159 = arith.divf %157, %158 : vector<2x128xf32>
    %160 = math.tanh %154 : vector<2x128xf32>
    %161 = vector.extract_strided_slice %159 {offsets = [0, 0], sizes = [2, 32], strides = [1, 1]} : vector<2x128xf32> to vector<2x32xf32>
    %162 = vector.extract_strided_slice %159 {offsets = [0, 32], sizes = [2, 32], strides = [1, 1]} : vector<2x128xf32> to vector<2x32xf32>
    %163 = vector.extract_strided_slice %160 {offsets = [0, 64], sizes = [2, 32], strides = [1, 1]} : vector<2x128xf32> to vector<2x32xf32>
    %164 = vector.extract_strided_slice %159 {offsets = [0, 96], sizes = [2, 32], strides = [1, 1]} : vector<2x128xf32> to vector<2x32xf32>
    %165 = arith.mulf %162, %133 : vector<2x32xf32>
    %166 = arith.mulf %161, %163 : vector<2x32xf32>
    %167 = arith.addf %165, %166 : vector<2x32xf32>
    %168 = math.tanh %167 : vector<2x32xf32>
    %169 = arith.mulf %164, %168 : vector<2x32xf32>
    %cst_58 = arith.constant dense<0.000000e+00> : vector<2x128xf32>
    %170 = tpu.matmul %152, %117, %cst_58 {dimension_numbers = #tpu.dot_dimension_numbers<[1], [0], [0], [1], [0, 0, 1, 1], [], []>} : vector<2x32xf32>, vector<32x128xf32>, vector<2x128xf32> -> vector<2x128xf32>
    %171 = arith.addf %109, %170 : vector<2x128xf32>
    %172 = arith.negf %171 : vector<2x128xf32>
    %173 = math.exp %172 : vector<2x128xf32>
    %cst_59 = arith.constant 1.000000e+00 : f32
    %174 = vector.broadcast %cst_59 : f32 to vector<2x128xf32>
    %175 = arith.addf %174, %173 : vector<2x128xf32>
    %176 = arith.divf %174, %175 : vector<2x128xf32>
    %177 = math.tanh %171 : vector<2x128xf32>
    %178 = vector.extract_strided_slice %176 {offsets = [0, 0], sizes = [2, 32], strides = [1, 1]} : vector<2x128xf32> to vector<2x32xf32>
    %179 = vector.extract_strided_slice %176 {offsets = [0, 32], sizes = [2, 32], strides = [1, 1]} : vector<2x128xf32> to vector<2x32xf32>
    %180 = vector.extract_strided_slice %177 {offsets = [0, 64], sizes = [2, 32], strides = [1, 1]} : vector<2x128xf32> to vector<2x32xf32>
    %181 = vector.extract_strided_slice %176 {offsets = [0, 96], sizes = [2, 32], strides = [1, 1]} : vector<2x128xf32> to vector<2x32xf32>
    %182 = arith.mulf %179, %150 : vector<2x32xf32>
    %183 = arith.mulf %178, %180 : vector<2x32xf32>
    %184 = arith.addf %182, %183 : vector<2x32xf32>
    %185 = math.tanh %184 : vector<2x32xf32>
    %186 = arith.mulf %181, %185 : vector<2x32xf32>
    %cst_60 = arith.constant dense<0.000000e+00> : vector<2x128xf32>
    %187 = tpu.matmul %169, %58, %cst_60 {dimension_numbers = #tpu.dot_dimension_numbers<[1], [0], [0], [1], [0, 0, 1, 1], [], []>} : vector<2x32xf32>, vector<32x128xf32>, vector<2x128xf32> -> vector<2x128xf32>
    %188 = arith.addf %22, %187 : vector<2x128xf32>
    %189 = arith.negf %188 : vector<2x128xf32>
    %190 = math.exp %189 : vector<2x128xf32>
    %cst_61 = arith.constant 1.000000e+00 : f32
    %191 = vector.broadcast %cst_61 : f32 to vector<2x128xf32>
    %192 = arith.addf %191, %190 : vector<2x128xf32>
    %193 = arith.divf %191, %192 : vector<2x128xf32>
    %194 = math.tanh %188 : vector<2x128xf32>
    %195 = vector.extract_strided_slice %193 {offsets = [0, 0], sizes = [2, 32], strides = [1, 1]} : vector<2x128xf32> to vector<2x32xf32>
    %196 = vector.extract_strided_slice %193 {offsets = [0, 32], sizes = [2, 32], strides = [1, 1]} : vector<2x128xf32> to vector<2x32xf32>
    %197 = vector.extract_strided_slice %194 {offsets = [0, 64], sizes = [2, 32], strides = [1, 1]} : vector<2x128xf32> to vector<2x32xf32>
    %198 = vector.extract_strided_slice %193 {offsets = [0, 96], sizes = [2, 32], strides = [1, 1]} : vector<2x128xf32> to vector<2x32xf32>
    %199 = arith.mulf %196, %167 : vector<2x32xf32>
    %200 = arith.mulf %195, %197 : vector<2x32xf32>
    %201 = arith.addf %199, %200 : vector<2x32xf32>
    %202 = math.tanh %201 : vector<2x32xf32>
    %203 = arith.mulf %198, %202 : vector<2x32xf32>
    %cst_62 = arith.constant dense<0.000000e+00> : vector<2x128xf32>
    %204 = tpu.matmul %186, %117, %cst_62 {dimension_numbers = #tpu.dot_dimension_numbers<[1], [0], [0], [1], [0, 0, 1, 1], [], []>} : vector<2x32xf32>, vector<32x128xf32>, vector<2x128xf32> -> vector<2x128xf32>
    %205 = arith.addf %102, %204 : vector<2x128xf32>
    %206 = arith.negf %205 : vector<2x128xf32>
    %207 = math.exp %206 : vector<2x128xf32>
    %cst_63 = arith.constant 1.000000e+00 : f32
    %208 = vector.broadcast %cst_63 : f32 to vector<2x128xf32>
    %209 = arith.addf %208, %207 : vector<2x128xf32>
    %210 = arith.divf %208, %209 : vector<2x128xf32>
    %211 = math.tanh %205 : vector<2x128xf32>
    %212 = vector.extract_strided_slice %210 {offsets = [0, 0], sizes = [2, 32], strides = [1, 1]} : vector<2x128xf32> to vector<2x32xf32>
    %213 = vector.extract_strided_slice %210 {offsets = [0, 32], sizes = [2, 32], strides = [1, 1]} : vector<2x128xf32> to vector<2x32xf32>
    %214 = vector.extract_strided_slice %211 {offsets = [0, 64], sizes = [2, 32], strides = [1, 1]} : vector<2x128xf32> to vector<2x32xf32>
    %215 = vector.extract_strided_slice %210 {offsets = [0, 96], sizes = [2, 32], strides = [1, 1]} : vector<2x128xf32> to vector<2x32xf32>
    %216 = arith.mulf %213, %184 : vector<2x32xf32>
    %217 = arith.mulf %212, %214 : vector<2x32xf32>
    %218 = arith.addf %216, %217 : vector<2x32xf32>
    %219 = math.tanh %218 : vector<2x32xf32>
    %220 = arith.mulf %215, %219 : vector<2x32xf32>
    %cst_64 = arith.constant dense<0.000000e+00> : vector<2x128xf32>
    %221 = tpu.matmul %203, %58, %cst_64 {dimension_numbers = #tpu.dot_dimension_numbers<[1], [0], [0], [1], [0, 0, 1, 1], [], []>} : vector<2x32xf32>, vector<32x128xf32>, vector<2x128xf32> -> vector<2x128xf32>
    %222 = arith.addf %29, %221 : vector<2x128xf32>
    %223 = arith.negf %222 : vector<2x128xf32>
    %224 = math.exp %223 : vector<2x128xf32>
    %cst_65 = arith.constant 1.000000e+00 : f32
    %225 = vector.broadcast %cst_65 : f32 to vector<2x128xf32>
    %226 = arith.addf %225, %224 : vector<2x128xf32>
    %227 = arith.divf %225, %226 : vector<2x128xf32>
    %228 = math.tanh %222 : vector<2x128xf32>
    %229 = vector.extract_strided_slice %227 {offsets = [0, 0], sizes = [2, 32], strides = [1, 1]} : vector<2x128xf32> to vector<2x32xf32>
    %230 = vector.extract_strided_slice %227 {offsets = [0, 32], sizes = [2, 32], strides = [1, 1]} : vector<2x128xf32> to vector<2x32xf32>
    %231 = vector.extract_strided_slice %228 {offsets = [0, 64], sizes = [2, 32], strides = [1, 1]} : vector<2x128xf32> to vector<2x32xf32>
    %232 = vector.extract_strided_slice %227 {offsets = [0, 96], sizes = [2, 32], strides = [1, 1]} : vector<2x128xf32> to vector<2x32xf32>
    %233 = arith.mulf %230, %201 : vector<2x32xf32>
    %234 = arith.mulf %229, %231 : vector<2x32xf32>
    %235 = arith.addf %233, %234 : vector<2x32xf32>
    %236 = math.tanh %235 : vector<2x32xf32>
    %237 = arith.mulf %232, %236 : vector<2x32xf32>
    %cst_66 = arith.constant dense<0.000000e+00> : vector<2x128xf32>
    %238 = tpu.matmul %220, %117, %cst_66 {dimension_numbers = #tpu.dot_dimension_numbers<[1], [0], [0], [1], [0, 0, 1, 1], [], []>} : vector<2x32xf32>, vector<32x128xf32>, vector<2x128xf32> -> vector<2x128xf32>
    %239 = arith.addf %95, %238 : vector<2x128xf32>
    %240 = arith.negf %239 : vector<2x128xf32>
    %241 = math.exp %240 : vector<2x128xf32>
    %cst_67 = arith.constant 1.000000e+00 : f32
    %242 = vector.broadcast %cst_67 : f32 to vector<2x128xf32>
    %243 = arith.addf %242, %241 : vector<2x128xf32>
    %244 = arith.divf %242, %243 : vector<2x128xf32>
    %245 = math.tanh %239 : vector<2x128xf32>
    %246 = vector.extract_strided_slice %244 {offsets = [0, 0], sizes = [2, 32], strides = [1, 1]} : vector<2x128xf32> to vector<2x32xf32>
    %247 = vector.extract_strided_slice %244 {offsets = [0, 32], sizes = [2, 32], strides = [1, 1]} : vector<2x128xf32> to vector<2x32xf32>
    %248 = vector.extract_strided_slice %245 {offsets = [0, 64], sizes = [2, 32], strides = [1, 1]} : vector<2x128xf32> to vector<2x32xf32>
    %249 = vector.extract_strided_slice %244 {offsets = [0, 96], sizes = [2, 32], strides = [1, 1]} : vector<2x128xf32> to vector<2x32xf32>
    %250 = arith.mulf %247, %218 : vector<2x32xf32>
    %251 = arith.mulf %246, %248 : vector<2x32xf32>
    %252 = arith.addf %250, %251 : vector<2x32xf32>
    %253 = math.tanh %252 : vector<2x32xf32>
    %254 = arith.mulf %249, %253 : vector<2x32xf32>
    %cst_68 = arith.constant dense<0.000000e+00> : vector<2x128xf32>
    %255 = tpu.matmul %237, %58, %cst_68 {dimension_numbers = #tpu.dot_dimension_numbers<[1], [0], [0], [1], [0, 0, 1, 1], [], []>} : vector<2x32xf32>, vector<32x128xf32>, vector<2x128xf32> -> vector<2x128xf32>
    %256 = arith.addf %36, %255 : vector<2x128xf32>
    %257 = arith.negf %256 : vector<2x128xf32>
    %258 = math.exp %257 : vector<2x128xf32>
    %cst_69 = arith.constant 1.000000e+00 : f32
    %259 = vector.broadcast %cst_69 : f32 to vector<2x128xf32>
    %260 = arith.addf %259, %258 : vector<2x128xf32>
    %261 = arith.divf %259, %260 : vector<2x128xf32>
    %262 = math.tanh %256 : vector<2x128xf32>
    %263 = vector.extract_strided_slice %261 {offsets = [0, 0], sizes = [2, 32], strides = [1, 1]} : vector<2x128xf32> to vector<2x32xf32>
    %264 = vector.extract_strided_slice %261 {offsets = [0, 32], sizes = [2, 32], strides = [1, 1]} : vector<2x128xf32> to vector<2x32xf32>
    %265 = vector.extract_strided_slice %262 {offsets = [0, 64], sizes = [2, 32], strides = [1, 1]} : vector<2x128xf32> to vector<2x32xf32>
    %266 = vector.extract_strided_slice %261 {offsets = [0, 96], sizes = [2, 32], strides = [1, 1]} : vector<2x128xf32> to vector<2x32xf32>
    %267 = arith.mulf %264, %235 : vector<2x32xf32>
    %268 = arith.mulf %263, %265 : vector<2x32xf32>
    %269 = arith.addf %267, %268 : vector<2x32xf32>
    %270 = math.tanh %269 : vector<2x32xf32>
    %271 = arith.mulf %266, %270 : vector<2x32xf32>
    %cst_70 = arith.constant dense<0.000000e+00> : vector<2x128xf32>
    %272 = tpu.matmul %254, %117, %cst_70 {dimension_numbers = #tpu.dot_dimension_numbers<[1], [0], [0], [1], [0, 0, 1, 1], [], []>} : vector<2x32xf32>, vector<32x128xf32>, vector<2x128xf32> -> vector<2x128xf32>
    %273 = arith.addf %88, %272 : vector<2x128xf32>
    %274 = arith.negf %273 : vector<2x128xf32>
    %275 = math.exp %274 : vector<2x128xf32>
    %cst_71 = arith.constant 1.000000e+00 : f32
    %276 = vector.broadcast %cst_71 : f32 to vector<2x128xf32>
    %277 = arith.addf %276, %275 : vector<2x128xf32>
    %278 = arith.divf %276, %277 : vector<2x128xf32>
    %279 = math.tanh %273 : vector<2x128xf32>
    %280 = vector.extract_strided_slice %278 {offsets = [0, 0], sizes = [2, 32], strides = [1, 1]} : vector<2x128xf32> to vector<2x32xf32>
    %281 = vector.extract_strided_slice %278 {offsets = [0, 32], sizes = [2, 32], strides = [1, 1]} : vector<2x128xf32> to vector<2x32xf32>
    %282 = vector.extract_strided_slice %279 {offsets = [0, 64], sizes = [2, 32], strides = [1, 1]} : vector<2x128xf32> to vector<2x32xf32>
    %283 = vector.extract_strided_slice %278 {offsets = [0, 96], sizes = [2, 32], strides = [1, 1]} : vector<2x128xf32> to vector<2x32xf32>
    %284 = arith.mulf %281, %252 : vector<2x32xf32>
    %285 = arith.mulf %280, %282 : vector<2x32xf32>
    %286 = arith.addf %284, %285 : vector<2x32xf32>
    %287 = math.tanh %286 : vector<2x32xf32>
    %288 = arith.mulf %283, %287 : vector<2x32xf32>
    %cst_72 = arith.constant dense<0.000000e+00> : vector<2x128xf32>
    %289 = tpu.matmul %271, %58, %cst_72 {dimension_numbers = #tpu.dot_dimension_numbers<[1], [0], [0], [1], [0, 0, 1, 1], [], []>} : vector<2x32xf32>, vector<32x128xf32>, vector<2x128xf32> -> vector<2x128xf32>
    %290 = arith.addf %43, %289 : vector<2x128xf32>
    %291 = arith.negf %290 : vector<2x128xf32>
    %292 = math.exp %291 : vector<2x128xf32>
    %cst_73 = arith.constant 1.000000e+00 : f32
    %293 = vector.broadcast %cst_73 : f32 to vector<2x128xf32>
    %294 = arith.addf %293, %292 : vector<2x128xf32>
    %295 = arith.divf %293, %294 : vector<2x128xf32>
    %296 = math.tanh %290 : vector<2x128xf32>
    %297 = vector.extract_strided_slice %295 {offsets = [0, 0], sizes = [2, 32], strides = [1, 1]} : vector<2x128xf32> to vector<2x32xf32>
    %298 = vector.extract_strided_slice %295 {offsets = [0, 32], sizes = [2, 32], strides = [1, 1]} : vector<2x128xf32> to vector<2x32xf32>
    %299 = vector.extract_strided_slice %296 {offsets = [0, 64], sizes = [2, 32], strides = [1, 1]} : vector<2x128xf32> to vector<2x32xf32>
    %300 = vector.extract_strided_slice %295 {offsets = [0, 96], sizes = [2, 32], strides = [1, 1]} : vector<2x128xf32> to vector<2x32xf32>
    %301 = arith.mulf %298, %269 : vector<2x32xf32>
    %302 = arith.mulf %297, %299 : vector<2x32xf32>
    %303 = arith.addf %301, %302 : vector<2x32xf32>
    %304 = math.tanh %303 : vector<2x32xf32>
    %305 = arith.mulf %300, %304 : vector<2x32xf32>
    %cst_74 = arith.constant dense<0.000000e+00> : vector<2x128xf32>
    %306 = tpu.matmul %288, %117, %cst_74 {dimension_numbers = #tpu.dot_dimension_numbers<[1], [0], [0], [1], [0, 0, 1, 1], [], []>} : vector<2x32xf32>, vector<32x128xf32>, vector<2x128xf32> -> vector<2x128xf32>
    %307 = arith.addf %81, %306 : vector<2x128xf32>
    %308 = arith.negf %307 : vector<2x128xf32>
    %309 = math.exp %308 : vector<2x128xf32>
    %cst_75 = arith.constant 1.000000e+00 : f32
    %310 = vector.broadcast %cst_75 : f32 to vector<2x128xf32>
    %311 = arith.addf %310, %309 : vector<2x128xf32>
    %312 = arith.divf %310, %311 : vector<2x128xf32>
    %313 = math.tanh %307 : vector<2x128xf32>
    %314 = vector.extract_strided_slice %312 {offsets = [0, 0], sizes = [2, 32], strides = [1, 1]} : vector<2x128xf32> to vector<2x32xf32>
    %315 = vector.extract_strided_slice %312 {offsets = [0, 32], sizes = [2, 32], strides = [1, 1]} : vector<2x128xf32> to vector<2x32xf32>
    %316 = vector.extract_strided_slice %313 {offsets = [0, 64], sizes = [2, 32], strides = [1, 1]} : vector<2x128xf32> to vector<2x32xf32>
    %317 = vector.extract_strided_slice %312 {offsets = [0, 96], sizes = [2, 32], strides = [1, 1]} : vector<2x128xf32> to vector<2x32xf32>
    %318 = arith.mulf %315, %286 : vector<2x32xf32>
    %319 = arith.mulf %314, %316 : vector<2x32xf32>
    %320 = arith.addf %318, %319 : vector<2x32xf32>
    %321 = math.tanh %320 : vector<2x32xf32>
    %322 = arith.mulf %317, %321 : vector<2x32xf32>
    %cst_76 = arith.constant dense<0.000000e+00> : vector<2x128xf32>
    %323 = tpu.matmul %305, %58, %cst_76 {dimension_numbers = #tpu.dot_dimension_numbers<[1], [0], [0], [1], [0, 0, 1, 1], [], []>} : vector<2x32xf32>, vector<32x128xf32>, vector<2x128xf32> -> vector<2x128xf32>
    %324 = arith.addf %50, %323 : vector<2x128xf32>
    %325 = arith.negf %324 : vector<2x128xf32>
    %326 = math.exp %325 : vector<2x128xf32>
    %cst_77 = arith.constant 1.000000e+00 : f32
    %327 = vector.broadcast %cst_77 : f32 to vector<2x128xf32>
    %328 = arith.addf %327, %326 : vector<2x128xf32>
    %329 = arith.divf %327, %328 : vector<2x128xf32>
    %330 = math.tanh %324 : vector<2x128xf32>
    %331 = vector.extract_strided_slice %329 {offsets = [0, 0], sizes = [2, 32], strides = [1, 1]} : vector<2x128xf32> to vector<2x32xf32>
    %332 = vector.extract_strided_slice %329 {offsets = [0, 32], sizes = [2, 32], strides = [1, 1]} : vector<2x128xf32> to vector<2x32xf32>
    %333 = vector.extract_strided_slice %330 {offsets = [0, 64], sizes = [2, 32], strides = [1, 1]} : vector<2x128xf32> to vector<2x32xf32>
    %334 = vector.extract_strided_slice %329 {offsets = [0, 96], sizes = [2, 32], strides = [1, 1]} : vector<2x128xf32> to vector<2x32xf32>
    %335 = arith.mulf %332, %303 : vector<2x32xf32>
    %336 = arith.mulf %331, %333 : vector<2x32xf32>
    %337 = arith.addf %335, %336 : vector<2x32xf32>
    %338 = math.tanh %337 : vector<2x32xf32>
    %339 = arith.mulf %334, %338 : vector<2x32xf32>
    %cst_78 = arith.constant dense<0.000000e+00> : vector<2x128xf32>
    %340 = tpu.matmul %322, %117, %cst_78 {dimension_numbers = #tpu.dot_dimension_numbers<[1], [0], [0], [1], [0, 0, 1, 1], [], []>} : vector<2x32xf32>, vector<32x128xf32>, vector<2x128xf32> -> vector<2x128xf32>
    %341 = arith.addf %74, %340 : vector<2x128xf32>
    %342 = arith.negf %341 : vector<2x128xf32>
    %343 = math.exp %342 : vector<2x128xf32>
    %cst_79 = arith.constant 1.000000e+00 : f32
    %344 = vector.broadcast %cst_79 : f32 to vector<2x128xf32>
    %345 = arith.addf %344, %343 : vector<2x128xf32>
    %346 = arith.divf %344, %345 : vector<2x128xf32>
    %347 = math.tanh %341 : vector<2x128xf32>
    %348 = vector.extract_strided_slice %346 {offsets = [0, 0], sizes = [2, 32], strides = [1, 1]} : vector<2x128xf32> to vector<2x32xf32>
    %349 = vector.extract_strided_slice %346 {offsets = [0, 32], sizes = [2, 32], strides = [1, 1]} : vector<2x128xf32> to vector<2x32xf32>
    %350 = vector.extract_strided_slice %347 {offsets = [0, 64], sizes = [2, 32], strides = [1, 1]} : vector<2x128xf32> to vector<2x32xf32>
    %351 = vector.extract_strided_slice %346 {offsets = [0, 96], sizes = [2, 32], strides = [1, 1]} : vector<2x128xf32> to vector<2x32xf32>
    %352 = arith.mulf %349, %320 : vector<2x32xf32>
    %353 = arith.mulf %348, %350 : vector<2x32xf32>
    %354 = arith.addf %352, %353 : vector<2x32xf32>
    %355 = math.tanh %354 : vector<2x32xf32>
    %356 = arith.mulf %351, %355 : vector<2x32xf32>
    %cst_80 = arith.constant dense<0.000000e+00> : vector<2x128xf32>
    %357 = tpu.matmul %339, %58, %cst_80 {dimension_numbers = #tpu.dot_dimension_numbers<[1], [0], [0], [1], [0, 0, 1, 1], [], []>} : vector<2x32xf32>, vector<32x128xf32>, vector<2x128xf32> -> vector<2x128xf32>
    %358 = arith.addf %57, %357 : vector<2x128xf32>
    %359 = arith.negf %358 : vector<2x128xf32>
    %360 = math.exp %359 : vector<2x128xf32>
    %cst_81 = arith.constant 1.000000e+00 : f32
    %361 = vector.broadcast %cst_81 : f32 to vector<2x128xf32>
    %362 = arith.addf %361, %360 : vector<2x128xf32>
    %363 = arith.divf %361, %362 : vector<2x128xf32>
    %364 = math.tanh %358 : vector<2x128xf32>
    %365 = vector.extract_strided_slice %363 {offsets = [0, 0], sizes = [2, 32], strides = [1, 1]} : vector<2x128xf32> to vector<2x32xf32>
    %366 = vector.extract_strided_slice %363 {offsets = [0, 32], sizes = [2, 32], strides = [1, 1]} : vector<2x128xf32> to vector<2x32xf32>
    %367 = vector.extract_strided_slice %364 {offsets = [0, 64], sizes = [2, 32], strides = [1, 1]} : vector<2x128xf32> to vector<2x32xf32>
    %368 = vector.extract_strided_slice %363 {offsets = [0, 96], sizes = [2, 32], strides = [1, 1]} : vector<2x128xf32> to vector<2x32xf32>
    %369 = arith.mulf %366, %337 : vector<2x32xf32>
    %370 = arith.mulf %365, %367 : vector<2x32xf32>
    %371 = arith.addf %369, %370 : vector<2x32xf32>
    %372 = math.tanh %371 : vector<2x32xf32>
    %373 = arith.mulf %368, %372 : vector<2x32xf32>
    %cst_82 = arith.constant dense<0.000000e+00> : vector<2x128xf32>
    %374 = tpu.matmul %356, %117, %cst_82 {dimension_numbers = #tpu.dot_dimension_numbers<[1], [0], [0], [1], [0, 0, 1, 1], [], []>} : vector<2x32xf32>, vector<32x128xf32>, vector<2x128xf32> -> vector<2x128xf32>
    %375 = arith.addf %67, %374 : vector<2x128xf32>
    %376 = arith.negf %375 : vector<2x128xf32>
    %377 = math.exp %376 : vector<2x128xf32>
    %cst_83 = arith.constant 1.000000e+00 : f32
    %378 = vector.broadcast %cst_83 : f32 to vector<2x128xf32>
    %379 = arith.addf %378, %377 : vector<2x128xf32>
    %380 = arith.divf %378, %379 : vector<2x128xf32>
    %381 = math.tanh %375 : vector<2x128xf32>
    %382 = vector.extract_strided_slice %380 {offsets = [0, 0], sizes = [2, 32], strides = [1, 1]} : vector<2x128xf32> to vector<2x32xf32>
    %383 = vector.extract_strided_slice %380 {offsets = [0, 32], sizes = [2, 32], strides = [1, 1]} : vector<2x128xf32> to vector<2x32xf32>
    %384 = vector.extract_strided_slice %381 {offsets = [0, 64], sizes = [2, 32], strides = [1, 1]} : vector<2x128xf32> to vector<2x32xf32>
    %385 = vector.extract_strided_slice %380 {offsets = [0, 96], sizes = [2, 32], strides = [1, 1]} : vector<2x128xf32> to vector<2x32xf32>
    %386 = arith.mulf %383, %354 : vector<2x32xf32>
    %387 = arith.mulf %382, %384 : vector<2x32xf32>
    %388 = arith.addf %386, %387 : vector<2x32xf32>
    %389 = math.tanh %388 : vector<2x32xf32>
    %390 = arith.mulf %385, %389 : vector<2x32xf32>
    %c0_84 = arith.constant 0 : index
    %c0_85 = arith.constant 0 : index
    %391 = vector.load %arg8[%c0_84, %c0_85] : memref<64x128xf32, #tpu.memory_space<vmem>>, vector<64x128xf32>
    %c0_86 = arith.constant 0 : index
    %c0_87 = arith.constant 0 : index
    %392 = vector.load %arg10[%c0_86, %c0_87] : memref<1x128xf32, #tpu.memory_space<vmem>>, vector<1x128xf32>
    %393 = vector.extract_strided_slice %391 {offsets = [0, 0], sizes = [32, 128], strides = [1, 1]} : vector<64x128xf32> to vector<32x128xf32>
    %cst_88 = arith.constant dense<0.000000e+00> : vector<2x128xf32>
    %394 = tpu.matmul %135, %393, %cst_88 {dimension_numbers = #tpu.dot_dimension_numbers<[1], [0], [0], [1], [0, 0, 1, 1], [], []>} : vector<2x32xf32>, vector<32x128xf32>, vector<2x128xf32> -> vector<2x128xf32>
    %395 = vector.broadcast %392 : vector<1x128xf32> to vector<2x128xf32>
    %396 = arith.addf %395, %394 : vector<2x128xf32>
    %397 = vector.extract_strided_slice %391 {offsets = [32, 0], sizes = [32, 128], strides = [1, 1]} : vector<64x128xf32> to vector<32x128xf32>
    %cst_89 = arith.constant dense<0.000000e+00> : vector<2x128xf32>
    %398 = tpu.matmul %390, %397, %cst_89 {dimension_numbers = #tpu.dot_dimension_numbers<[1], [0], [0], [1], [0, 0, 1, 1], [], []>} : vector<2x32xf32>, vector<32x128xf32>, vector<2x128xf32> -> vector<2x128xf32>
    %399 = arith.addf %396, %398 : vector<2x128xf32>
    %400 = vector.extract_strided_slice %391 {offsets = [0, 0], sizes = [32, 128], strides = [1, 1]} : vector<64x128xf32> to vector<32x128xf32>
    %cst_90 = arith.constant dense<0.000000e+00> : vector<2x128xf32>
    %401 = tpu.matmul %169, %400, %cst_90 {dimension_numbers = #tpu.dot_dimension_numbers<[1], [0], [0], [1], [0, 0, 1, 1], [], []>} : vector<2x32xf32>, vector<32x128xf32>, vector<2x128xf32> -> vector<2x128xf32>
    %402 = vector.broadcast %392 : vector<1x128xf32> to vector<2x128xf32>
    %403 = arith.addf %402, %401 : vector<2x128xf32>
    %404 = vector.extract_strided_slice %391 {offsets = [32, 0], sizes = [32, 128], strides = [1, 1]} : vector<64x128xf32> to vector<32x128xf32>
    %cst_91 = arith.constant dense<0.000000e+00> : vector<2x128xf32>
    %405 = tpu.matmul %356, %404, %cst_91 {dimension_numbers = #tpu.dot_dimension_numbers<[1], [0], [0], [1], [0, 0, 1, 1], [], []>} : vector<2x32xf32>, vector<32x128xf32>, vector<2x128xf32> -> vector<2x128xf32>
    %406 = arith.addf %403, %405 : vector<2x128xf32>
    %407 = vector.extract_strided_slice %391 {offsets = [0, 0], sizes = [32, 128], strides = [1, 1]} : vector<64x128xf32> to vector<32x128xf32>
    %cst_92 = arith.constant dense<0.000000e+00> : vector<2x128xf32>
    %408 = tpu.matmul %203, %407, %cst_92 {dimension_numbers = #tpu.dot_dimension_numbers<[1], [0], [0], [1], [0, 0, 1, 1], [], []>} : vector<2x32xf32>, vector<32x128xf32>, vector<2x128xf32> -> vector<2x128xf32>
    %409 = vector.broadcast %392 : vector<1x128xf32> to vector<2x128xf32>
    %410 = arith.addf %409, %408 : vector<2x128xf32>
    %411 = vector.extract_strided_slice %391 {offsets = [32, 0], sizes = [32, 128], strides = [1, 1]} : vector<64x128xf32> to vector<32x128xf32>
    %cst_93 = arith.constant dense<0.000000e+00> : vector<2x128xf32>
    %412 = tpu.matmul %322, %411, %cst_93 {dimension_numbers = #tpu.dot_dimension_numbers<[1], [0], [0], [1], [0, 0, 1, 1], [], []>} : vector<2x32xf32>, vector<32x128xf32>, vector<2x128xf32> -> vector<2x128xf32>
    %413 = arith.addf %410, %412 : vector<2x128xf32>
    %414 = vector.extract_strided_slice %391 {offsets = [0, 0], sizes = [32, 128], strides = [1, 1]} : vector<64x128xf32> to vector<32x128xf32>
    %cst_94 = arith.constant dense<0.000000e+00> : vector<2x128xf32>
    %415 = tpu.matmul %237, %414, %cst_94 {dimension_numbers = #tpu.dot_dimension_numbers<[1], [0], [0], [1], [0, 0, 1, 1], [], []>} : vector<2x32xf32>, vector<32x128xf32>, vector<2x128xf32> -> vector<2x128xf32>
    %416 = vector.broadcast %392 : vector<1x128xf32> to vector<2x128xf32>
    %417 = arith.addf %416, %415 : vector<2x128xf32>
    %418 = vector.extract_strided_slice %391 {offsets = [32, 0], sizes = [32, 128], strides = [1, 1]} : vector<64x128xf32> to vector<32x128xf32>
    %cst_95 = arith.constant dense<0.000000e+00> : vector<2x128xf32>
    %419 = tpu.matmul %288, %418, %cst_95 {dimension_numbers = #tpu.dot_dimension_numbers<[1], [0], [0], [1], [0, 0, 1, 1], [], []>} : vector<2x32xf32>, vector<32x128xf32>, vector<2x128xf32> -> vector<2x128xf32>
    %420 = arith.addf %417, %419 : vector<2x128xf32>
    %421 = vector.extract_strided_slice %391 {offsets = [0, 0], sizes = [32, 128], strides = [1, 1]} : vector<64x128xf32> to vector<32x128xf32>
    %cst_96 = arith.constant dense<0.000000e+00> : vector<2x128xf32>
    %422 = tpu.matmul %271, %421, %cst_96 {dimension_numbers = #tpu.dot_dimension_numbers<[1], [0], [0], [1], [0, 0, 1, 1], [], []>} : vector<2x32xf32>, vector<32x128xf32>, vector<2x128xf32> -> vector<2x128xf32>
    %423 = vector.broadcast %392 : vector<1x128xf32> to vector<2x128xf32>
    %424 = arith.addf %423, %422 : vector<2x128xf32>
    %425 = vector.extract_strided_slice %391 {offsets = [32, 0], sizes = [32, 128], strides = [1, 1]} : vector<64x128xf32> to vector<32x128xf32>
    %cst_97 = arith.constant dense<0.000000e+00> : vector<2x128xf32>
    %426 = tpu.matmul %254, %425, %cst_97 {dimension_numbers = #tpu.dot_dimension_numbers<[1], [0], [0], [1], [0, 0, 1, 1], [], []>} : vector<2x32xf32>, vector<32x128xf32>, vector<2x128xf32> -> vector<2x128xf32>
    %427 = arith.addf %424, %426 : vector<2x128xf32>
    %428 = vector.extract_strided_slice %391 {offsets = [0, 0], sizes = [32, 128], strides = [1, 1]} : vector<64x128xf32> to vector<32x128xf32>
    %cst_98 = arith.constant dense<0.000000e+00> : vector<2x128xf32>
    %429 = tpu.matmul %305, %428, %cst_98 {dimension_numbers = #tpu.dot_dimension_numbers<[1], [0], [0], [1], [0, 0, 1, 1], [], []>} : vector<2x32xf32>, vector<32x128xf32>, vector<2x128xf32> -> vector<2x128xf32>
    %430 = vector.broadcast %392 : vector<1x128xf32> to vector<2x128xf32>
    %431 = arith.addf %430, %429 : vector<2x128xf32>
    %432 = vector.extract_strided_slice %391 {offsets = [32, 0], sizes = [32, 128], strides = [1, 1]} : vector<64x128xf32> to vector<32x128xf32>
    %cst_99 = arith.constant dense<0.000000e+00> : vector<2x128xf32>
    %433 = tpu.matmul %220, %432, %cst_99 {dimension_numbers = #tpu.dot_dimension_numbers<[1], [0], [0], [1], [0, 0, 1, 1], [], []>} : vector<2x32xf32>, vector<32x128xf32>, vector<2x128xf32> -> vector<2x128xf32>
    %434 = arith.addf %431, %433 : vector<2x128xf32>
    %435 = vector.extract_strided_slice %391 {offsets = [0, 0], sizes = [32, 128], strides = [1, 1]} : vector<64x128xf32> to vector<32x128xf32>
    %cst_100 = arith.constant dense<0.000000e+00> : vector<2x128xf32>
    %436 = tpu.matmul %339, %435, %cst_100 {dimension_numbers = #tpu.dot_dimension_numbers<[1], [0], [0], [1], [0, 0, 1, 1], [], []>} : vector<2x32xf32>, vector<32x128xf32>, vector<2x128xf32> -> vector<2x128xf32>
    %437 = vector.broadcast %392 : vector<1x128xf32> to vector<2x128xf32>
    %438 = arith.addf %437, %436 : vector<2x128xf32>
    %439 = vector.extract_strided_slice %391 {offsets = [32, 0], sizes = [32, 128], strides = [1, 1]} : vector<64x128xf32> to vector<32x128xf32>
    %cst_101 = arith.constant dense<0.000000e+00> : vector<2x128xf32>
    %440 = tpu.matmul %186, %439, %cst_101 {dimension_numbers = #tpu.dot_dimension_numbers<[1], [0], [0], [1], [0, 0, 1, 1], [], []>} : vector<2x32xf32>, vector<32x128xf32>, vector<2x128xf32> -> vector<2x128xf32>
    %441 = arith.addf %438, %440 : vector<2x128xf32>
    %442 = vector.extract_strided_slice %391 {offsets = [0, 0], sizes = [32, 128], strides = [1, 1]} : vector<64x128xf32> to vector<32x128xf32>
    %cst_102 = arith.constant dense<0.000000e+00> : vector<2x128xf32>
    %443 = tpu.matmul %373, %442, %cst_102 {dimension_numbers = #tpu.dot_dimension_numbers<[1], [0], [0], [1], [0, 0, 1, 1], [], []>} : vector<2x32xf32>, vector<32x128xf32>, vector<2x128xf32> -> vector<2x128xf32>
    %444 = vector.broadcast %392 : vector<1x128xf32> to vector<2x128xf32>
    %445 = arith.addf %444, %443 : vector<2x128xf32>
    %446 = vector.extract_strided_slice %391 {offsets = [32, 0], sizes = [32, 128], strides = [1, 1]} : vector<64x128xf32> to vector<32x128xf32>
    %cst_103 = arith.constant dense<0.000000e+00> : vector<2x128xf32>
    %447 = tpu.matmul %152, %446, %cst_103 {dimension_numbers = #tpu.dot_dimension_numbers<[1], [0], [0], [1], [0, 0, 1, 1], [], []>} : vector<2x32xf32>, vector<32x128xf32>, vector<2x128xf32> -> vector<2x128xf32>
    %448 = arith.addf %445, %447 : vector<2x128xf32>
    %c0_104 = arith.constant 0 : index
    %c0_105 = arith.constant 0 : index
    %449 = vector.load %arg9[%c0_104, %c0_105] : memref<32x128xf32, #tpu.memory_space<vmem>>, vector<32x128xf32>
    %c0_106 = arith.constant 0 : index
    %c0_107 = arith.constant 0 : index
    %450 = vector.load %arg11[%c0_106, %c0_107] : memref<64x128xf32, #tpu.memory_space<vmem>>, vector<64x128xf32>
    %c0_108 = arith.constant 0 : index
    %c0_109 = arith.constant 0 : index
    %451 = vector.load %arg13[%c0_108, %c0_109] : memref<1x128xf32, #tpu.memory_space<vmem>>, vector<1x128xf32>
    %452 = vector.extract_strided_slice %450 {offsets = [0, 0], sizes = [32, 128], strides = [1, 1]} : vector<64x128xf32> to vector<32x128xf32>
    %cst_110 = arith.constant dense<0.000000e+00> : vector<2x128xf32>
    %453 = tpu.matmul %135, %452, %cst_110 {dimension_numbers = #tpu.dot_dimension_numbers<[1], [0], [0], [1], [0, 0, 1, 1], [], []>} : vector<2x32xf32>, vector<32x128xf32>, vector<2x128xf32> -> vector<2x128xf32>
    %454 = vector.broadcast %451 : vector<1x128xf32> to vector<2x128xf32>
    %455 = arith.addf %454, %453 : vector<2x128xf32>
    %456 = vector.extract_strided_slice %450 {offsets = [32, 0], sizes = [32, 128], strides = [1, 1]} : vector<64x128xf32> to vector<32x128xf32>
    %cst_111 = arith.constant dense<0.000000e+00> : vector<2x128xf32>
    %457 = tpu.matmul %390, %456, %cst_111 {dimension_numbers = #tpu.dot_dimension_numbers<[1], [0], [0], [1], [0, 0, 1, 1], [], []>} : vector<2x32xf32>, vector<32x128xf32>, vector<2x128xf32> -> vector<2x128xf32>
    %458 = arith.addf %455, %457 : vector<2x128xf32>
    %459 = vector.extract_strided_slice %450 {offsets = [0, 0], sizes = [32, 128], strides = [1, 1]} : vector<64x128xf32> to vector<32x128xf32>
    %cst_112 = arith.constant dense<0.000000e+00> : vector<2x128xf32>
    %460 = tpu.matmul %169, %459, %cst_112 {dimension_numbers = #tpu.dot_dimension_numbers<[1], [0], [0], [1], [0, 0, 1, 1], [], []>} : vector<2x32xf32>, vector<32x128xf32>, vector<2x128xf32> -> vector<2x128xf32>
    %461 = vector.broadcast %451 : vector<1x128xf32> to vector<2x128xf32>
    %462 = arith.addf %461, %460 : vector<2x128xf32>
    %463 = vector.extract_strided_slice %450 {offsets = [32, 0], sizes = [32, 128], strides = [1, 1]} : vector<64x128xf32> to vector<32x128xf32>
    %cst_113 = arith.constant dense<0.000000e+00> : vector<2x128xf32>
    %464 = tpu.matmul %356, %463, %cst_113 {dimension_numbers = #tpu.dot_dimension_numbers<[1], [0], [0], [1], [0, 0, 1, 1], [], []>} : vector<2x32xf32>, vector<32x128xf32>, vector<2x128xf32> -> vector<2x128xf32>
    %465 = arith.addf %462, %464 : vector<2x128xf32>
    %466 = vector.extract_strided_slice %450 {offsets = [0, 0], sizes = [32, 128], strides = [1, 1]} : vector<64x128xf32> to vector<32x128xf32>
    %cst_114 = arith.constant dense<0.000000e+00> : vector<2x128xf32>
    %467 = tpu.matmul %203, %466, %cst_114 {dimension_numbers = #tpu.dot_dimension_numbers<[1], [0], [0], [1], [0, 0, 1, 1], [], []>} : vector<2x32xf32>, vector<32x128xf32>, vector<2x128xf32> -> vector<2x128xf32>
    %468 = vector.broadcast %451 : vector<1x128xf32> to vector<2x128xf32>
    %469 = arith.addf %468, %467 : vector<2x128xf32>
    %470 = vector.extract_strided_slice %450 {offsets = [32, 0], sizes = [32, 128], strides = [1, 1]} : vector<64x128xf32> to vector<32x128xf32>
    %cst_115 = arith.constant dense<0.000000e+00> : vector<2x128xf32>
    %471 = tpu.matmul %322, %470, %cst_115 {dimension_numbers = #tpu.dot_dimension_numbers<[1], [0], [0], [1], [0, 0, 1, 1], [], []>} : vector<2x32xf32>, vector<32x128xf32>, vector<2x128xf32> -> vector<2x128xf32>
    %472 = arith.addf %469, %471 : vector<2x128xf32>
    %473 = vector.extract_strided_slice %450 {offsets = [0, 0], sizes = [32, 128], strides = [1, 1]} : vector<64x128xf32> to vector<32x128xf32>
    %cst_116 = arith.constant dense<0.000000e+00> : vector<2x128xf32>
    %474 = tpu.matmul %237, %473, %cst_116 {dimension_numbers = #tpu.dot_dimension_numbers<[1], [0], [0], [1], [0, 0, 1, 1], [], []>} : vector<2x32xf32>, vector<32x128xf32>, vector<2x128xf32> -> vector<2x128xf32>
    %475 = vector.broadcast %451 : vector<1x128xf32> to vector<2x128xf32>
    %476 = arith.addf %475, %474 : vector<2x128xf32>
    %477 = vector.extract_strided_slice %450 {offsets = [32, 0], sizes = [32, 128], strides = [1, 1]} : vector<64x128xf32> to vector<32x128xf32>
    %cst_117 = arith.constant dense<0.000000e+00> : vector<2x128xf32>
    %478 = tpu.matmul %288, %477, %cst_117 {dimension_numbers = #tpu.dot_dimension_numbers<[1], [0], [0], [1], [0, 0, 1, 1], [], []>} : vector<2x32xf32>, vector<32x128xf32>, vector<2x128xf32> -> vector<2x128xf32>
    %479 = arith.addf %476, %478 : vector<2x128xf32>
    %480 = vector.extract_strided_slice %450 {offsets = [0, 0], sizes = [32, 128], strides = [1, 1]} : vector<64x128xf32> to vector<32x128xf32>
    %cst_118 = arith.constant dense<0.000000e+00> : vector<2x128xf32>
    %481 = tpu.matmul %271, %480, %cst_118 {dimension_numbers = #tpu.dot_dimension_numbers<[1], [0], [0], [1], [0, 0, 1, 1], [], []>} : vector<2x32xf32>, vector<32x128xf32>, vector<2x128xf32> -> vector<2x128xf32>
    %482 = vector.broadcast %451 : vector<1x128xf32> to vector<2x128xf32>
    %483 = arith.addf %482, %481 : vector<2x128xf32>
    %484 = vector.extract_strided_slice %450 {offsets = [32, 0], sizes = [32, 128], strides = [1, 1]} : vector<64x128xf32> to vector<32x128xf32>
    %cst_119 = arith.constant dense<0.000000e+00> : vector<2x128xf32>
    %485 = tpu.matmul %254, %484, %cst_119 {dimension_numbers = #tpu.dot_dimension_numbers<[1], [0], [0], [1], [0, 0, 1, 1], [], []>} : vector<2x32xf32>, vector<32x128xf32>, vector<2x128xf32> -> vector<2x128xf32>
    %486 = arith.addf %483, %485 : vector<2x128xf32>
    %487 = vector.extract_strided_slice %450 {offsets = [0, 0], sizes = [32, 128], strides = [1, 1]} : vector<64x128xf32> to vector<32x128xf32>
    %cst_120 = arith.constant dense<0.000000e+00> : vector<2x128xf32>
    %488 = tpu.matmul %305, %487, %cst_120 {dimension_numbers = #tpu.dot_dimension_numbers<[1], [0], [0], [1], [0, 0, 1, 1], [], []>} : vector<2x32xf32>, vector<32x128xf32>, vector<2x128xf32> -> vector<2x128xf32>
    %489 = vector.broadcast %451 : vector<1x128xf32> to vector<2x128xf32>
    %490 = arith.addf %489, %488 : vector<2x128xf32>
    %491 = vector.extract_strided_slice %450 {offsets = [32, 0], sizes = [32, 128], strides = [1, 1]} : vector<64x128xf32> to vector<32x128xf32>
    %cst_121 = arith.constant dense<0.000000e+00> : vector<2x128xf32>
    %492 = tpu.matmul %220, %491, %cst_121 {dimension_numbers = #tpu.dot_dimension_numbers<[1], [0], [0], [1], [0, 0, 1, 1], [], []>} : vector<2x32xf32>, vector<32x128xf32>, vector<2x128xf32> -> vector<2x128xf32>
    %493 = arith.addf %490, %492 : vector<2x128xf32>
    %494 = vector.extract_strided_slice %450 {offsets = [0, 0], sizes = [32, 128], strides = [1, 1]} : vector<64x128xf32> to vector<32x128xf32>
    %cst_122 = arith.constant dense<0.000000e+00> : vector<2x128xf32>
    %495 = tpu.matmul %339, %494, %cst_122 {dimension_numbers = #tpu.dot_dimension_numbers<[1], [0], [0], [1], [0, 0, 1, 1], [], []>} : vector<2x32xf32>, vector<32x128xf32>, vector<2x128xf32> -> vector<2x128xf32>
    %496 = vector.broadcast %451 : vector<1x128xf32> to vector<2x128xf32>
    %497 = arith.addf %496, %495 : vector<2x128xf32>
    %498 = vector.extract_strided_slice %450 {offsets = [32, 0], sizes = [32, 128], strides = [1, 1]} : vector<64x128xf32> to vector<32x128xf32>
    %cst_123 = arith.constant dense<0.000000e+00> : vector<2x128xf32>
    %499 = tpu.matmul %186, %498, %cst_123 {dimension_numbers = #tpu.dot_dimension_numbers<[1], [0], [0], [1], [0, 0, 1, 1], [], []>} : vector<2x32xf32>, vector<32x128xf32>, vector<2x128xf32> -> vector<2x128xf32>
    %500 = arith.addf %497, %499 : vector<2x128xf32>
    %501 = vector.extract_strided_slice %450 {offsets = [0, 0], sizes = [32, 128], strides = [1, 1]} : vector<64x128xf32> to vector<32x128xf32>
    %cst_124 = arith.constant dense<0.000000e+00> : vector<2x128xf32>
    %502 = tpu.matmul %373, %501, %cst_124 {dimension_numbers = #tpu.dot_dimension_numbers<[1], [0], [0], [1], [0, 0, 1, 1], [], []>} : vector<2x32xf32>, vector<32x128xf32>, vector<2x128xf32> -> vector<2x128xf32>
    %503 = vector.broadcast %451 : vector<1x128xf32> to vector<2x128xf32>
    %504 = arith.addf %503, %502 : vector<2x128xf32>
    %505 = vector.extract_strided_slice %450 {offsets = [32, 0], sizes = [32, 128], strides = [1, 1]} : vector<64x128xf32> to vector<32x128xf32>
    %cst_125 = arith.constant dense<0.000000e+00> : vector<2x128xf32>
    %506 = tpu.matmul %152, %505, %cst_125 {dimension_numbers = #tpu.dot_dimension_numbers<[1], [0], [0], [1], [0, 0, 1, 1], [], []>} : vector<2x32xf32>, vector<32x128xf32>, vector<2x128xf32> -> vector<2x128xf32>
    %507 = arith.addf %504, %506 : vector<2x128xf32>
    %c0_126 = arith.constant 0 : index
    %c0_127 = arith.constant 0 : index
    %508 = vector.load %arg12[%c0_126, %c0_127] : memref<32x128xf32, #tpu.memory_space<vmem>>, vector<32x128xf32>
    %cst_128 = arith.constant 0.000000e+00 : f32
    %509 = vector.broadcast %cst_128 : f32 to vector<2x32xf32>
    %cst_129 = arith.constant dense<0.000000e+00> : vector<2x128xf32>
    %510 = tpu.matmul %509, %449, %cst_129 {dimension_numbers = #tpu.dot_dimension_numbers<[1], [0], [0], [1], [0, 0, 1, 1], [], []>} : vector<2x32xf32>, vector<32x128xf32>, vector<2x128xf32> -> vector<2x128xf32>
    %511 = arith.addf %399, %510 : vector<2x128xf32>
    %512 = arith.negf %511 : vector<2x128xf32>
    %513 = math.exp %512 : vector<2x128xf32>
    %cst_130 = arith.constant 1.000000e+00 : f32
    %514 = vector.broadcast %cst_130 : f32 to vector<2x128xf32>
    %515 = arith.addf %514, %513 : vector<2x128xf32>
    %516 = arith.divf %514, %515 : vector<2x128xf32>
    %517 = math.tanh %511 : vector<2x128xf32>
    %518 = vector.extract_strided_slice %516 {offsets = [0, 0], sizes = [2, 32], strides = [1, 1]} : vector<2x128xf32> to vector<2x32xf32>
    %519 = vector.extract_strided_slice %516 {offsets = [0, 32], sizes = [2, 32], strides = [1, 1]} : vector<2x128xf32> to vector<2x32xf32>
    %520 = vector.extract_strided_slice %517 {offsets = [0, 64], sizes = [2, 32], strides = [1, 1]} : vector<2x128xf32> to vector<2x32xf32>
    %521 = vector.extract_strided_slice %516 {offsets = [0, 96], sizes = [2, 32], strides = [1, 1]} : vector<2x128xf32> to vector<2x32xf32>
    %522 = arith.mulf %519, %509 : vector<2x32xf32>
    %523 = arith.mulf %518, %520 : vector<2x32xf32>
    %524 = arith.addf %522, %523 : vector<2x32xf32>
    %525 = math.tanh %524 : vector<2x32xf32>
    %526 = arith.mulf %521, %525 : vector<2x32xf32>
    %cst_131 = arith.constant dense<0.000000e+00> : vector<2x128xf32>
    %527 = tpu.matmul %509, %508, %cst_131 {dimension_numbers = #tpu.dot_dimension_numbers<[1], [0], [0], [1], [0, 0, 1, 1], [], []>} : vector<2x32xf32>, vector<32x128xf32>, vector<2x128xf32> -> vector<2x128xf32>
    %528 = arith.addf %507, %527 : vector<2x128xf32>
    %529 = arith.negf %528 : vector<2x128xf32>
    %530 = math.exp %529 : vector<2x128xf32>
    %cst_132 = arith.constant 1.000000e+00 : f32
    %531 = vector.broadcast %cst_132 : f32 to vector<2x128xf32>
    %532 = arith.addf %531, %530 : vector<2x128xf32>
    %533 = arith.divf %531, %532 : vector<2x128xf32>
    %534 = math.tanh %528 : vector<2x128xf32>
    %535 = vector.extract_strided_slice %533 {offsets = [0, 0], sizes = [2, 32], strides = [1, 1]} : vector<2x128xf32> to vector<2x32xf32>
    %536 = vector.extract_strided_slice %533 {offsets = [0, 32], sizes = [2, 32], strides = [1, 1]} : vector<2x128xf32> to vector<2x32xf32>
    %537 = vector.extract_strided_slice %534 {offsets = [0, 64], sizes = [2, 32], strides = [1, 1]} : vector<2x128xf32> to vector<2x32xf32>
    %538 = vector.extract_strided_slice %533 {offsets = [0, 96], sizes = [2, 32], strides = [1, 1]} : vector<2x128xf32> to vector<2x32xf32>
    %539 = arith.mulf %536, %509 : vector<2x32xf32>
    %540 = arith.mulf %535, %537 : vector<2x32xf32>
    %541 = arith.addf %539, %540 : vector<2x32xf32>
    %542 = math.tanh %541 : vector<2x32xf32>
    %543 = arith.mulf %538, %542 : vector<2x32xf32>
    %cst_133 = arith.constant dense<0.000000e+00> : vector<2x128xf32>
    %544 = tpu.matmul %526, %449, %cst_133 {dimension_numbers = #tpu.dot_dimension_numbers<[1], [0], [0], [1], [0, 0, 1, 1], [], []>} : vector<2x32xf32>, vector<32x128xf32>, vector<2x128xf32> -> vector<2x128xf32>
    %545 = arith.addf %406, %544 : vector<2x128xf32>
    %546 = arith.negf %545 : vector<2x128xf32>
    %547 = math.exp %546 : vector<2x128xf32>
    %cst_134 = arith.constant 1.000000e+00 : f32
    %548 = vector.broadcast %cst_134 : f32 to vector<2x128xf32>
    %549 = arith.addf %548, %547 : vector<2x128xf32>
    %550 = arith.divf %548, %549 : vector<2x128xf32>
    %551 = math.tanh %545 : vector<2x128xf32>
    %552 = vector.extract_strided_slice %550 {offsets = [0, 0], sizes = [2, 32], strides = [1, 1]} : vector<2x128xf32> to vector<2x32xf32>
    %553 = vector.extract_strided_slice %550 {offsets = [0, 32], sizes = [2, 32], strides = [1, 1]} : vector<2x128xf32> to vector<2x32xf32>
    %554 = vector.extract_strided_slice %551 {offsets = [0, 64], sizes = [2, 32], strides = [1, 1]} : vector<2x128xf32> to vector<2x32xf32>
    %555 = vector.extract_strided_slice %550 {offsets = [0, 96], sizes = [2, 32], strides = [1, 1]} : vector<2x128xf32> to vector<2x32xf32>
    %556 = arith.mulf %553, %524 : vector<2x32xf32>
    %557 = arith.mulf %552, %554 : vector<2x32xf32>
    %558 = arith.addf %556, %557 : vector<2x32xf32>
    %559 = math.tanh %558 : vector<2x32xf32>
    %560 = arith.mulf %555, %559 : vector<2x32xf32>
    %cst_135 = arith.constant dense<0.000000e+00> : vector<2x128xf32>
    %561 = tpu.matmul %543, %508, %cst_135 {dimension_numbers = #tpu.dot_dimension_numbers<[1], [0], [0], [1], [0, 0, 1, 1], [], []>} : vector<2x32xf32>, vector<32x128xf32>, vector<2x128xf32> -> vector<2x128xf32>
    %562 = arith.addf %500, %561 : vector<2x128xf32>
    %563 = arith.negf %562 : vector<2x128xf32>
    %564 = math.exp %563 : vector<2x128xf32>
    %cst_136 = arith.constant 1.000000e+00 : f32
    %565 = vector.broadcast %cst_136 : f32 to vector<2x128xf32>
    %566 = arith.addf %565, %564 : vector<2x128xf32>
    %567 = arith.divf %565, %566 : vector<2x128xf32>
    %568 = math.tanh %562 : vector<2x128xf32>
    %569 = vector.extract_strided_slice %567 {offsets = [0, 0], sizes = [2, 32], strides = [1, 1]} : vector<2x128xf32> to vector<2x32xf32>
    %570 = vector.extract_strided_slice %567 {offsets = [0, 32], sizes = [2, 32], strides = [1, 1]} : vector<2x128xf32> to vector<2x32xf32>
    %571 = vector.extract_strided_slice %568 {offsets = [0, 64], sizes = [2, 32], strides = [1, 1]} : vector<2x128xf32> to vector<2x32xf32>
    %572 = vector.extract_strided_slice %567 {offsets = [0, 96], sizes = [2, 32], strides = [1, 1]} : vector<2x128xf32> to vector<2x32xf32>
    %573 = arith.mulf %570, %541 : vector<2x32xf32>
    %574 = arith.mulf %569, %571 : vector<2x32xf32>
    %575 = arith.addf %573, %574 : vector<2x32xf32>
    %576 = math.tanh %575 : vector<2x32xf32>
    %577 = arith.mulf %572, %576 : vector<2x32xf32>
    %cst_137 = arith.constant dense<0.000000e+00> : vector<2x128xf32>
    %578 = tpu.matmul %560, %449, %cst_137 {dimension_numbers = #tpu.dot_dimension_numbers<[1], [0], [0], [1], [0, 0, 1, 1], [], []>} : vector<2x32xf32>, vector<32x128xf32>, vector<2x128xf32> -> vector<2x128xf32>
    %579 = arith.addf %413, %578 : vector<2x128xf32>
    %580 = arith.negf %579 : vector<2x128xf32>
    %581 = math.exp %580 : vector<2x128xf32>
    %cst_138 = arith.constant 1.000000e+00 : f32
    %582 = vector.broadcast %cst_138 : f32 to vector<2x128xf32>
    %583 = arith.addf %582, %581 : vector<2x128xf32>
    %584 = arith.divf %582, %583 : vector<2x128xf32>
    %585 = math.tanh %579 : vector<2x128xf32>
    %586 = vector.extract_strided_slice %584 {offsets = [0, 0], sizes = [2, 32], strides = [1, 1]} : vector<2x128xf32> to vector<2x32xf32>
    %587 = vector.extract_strided_slice %584 {offsets = [0, 32], sizes = [2, 32], strides = [1, 1]} : vector<2x128xf32> to vector<2x32xf32>
    %588 = vector.extract_strided_slice %585 {offsets = [0, 64], sizes = [2, 32], strides = [1, 1]} : vector<2x128xf32> to vector<2x32xf32>
    %589 = vector.extract_strided_slice %584 {offsets = [0, 96], sizes = [2, 32], strides = [1, 1]} : vector<2x128xf32> to vector<2x32xf32>
    %590 = arith.mulf %587, %558 : vector<2x32xf32>
    %591 = arith.mulf %586, %588 : vector<2x32xf32>
    %592 = arith.addf %590, %591 : vector<2x32xf32>
    %593 = math.tanh %592 : vector<2x32xf32>
    %594 = arith.mulf %589, %593 : vector<2x32xf32>
    %cst_139 = arith.constant dense<0.000000e+00> : vector<2x128xf32>
    %595 = tpu.matmul %577, %508, %cst_139 {dimension_numbers = #tpu.dot_dimension_numbers<[1], [0], [0], [1], [0, 0, 1, 1], [], []>} : vector<2x32xf32>, vector<32x128xf32>, vector<2x128xf32> -> vector<2x128xf32>
    %596 = arith.addf %493, %595 : vector<2x128xf32>
    %597 = arith.negf %596 : vector<2x128xf32>
    %598 = math.exp %597 : vector<2x128xf32>
    %cst_140 = arith.constant 1.000000e+00 : f32
    %599 = vector.broadcast %cst_140 : f32 to vector<2x128xf32>
    %600 = arith.addf %599, %598 : vector<2x128xf32>
    %601 = arith.divf %599, %600 : vector<2x128xf32>
    %602 = math.tanh %596 : vector<2x128xf32>
    %603 = vector.extract_strided_slice %601 {offsets = [0, 0], sizes = [2, 32], strides = [1, 1]} : vector<2x128xf32> to vector<2x32xf32>
    %604 = vector.extract_strided_slice %601 {offsets = [0, 32], sizes = [2, 32], strides = [1, 1]} : vector<2x128xf32> to vector<2x32xf32>
    %605 = vector.extract_strided_slice %602 {offsets = [0, 64], sizes = [2, 32], strides = [1, 1]} : vector<2x128xf32> to vector<2x32xf32>
    %606 = vector.extract_strided_slice %601 {offsets = [0, 96], sizes = [2, 32], strides = [1, 1]} : vector<2x128xf32> to vector<2x32xf32>
    %607 = arith.mulf %604, %575 : vector<2x32xf32>
    %608 = arith.mulf %603, %605 : vector<2x32xf32>
    %609 = arith.addf %607, %608 : vector<2x32xf32>
    %610 = math.tanh %609 : vector<2x32xf32>
    %611 = arith.mulf %606, %610 : vector<2x32xf32>
    %cst_141 = arith.constant dense<0.000000e+00> : vector<2x128xf32>
    %612 = tpu.matmul %594, %449, %cst_141 {dimension_numbers = #tpu.dot_dimension_numbers<[1], [0], [0], [1], [0, 0, 1, 1], [], []>} : vector<2x32xf32>, vector<32x128xf32>, vector<2x128xf32> -> vector<2x128xf32>
    %613 = arith.addf %420, %612 : vector<2x128xf32>
    %614 = arith.negf %613 : vector<2x128xf32>
    %615 = math.exp %614 : vector<2x128xf32>
    %cst_142 = arith.constant 1.000000e+00 : f32
    %616 = vector.broadcast %cst_142 : f32 to vector<2x128xf32>
    %617 = arith.addf %616, %615 : vector<2x128xf32>
    %618 = arith.divf %616, %617 : vector<2x128xf32>
    %619 = math.tanh %613 : vector<2x128xf32>
    %620 = vector.extract_strided_slice %618 {offsets = [0, 0], sizes = [2, 32], strides = [1, 1]} : vector<2x128xf32> to vector<2x32xf32>
    %621 = vector.extract_strided_slice %618 {offsets = [0, 32], sizes = [2, 32], strides = [1, 1]} : vector<2x128xf32> to vector<2x32xf32>
    %622 = vector.extract_strided_slice %619 {offsets = [0, 64], sizes = [2, 32], strides = [1, 1]} : vector<2x128xf32> to vector<2x32xf32>
    %623 = vector.extract_strided_slice %618 {offsets = [0, 96], sizes = [2, 32], strides = [1, 1]} : vector<2x128xf32> to vector<2x32xf32>
    %624 = arith.mulf %621, %592 : vector<2x32xf32>
    %625 = arith.mulf %620, %622 : vector<2x32xf32>
    %626 = arith.addf %624, %625 : vector<2x32xf32>
    %627 = math.tanh %626 : vector<2x32xf32>
    %628 = arith.mulf %623, %627 : vector<2x32xf32>
    %cst_143 = arith.constant dense<0.000000e+00> : vector<2x128xf32>
    %629 = tpu.matmul %611, %508, %cst_143 {dimension_numbers = #tpu.dot_dimension_numbers<[1], [0], [0], [1], [0, 0, 1, 1], [], []>} : vector<2x32xf32>, vector<32x128xf32>, vector<2x128xf32> -> vector<2x128xf32>
    %630 = arith.addf %486, %629 : vector<2x128xf32>
    %631 = arith.negf %630 : vector<2x128xf32>
    %632 = math.exp %631 : vector<2x128xf32>
    %cst_144 = arith.constant 1.000000e+00 : f32
    %633 = vector.broadcast %cst_144 : f32 to vector<2x128xf32>
    %634 = arith.addf %633, %632 : vector<2x128xf32>
    %635 = arith.divf %633, %634 : vector<2x128xf32>
    %636 = math.tanh %630 : vector<2x128xf32>
    %637 = vector.extract_strided_slice %635 {offsets = [0, 0], sizes = [2, 32], strides = [1, 1]} : vector<2x128xf32> to vector<2x32xf32>
    %638 = vector.extract_strided_slice %635 {offsets = [0, 32], sizes = [2, 32], strides = [1, 1]} : vector<2x128xf32> to vector<2x32xf32>
    %639 = vector.extract_strided_slice %636 {offsets = [0, 64], sizes = [2, 32], strides = [1, 1]} : vector<2x128xf32> to vector<2x32xf32>
    %640 = vector.extract_strided_slice %635 {offsets = [0, 96], sizes = [2, 32], strides = [1, 1]} : vector<2x128xf32> to vector<2x32xf32>
    %641 = arith.mulf %638, %609 : vector<2x32xf32>
    %642 = arith.mulf %637, %639 : vector<2x32xf32>
    %643 = arith.addf %641, %642 : vector<2x32xf32>
    %644 = math.tanh %643 : vector<2x32xf32>
    %645 = arith.mulf %640, %644 : vector<2x32xf32>
    %cst_145 = arith.constant dense<0.000000e+00> : vector<2x128xf32>
    %646 = tpu.matmul %628, %449, %cst_145 {dimension_numbers = #tpu.dot_dimension_numbers<[1], [0], [0], [1], [0, 0, 1, 1], [], []>} : vector<2x32xf32>, vector<32x128xf32>, vector<2x128xf32> -> vector<2x128xf32>
    %647 = arith.addf %427, %646 : vector<2x128xf32>
    %648 = arith.negf %647 : vector<2x128xf32>
    %649 = math.exp %648 : vector<2x128xf32>
    %cst_146 = arith.constant 1.000000e+00 : f32
    %650 = vector.broadcast %cst_146 : f32 to vector<2x128xf32>
    %651 = arith.addf %650, %649 : vector<2x128xf32>
    %652 = arith.divf %650, %651 : vector<2x128xf32>
    %653 = math.tanh %647 : vector<2x128xf32>
    %654 = vector.extract_strided_slice %652 {offsets = [0, 0], sizes = [2, 32], strides = [1, 1]} : vector<2x128xf32> to vector<2x32xf32>
    %655 = vector.extract_strided_slice %652 {offsets = [0, 32], sizes = [2, 32], strides = [1, 1]} : vector<2x128xf32> to vector<2x32xf32>
    %656 = vector.extract_strided_slice %653 {offsets = [0, 64], sizes = [2, 32], strides = [1, 1]} : vector<2x128xf32> to vector<2x32xf32>
    %657 = vector.extract_strided_slice %652 {offsets = [0, 96], sizes = [2, 32], strides = [1, 1]} : vector<2x128xf32> to vector<2x32xf32>
    %658 = arith.mulf %655, %626 : vector<2x32xf32>
    %659 = arith.mulf %654, %656 : vector<2x32xf32>
    %660 = arith.addf %658, %659 : vector<2x32xf32>
    %661 = math.tanh %660 : vector<2x32xf32>
    %662 = arith.mulf %657, %661 : vector<2x32xf32>
    %cst_147 = arith.constant dense<0.000000e+00> : vector<2x128xf32>
    %663 = tpu.matmul %645, %508, %cst_147 {dimension_numbers = #tpu.dot_dimension_numbers<[1], [0], [0], [1], [0, 0, 1, 1], [], []>} : vector<2x32xf32>, vector<32x128xf32>, vector<2x128xf32> -> vector<2x128xf32>
    %664 = arith.addf %479, %663 : vector<2x128xf32>
    %665 = arith.negf %664 : vector<2x128xf32>
    %666 = math.exp %665 : vector<2x128xf32>
    %cst_148 = arith.constant 1.000000e+00 : f32
    %667 = vector.broadcast %cst_148 : f32 to vector<2x128xf32>
    %668 = arith.addf %667, %666 : vector<2x128xf32>
    %669 = arith.divf %667, %668 : vector<2x128xf32>
    %670 = math.tanh %664 : vector<2x128xf32>
    %671 = vector.extract_strided_slice %669 {offsets = [0, 0], sizes = [2, 32], strides = [1, 1]} : vector<2x128xf32> to vector<2x32xf32>
    %672 = vector.extract_strided_slice %669 {offsets = [0, 32], sizes = [2, 32], strides = [1, 1]} : vector<2x128xf32> to vector<2x32xf32>
    %673 = vector.extract_strided_slice %670 {offsets = [0, 64], sizes = [2, 32], strides = [1, 1]} : vector<2x128xf32> to vector<2x32xf32>
    %674 = vector.extract_strided_slice %669 {offsets = [0, 96], sizes = [2, 32], strides = [1, 1]} : vector<2x128xf32> to vector<2x32xf32>
    %675 = arith.mulf %672, %643 : vector<2x32xf32>
    %676 = arith.mulf %671, %673 : vector<2x32xf32>
    %677 = arith.addf %675, %676 : vector<2x32xf32>
    %678 = math.tanh %677 : vector<2x32xf32>
    %679 = arith.mulf %674, %678 : vector<2x32xf32>
    %cst_149 = arith.constant dense<0.000000e+00> : vector<2x128xf32>
    %680 = tpu.matmul %662, %449, %cst_149 {dimension_numbers = #tpu.dot_dimension_numbers<[1], [0], [0], [1], [0, 0, 1, 1], [], []>} : vector<2x32xf32>, vector<32x128xf32>, vector<2x128xf32> -> vector<2x128xf32>
    %681 = arith.addf %434, %680 : vector<2x128xf32>
    %682 = arith.negf %681 : vector<2x128xf32>
    %683 = math.exp %682 : vector<2x128xf32>
    %cst_150 = arith.constant 1.000000e+00 : f32
    %684 = vector.broadcast %cst_150 : f32 to vector<2x128xf32>
    %685 = arith.addf %684, %683 : vector<2x128xf32>
    %686 = arith.divf %684, %685 : vector<2x128xf32>
    %687 = math.tanh %681 : vector<2x128xf32>
    %688 = vector.extract_strided_slice %686 {offsets = [0, 0], sizes = [2, 32], strides = [1, 1]} : vector<2x128xf32> to vector<2x32xf32>
    %689 = vector.extract_strided_slice %686 {offsets = [0, 32], sizes = [2, 32], strides = [1, 1]} : vector<2x128xf32> to vector<2x32xf32>
    %690 = vector.extract_strided_slice %687 {offsets = [0, 64], sizes = [2, 32], strides = [1, 1]} : vector<2x128xf32> to vector<2x32xf32>
    %691 = vector.extract_strided_slice %686 {offsets = [0, 96], sizes = [2, 32], strides = [1, 1]} : vector<2x128xf32> to vector<2x32xf32>
    %692 = arith.mulf %689, %660 : vector<2x32xf32>
    %693 = arith.mulf %688, %690 : vector<2x32xf32>
    %694 = arith.addf %692, %693 : vector<2x32xf32>
    %695 = math.tanh %694 : vector<2x32xf32>
    %696 = arith.mulf %691, %695 : vector<2x32xf32>
    %cst_151 = arith.constant dense<0.000000e+00> : vector<2x128xf32>
    %697 = tpu.matmul %679, %508, %cst_151 {dimension_numbers = #tpu.dot_dimension_numbers<[1], [0], [0], [1], [0, 0, 1, 1], [], []>} : vector<2x32xf32>, vector<32x128xf32>, vector<2x128xf32> -> vector<2x128xf32>
    %698 = arith.addf %472, %697 : vector<2x128xf32>
    %699 = arith.negf %698 : vector<2x128xf32>
    %700 = math.exp %699 : vector<2x128xf32>
    %cst_152 = arith.constant 1.000000e+00 : f32
    %701 = vector.broadcast %cst_152 : f32 to vector<2x128xf32>
    %702 = arith.addf %701, %700 : vector<2x128xf32>
    %703 = arith.divf %701, %702 : vector<2x128xf32>
    %704 = math.tanh %698 : vector<2x128xf32>
    %705 = vector.extract_strided_slice %703 {offsets = [0, 0], sizes = [2, 32], strides = [1, 1]} : vector<2x128xf32> to vector<2x32xf32>
    %706 = vector.extract_strided_slice %703 {offsets = [0, 32], sizes = [2, 32], strides = [1, 1]} : vector<2x128xf32> to vector<2x32xf32>
    %707 = vector.extract_strided_slice %704 {offsets = [0, 64], sizes = [2, 32], strides = [1, 1]} : vector<2x128xf32> to vector<2x32xf32>
    %708 = vector.extract_strided_slice %703 {offsets = [0, 96], sizes = [2, 32], strides = [1, 1]} : vector<2x128xf32> to vector<2x32xf32>
    %709 = arith.mulf %706, %677 : vector<2x32xf32>
    %710 = arith.mulf %705, %707 : vector<2x32xf32>
    %711 = arith.addf %709, %710 : vector<2x32xf32>
    %712 = math.tanh %711 : vector<2x32xf32>
    %713 = arith.mulf %708, %712 : vector<2x32xf32>
    %cst_153 = arith.constant dense<0.000000e+00> : vector<2x128xf32>
    %714 = tpu.matmul %696, %449, %cst_153 {dimension_numbers = #tpu.dot_dimension_numbers<[1], [0], [0], [1], [0, 0, 1, 1], [], []>} : vector<2x32xf32>, vector<32x128xf32>, vector<2x128xf32> -> vector<2x128xf32>
    %715 = arith.addf %441, %714 : vector<2x128xf32>
    %716 = arith.negf %715 : vector<2x128xf32>
    %717 = math.exp %716 : vector<2x128xf32>
    %cst_154 = arith.constant 1.000000e+00 : f32
    %718 = vector.broadcast %cst_154 : f32 to vector<2x128xf32>
    %719 = arith.addf %718, %717 : vector<2x128xf32>
    %720 = arith.divf %718, %719 : vector<2x128xf32>
    %721 = math.tanh %715 : vector<2x128xf32>
    %722 = vector.extract_strided_slice %720 {offsets = [0, 0], sizes = [2, 32], strides = [1, 1]} : vector<2x128xf32> to vector<2x32xf32>
    %723 = vector.extract_strided_slice %720 {offsets = [0, 32], sizes = [2, 32], strides = [1, 1]} : vector<2x128xf32> to vector<2x32xf32>
    %724 = vector.extract_strided_slice %721 {offsets = [0, 64], sizes = [2, 32], strides = [1, 1]} : vector<2x128xf32> to vector<2x32xf32>
    %725 = vector.extract_strided_slice %720 {offsets = [0, 96], sizes = [2, 32], strides = [1, 1]} : vector<2x128xf32> to vector<2x32xf32>
    %726 = arith.mulf %723, %694 : vector<2x32xf32>
    %727 = arith.mulf %722, %724 : vector<2x32xf32>
    %728 = arith.addf %726, %727 : vector<2x32xf32>
    %729 = math.tanh %728 : vector<2x32xf32>
    %730 = arith.mulf %725, %729 : vector<2x32xf32>
    %cst_155 = arith.constant dense<0.000000e+00> : vector<2x128xf32>
    %731 = tpu.matmul %713, %508, %cst_155 {dimension_numbers = #tpu.dot_dimension_numbers<[1], [0], [0], [1], [0, 0, 1, 1], [], []>} : vector<2x32xf32>, vector<32x128xf32>, vector<2x128xf32> -> vector<2x128xf32>
    %732 = arith.addf %465, %731 : vector<2x128xf32>
    %733 = arith.negf %732 : vector<2x128xf32>
    %734 = math.exp %733 : vector<2x128xf32>
    %cst_156 = arith.constant 1.000000e+00 : f32
    %735 = vector.broadcast %cst_156 : f32 to vector<2x128xf32>
    %736 = arith.addf %735, %734 : vector<2x128xf32>
    %737 = arith.divf %735, %736 : vector<2x128xf32>
    %738 = math.tanh %732 : vector<2x128xf32>
    %739 = vector.extract_strided_slice %737 {offsets = [0, 0], sizes = [2, 32], strides = [1, 1]} : vector<2x128xf32> to vector<2x32xf32>
    %740 = vector.extract_strided_slice %737 {offsets = [0, 32], sizes = [2, 32], strides = [1, 1]} : vector<2x128xf32> to vector<2x32xf32>
    %741 = vector.extract_strided_slice %738 {offsets = [0, 64], sizes = [2, 32], strides = [1, 1]} : vector<2x128xf32> to vector<2x32xf32>
    %742 = vector.extract_strided_slice %737 {offsets = [0, 96], sizes = [2, 32], strides = [1, 1]} : vector<2x128xf32> to vector<2x32xf32>
    %743 = arith.mulf %740, %711 : vector<2x32xf32>
    %744 = arith.mulf %739, %741 : vector<2x32xf32>
    %745 = arith.addf %743, %744 : vector<2x32xf32>
    %746 = math.tanh %745 : vector<2x32xf32>
    %747 = arith.mulf %742, %746 : vector<2x32xf32>
    %cst_157 = arith.constant dense<0.000000e+00> : vector<2x128xf32>
    %748 = tpu.matmul %730, %449, %cst_157 {dimension_numbers = #tpu.dot_dimension_numbers<[1], [0], [0], [1], [0, 0, 1, 1], [], []>} : vector<2x32xf32>, vector<32x128xf32>, vector<2x128xf32> -> vector<2x128xf32>
    %749 = arith.addf %448, %748 : vector<2x128xf32>
    %750 = arith.negf %749 : vector<2x128xf32>
    %751 = math.exp %750 : vector<2x128xf32>
    %cst_158 = arith.constant 1.000000e+00 : f32
    %752 = vector.broadcast %cst_158 : f32 to vector<2x128xf32>
    %753 = arith.addf %752, %751 : vector<2x128xf32>
    %754 = arith.divf %752, %753 : vector<2x128xf32>
    %755 = math.tanh %749 : vector<2x128xf32>
    %756 = vector.extract_strided_slice %754 {offsets = [0, 0], sizes = [2, 32], strides = [1, 1]} : vector<2x128xf32> to vector<2x32xf32>
    %757 = vector.extract_strided_slice %754 {offsets = [0, 32], sizes = [2, 32], strides = [1, 1]} : vector<2x128xf32> to vector<2x32xf32>
    %758 = vector.extract_strided_slice %755 {offsets = [0, 64], sizes = [2, 32], strides = [1, 1]} : vector<2x128xf32> to vector<2x32xf32>
    %759 = vector.extract_strided_slice %754 {offsets = [0, 96], sizes = [2, 32], strides = [1, 1]} : vector<2x128xf32> to vector<2x32xf32>
    %760 = arith.mulf %757, %728 : vector<2x32xf32>
    %761 = arith.mulf %756, %758 : vector<2x32xf32>
    %762 = arith.addf %760, %761 : vector<2x32xf32>
    %763 = math.tanh %762 : vector<2x32xf32>
    %764 = arith.mulf %759, %763 : vector<2x32xf32>
    %cst_159 = arith.constant dense<0.000000e+00> : vector<2x128xf32>
    %765 = tpu.matmul %747, %508, %cst_159 {dimension_numbers = #tpu.dot_dimension_numbers<[1], [0], [0], [1], [0, 0, 1, 1], [], []>} : vector<2x32xf32>, vector<32x128xf32>, vector<2x128xf32> -> vector<2x128xf32>
    %766 = arith.addf %458, %765 : vector<2x128xf32>
    %767 = arith.negf %766 : vector<2x128xf32>
    %768 = math.exp %767 : vector<2x128xf32>
    %cst_160 = arith.constant 1.000000e+00 : f32
    %769 = vector.broadcast %cst_160 : f32 to vector<2x128xf32>
    %770 = arith.addf %769, %768 : vector<2x128xf32>
    %771 = arith.divf %769, %770 : vector<2x128xf32>
    %772 = math.tanh %766 : vector<2x128xf32>
    %773 = vector.extract_strided_slice %771 {offsets = [0, 0], sizes = [2, 32], strides = [1, 1]} : vector<2x128xf32> to vector<2x32xf32>
    %774 = vector.extract_strided_slice %771 {offsets = [0, 32], sizes = [2, 32], strides = [1, 1]} : vector<2x128xf32> to vector<2x32xf32>
    %775 = vector.extract_strided_slice %772 {offsets = [0, 64], sizes = [2, 32], strides = [1, 1]} : vector<2x128xf32> to vector<2x32xf32>
    %776 = vector.extract_strided_slice %771 {offsets = [0, 96], sizes = [2, 32], strides = [1, 1]} : vector<2x128xf32> to vector<2x32xf32>
    %777 = arith.mulf %774, %745 : vector<2x32xf32>
    %778 = arith.mulf %773, %775 : vector<2x32xf32>
    %779 = arith.addf %777, %778 : vector<2x32xf32>
    %780 = math.tanh %779 : vector<2x32xf32>
    %781 = arith.mulf %776, %780 : vector<2x32xf32>
    %c0_161 = arith.constant 0 : index
    %c0_162 = arith.constant 0 : index
    %782 = vector.load %arg14[%c0_161, %c0_162] : memref<128x1xf32, #tpu.memory_space<vmem>>, vector<128x1xf32>
    %c0_163 = arith.constant 0 : index
    %c0_164 = arith.constant 0 : index
    %783 = vector.load %arg15[%c0_163, %c0_164] : memref<1x1xf32, #tpu.memory_space<vmem>>, vector<1x1xf32>
    %784 = vector.extract_strided_slice %782 {offsets = [0, 0], sizes = [32, 1], strides = [1, 1]} : vector<128x1xf32> to vector<32x1xf32>
    %cst_165 = arith.constant dense<0.000000e+00> : vector<2x1xf32>
    %785 = tpu.matmul %526, %784, %cst_165 {dimension_numbers = #tpu.dot_dimension_numbers<[1], [0], [0], [1], [0, 0, 1, 1], [], []>} : vector<2x32xf32>, vector<32x1xf32>, vector<2x1xf32> -> vector<2x1xf32>
    %786 = vector.broadcast %783 : vector<1x1xf32> to vector<2x1xf32>
    %787 = arith.addf %786, %785 : vector<2x1xf32>
    %788 = vector.extract_strided_slice %782 {offsets = [32, 0], sizes = [32, 1], strides = [1, 1]} : vector<128x1xf32> to vector<32x1xf32>
    %cst_166 = arith.constant dense<0.000000e+00> : vector<2x1xf32>
    %789 = tpu.matmul %781, %788, %cst_166 {dimension_numbers = #tpu.dot_dimension_numbers<[1], [0], [0], [1], [0, 0, 1, 1], [], []>} : vector<2x32xf32>, vector<32x1xf32>, vector<2x1xf32> -> vector<2x1xf32>
    %790 = arith.addf %787, %789 : vector<2x1xf32>
    %791 = vector.extract_strided_slice %782 {offsets = [64, 0], sizes = [32, 1], strides = [1, 1]} : vector<128x1xf32> to vector<32x1xf32>
    %cst_167 = arith.constant dense<0.000000e+00> : vector<2x1xf32>
    %792 = tpu.matmul %764, %791, %cst_167 {dimension_numbers = #tpu.dot_dimension_numbers<[1], [0], [0], [1], [0, 0, 1, 1], [], []>} : vector<2x32xf32>, vector<32x1xf32>, vector<2x1xf32> -> vector<2x1xf32>
    %793 = arith.addf %790, %792 : vector<2x1xf32>
    %794 = vector.extract_strided_slice %782 {offsets = [96, 0], sizes = [32, 1], strides = [1, 1]} : vector<128x1xf32> to vector<32x1xf32>
    %cst_168 = arith.constant dense<0.000000e+00> : vector<2x1xf32>
    %795 = tpu.matmul %543, %794, %cst_168 {dimension_numbers = #tpu.dot_dimension_numbers<[1], [0], [0], [1], [0, 0, 1, 1], [], []>} : vector<2x32xf32>, vector<32x1xf32>, vector<2x1xf32> -> vector<2x1xf32>
    %796 = arith.addf %793, %795 : vector<2x1xf32>
    %c0_169 = arith.constant 0 : index
    %c0_170 = arith.constant 0 : index
    %797 = vector.load %arg16[%c0_169, %c0_170] : memref<2x1xf32, #tpu.memory_space<vmem>>, vector<2x1xf32>
    tpu.vector_store %arg16[%c0_169, %c0_170], %796 {strides = array<i32>} : memref<2x1xf32, #tpu.memory_space<vmem>>, vector<2x1xf32>,
    return
  }
  func.func @transform_0(%arg0: i32) -> (i32, i32, i32) {
    %c0_i32 = arith.constant 0 : i32
    %c0_i32_0 = arith.constant 0 : i32
    %c0_i32_1 = arith.constant 0 : i32
    %c0_i32_2 = arith.constant 0 : i32
    return %c0_i32, %c0_i32_0, %c0_i32_1 : i32, i32, i32
  }
  func.func @transform_1(%arg0: i32) -> (i32, i32) {
    %c0_i32 = arith.constant 0 : i32
    %c0_i32_0 = arith.constant 0 : i32
    %c0_i32_1 = arith.constant 0 : i32
    return %c0_i32, %c0_i32_0 : i32, i32
  }
  func.func @transform_2(%arg0: i32) -> (i32, i32) {
    %c0_i32 = arith.constant 0 : i32
    %c0_i32_0 = arith.constant 0 : i32
    %c0_i32_1 = arith.constant 0 : i32
    return %c0_i32, %c0_i32_0 : i32, i32
  }
  func.func @transform_3(%arg0: i32) -> (i32, i32) {
    %c0_i32 = arith.constant 0 : i32
    %c0_i32_0 = arith.constant 0 : i32
    %c0_i32_1 = arith.constant 0 : i32
    return %c0_i32, %c0_i32_0 : i32, i32
  }
  func.func @transform_4(%arg0: i32) -> (i32, i32) {
    %c0_i32 = arith.constant 0 : i32
    %c0_i32_0 = arith.constant 0 : i32
    %c0_i32_1 = arith.constant 0 : i32
    return %c0_i32, %c0_i32_0 : i32, i32
  }
  func.func @transform_5(%arg0: i32) -> (i32, i32) {
    %c0_i32 = arith.constant 0 : i32
    %c0_i32_0 = arith.constant 0 : i32
    %c0_i32_1 = arith.constant 0 : i32
    return %c0_i32, %c0_i32_0 : i32, i32
  }
  func.func @transform_6(%arg0: i32) -> (i32, i32) {
    %c0_i32 = arith.constant 0 : i32
    %c0_i32_0 = arith.constant 0 : i32
    %c0_i32_1 = arith.constant 0 : i32
    return %c0_i32, %c0_i32_0 : i32, i32
  }
  func.func @transform_7(%arg0: i32) -> (i32, i32) {
    %c0_i32 = arith.constant 0 : i32
    %c0_i32_0 = arith.constant 0 : i32
    %c0_i32_1 = arith.constant 0 : i32
    return %c0_i32, %c0_i32_0 : i32, i32
  }
  func.func @transform_8(%arg0: i32) -> (i32, i32) {
    %c0_i32 = arith.constant 0 : i32
    %c0_i32_0 = arith.constant 0 : i32
    %c0_i32_1 = arith.constant 0 : i32
    return %c0_i32, %c0_i32_0 : i32, i32
  }
  func.func @transform_9(%arg0: i32) -> (i32, i32) {
    %c0_i32 = arith.constant 0 : i32
    %c0_i32_0 = arith.constant 0 : i32
    %c0_i32_1 = arith.constant 0 : i32
    return %c0_i32, %c0_i32_0 : i32, i32
  }
  func.func @transform_10(%arg0: i32) -> (i32, i32) {
    %c0_i32 = arith.constant 0 : i32
    %c0_i32_0 = arith.constant 0 : i32
    %c0_i32_1 = arith.constant 0 : i32
    return %c0_i32, %c0_i32_0 : i32, i32
  }
  func.func @transform_11(%arg0: i32) -> (i32, i32) {
    %c0_i32 = arith.constant 0 : i32
    %c0_i32_0 = arith.constant 0 : i32
    %c0_i32_1 = arith.constant 0 : i32
    return %c0_i32, %c0_i32_0 : i32, i32
  }
  func.func @transform_12(%arg0: i32) -> (i32, i32) {
    %c0_i32 = arith.constant 0 : i32
    %c0_i32_0 = arith.constant 0 : i32
    %c0_i32_1 = arith.constant 0 : i32
    return %c0_i32, %c0_i32_0 : i32, i32
  }
  func.func @transform_13(%arg0: i32) -> (i32, i32) {
    %c0_i32 = arith.constant 0 : i32
    %c0_i32_0 = arith.constant 0 : i32
    %c0_i32_1 = arith.constant 0 : i32
    return %c0_i32, %c0_i32_0 : i32, i32
  }
  func.func @transform_14(%arg0: i32) -> (i32, i32) {
    %c0_i32 = arith.constant 0 : i32
    %c0_i32_0 = arith.constant 0 : i32
    %c0_i32_1 = arith.constant 0 : i32
    return %c0_i32, %c0_i32_0 : i32, i32
  }
  func.func @transform_15(%arg0: i32) -> (i32, i32) {
    %c0_i32 = arith.constant 0 : i32
    %c0_i32_0 = arith.constant 0 : i32
    %c0_i32_1 = arith.constant 0 : i32
    return %c0_i32, %c0_i32_0 : i32, i32
  }
}

</mosaic_0001>

<bundles_post_ra>
// kernel: rnn_model_forward.1
= control target key start
LH: loop header
LB: loop body
LE: loop exit
PB: predicated region body
PF: predicated region fallthrough
CT: control target
= control target key end

     0   :  { %s4674_s0 = inlined_call_operand.vmem [shape: f32[8,2,1], index: 0, kind: input, shape index: {}]   ;;  %s4675_s1 = inlined_call_operand.vmem [shape: f32[1,128], index: 1, kind: input, shape index: {}]   ;;  %s4676_s2 = inlined_call_operand.hbm [shape: f32[32,128], index: 2, kind: input, shape index: {}]   ;;  %s4677_s3 = inlined_call_operand.vmem [shape: f32[1,128], index: 3, kind: input, shape index: {}]   ;;  %s4678_s4 = inlined_call_operand.vmem [shape: f32[1,128], index: 4, kind: input, shape index: {}]   ;;  %s4679_s5 = inlined_call_operand.hbm [shape: f32[32,128], index: 5, kind: input, shape index: {}]   ;;  %s4680_s6 = inlined_call_operand.vmem [shape: f32[1,128], index: 6, kind: input, shape index: {}]   ;;  %s4681_s7 = inlined_call_operand.vmem [shape: f32[64,128], index: 7, kind: input, shape index: {}]   ;;  %s4682_s8 = inlined_call_operand.hbm [shape: f32[32,128], index: 8, kind: input, shape index: {}]   ;;  %s4683_s9 = inlined_call_operand.vmem [shape: f32[1,128], index: 9, kind: input, shape index: {}]   ;;  %s4684_s10 = inlined_call_operand.vmem [shape: f32[64,128], index: 10, kind: input, shape index: {}]   ;;  %s4685_s11 = inlined_call_operand.hbm [shape: f32[32,128], index: 11, kind: input, shape index: {}]   ;;  %s4686_s12 = inlined_call_operand.vmem [shape: f32[1,128], index: 12, kind: input, shape index: {}]   ;;  %s4687_s13 = inlined_call_operand.vmem [shape: f32[128,1], index: 13, kind: input, shape index: {}]   ;;  %s4688_s14 = inlined_call_operand.<no memory space> [shape: f32[1,1], index: 14, kind: input, shape index: {}]   ;;  %s4689_s15 = inlined_call_operand.vmem [shape: f32[2,1], index: 15, kind: output, shape index: {}]  }
   0x1   :  { %v20_v0 = vstv %s4688_s14 }
   0x2   :  { %21 = vst [vmem:[#allocation2] sm:$0x1] %v20_v0 }
   0x3   :  { %22 = vsyncpa [#allocation4], 0 }
   0x4   :  { %23 = vsyncpa [#allocation6], 0 }
   0x5   :  { %24 = vsyncpa [#allocation9], 0  ;;  %s50_s22 = sshll.u32 %s4679_s5, 4  ;;  %s3550_s23 = smov [#allocation5]   ;;  %s51_s22 = int_to_ptr.hbm [resolvable:$true] %s50_s22 }
   0x6   :  { %s52_s24 = sshll.u32 %s3550_s23, 4  ;;  %s33_s27 = sshll.u32 %s4676_s2, 4  ;;  %s53_s24 = int_to_ptr.vmem [resolvable:$true] %s52_s24  ;;  %s34_s27 = int_to_ptr.hbm [resolvable:$true] %s33_s27 }
   0x7   :  { %s3551_s28 = smov 128   ;;  %s3552_s29 = smov 8  }
   0x8   :  { %58 = dma.hbm_to_vmem [thread:$0]  %s51_s22, 512, %s53_s24, [#allocation6], %s3551_s28, %s3551_s28, %s3552_s29  }
   0x9   :  { %s3553_s14 = smov [#allocation3]   ;;  %s67_s18 = sshll.u32 %s4682_s8, 4  ;;  %s68_s18 = int_to_ptr.hbm [resolvable:$true] %s67_s18 }
   0xa   :  { %s35_s30 = sshll.u32 %s3553_s14, 4  ;;  %s84_s20 = sshll.u32 %s4685_s11, 4  ;;  %s36_s30 = int_to_ptr.vmem [resolvable:$true] %s35_s30  ;;  %s85_s20 = int_to_ptr.hbm [resolvable:$true] %s84_s20 }
   0xb   :  { %41 = dma.hbm_to_vmem [thread:$0]  %s34_s27, 512, %s36_s30, [#allocation4], %s3551_s28, %s3551_s28, %s3552_s29  }
   0xc   :  { %s3554_s21 = smov [#allocation7]   ;;  %s3555_s2 = smov [#allocation8]  }
   0xd   :  { %s69_s23 = sshll.u32 %s3554_s21, 4  ;;  %s86_s22 = sshll.u32 %s3555_s2, 4  ;;  %s70_s23 = int_to_ptr.vmem [resolvable:$true] %s69_s23  ;;  %s87_s22 = int_to_ptr.vmem [resolvable:$true] %s86_s22 }
   0xe   :  { %75 = dma.hbm_to_vmem [thread:$0]  %s68_s18, 512, %s70_s23, [#allocation6], %s3551_s28, %s3551_s28, %s3552_s29  }
   0xf   :  { %92 = dma.hbm_to_vmem [thread:$0]  %s85_s20, 512, %s87_s22, [#allocation9], %s3551_s28, %s3551_s28, %s3552_s29  }
  0x10   :  { %3544 = dma.done.wait [#allocation4], 512  }
  0x11   :  { %3545 = vsyncadd [#allocation4], 4294966784 }
  0x12   :  { %3546 = dma.done.wait [#allocation6], 1024  }
  0x13   :  { %3547 = vsyncadd [#allocation6], 4294966272 }
  0x14   :  { %3548 = dma.done.wait [#allocation9], 512  }
  0x15   :  { %3549 = vsyncadd [#allocation9], 4294966784  ;;  %v3556_v1 = vmov 0   ;;  %v3655_v2 = vld [vmem:[#allocation3 + $0x18] sm:$0xff]  ;;  %v3659_v4 = vld [vmem:[#allocation3 + $0x10] sm:$0xff]  ;;  %v3557_v11 = vmov 0.0  }
  0x16   :  { %3176 = vset.pattern.permute.xlu0 %v3556_v1  ;;  %3177 = vset.pattern.permute.xlu1 %v3556_v1  ;;  %v3657_v3 = vld [vmem:[#allocation5 + $0x18] sm:$0xff]  ;;  %v3663_v5 = vld [vmem:[#allocation5 + $0x10] sm:$0xff]  ;;  %v3665_v6 = vld [vmem:[#allocation3 + $0x8] sm:$0xff]  ;;  %s3558_s18 = smov 64   ;;  %s3559_s5 = smov 32   ;;  %vm226_vm8 = vcmask 261120  }
  0x17   :  { %3178 = vset.pattern.permute.xlu2 %v3556_v1  ;;  %242 = vmatpush.msra.mxu0 %v3655_v2  ;;  %v3667_v7 = vld [vmem:[#allocation5 + $0x8] sm:$0xff]  ;;  %v3676_v9 = vld [vmem:[#allocation3] sm:$0xff]  ;;  %v3724_v14 = vld [vmem:[%s4678_s4] ss:$0 sm:$0xff] }
  0x18   :  { %300 = vmatpush.msra.mxu1 %v3657_v3  ;;  %v3069_v8 = vld [vmem:[%s4674_s0 + $0xe] sm:$0x3]  ;;  %426 = vmatpush.msra.mxu3 %v3657_v3  ;;  %v3678_v10 = vld [vmem:[#allocation5] sm:$0xff]  ;;  %v3731_v16 = vld [vmem:[%s4680_s6] ss:$0 sm:$0xff] }
  0x19   :  { %363 = vmatpush.msra.mxu2 %v3655_v2  ;;  %243 = vmatpush.msra.mxu0 %v3659_v4  ;;  %v117_v12 = vld [vmem:[%s4674_s0] sm:$0x3] }
  0x1a   :  { %301 = vmatpush.msra.mxu1 %v3663_v5  ;;  %189 = vperm.xlu0 %3176, %v3069_v8   ;;  %v3736_v17 = vld [vmem:[%s4675_s1] ss:$0 sm:$0xff] }
  0x1b   :  { %427 = vmatpush.msra.mxu3 %v3663_v5  ;;  %244 = vmatpush.msra.mxu0 %v3665_v6  ;;  %v3746_v21 = vld [vmem:[%s4677_s3] ss:$0 sm:$0xff] }
  0x1c   :  { %302 = vmatpush.msra.mxu1 %v3667_v7  ;;  %364 = vmatpush.msra.mxu2 %v3659_v4 }
  0x1d   :  { %428 = vmatpush.msra.mxu3 %v3667_v7  ;;  %245 = vmatpush.msra.mxu0 %v3676_v9 }
  0x1e   :  { %303 = vmatpush.msra.mxu1 %v3678_v10  ;;  %246 = vmatmul.f32.vlgmr.msra.gmra.mxu0 %v3557_v11 }
  0x1f   :  { %304 = vmatmul.f32.vlgmr.msra.gmra.mxu1 %v3557_v11  ;;  %429 = vmatpush.msra.mxu3 %v3678_v10 }
  0x20   :  { %365 = vmatpush.msra.mxu2 %v3665_v6  ;;  %552 = vmatpush.msrb.mxu1 %v3657_v3 }
  0x21   :  { %489 = vmatpush.msrb.mxu0 %v3655_v2  ;;  %678 = vmatpush.msrb.mxu3 %v3657_v3 }
  0x22   :  { %366 = vmatpush.msra.mxu2 %v3676_v9  ;;  %120 = vperm.xlu0 %3176, %v117_v12  }
  0x23   :  { %553 = vmatpush.msrb.mxu1 %v3663_v5  ;;  %490 = vmatpush.msrb.mxu0 %v3659_v4 }
  0x24   :  { %679 = vmatpush.msrb.mxu3 %v3663_v5  ;;  %615 = vmatpush.msrb.mxu2 %v3655_v2 }
  0x25   :  { %554 = vmatpush.msrb.mxu1 %v3667_v7  ;;  %491 = vmatpush.msrb.mxu0 %v3665_v6 }
  0x26   :  { %680 = vmatpush.msrb.mxu3 %v3667_v7  ;;  %616 = vmatpush.msrb.mxu2 %v3659_v4 }
  0x27   :  { %555 = vmatpush.msrb.mxu1 %v3678_v10  ;;  %492 = vmatpush.msrb.mxu0 %v3676_v9 }
  0x28   :  { %681 = vmatpush.msrb.mxu3 %v3678_v10  ;;  %617 = vmatpush.msrb.mxu2 %v3665_v6 }
  0x29   :  { %804 = vmatpush.msra.mxu1 %v3657_v3  ;;  %741 = vmatpush.msra.mxu0 %v3655_v2 }
  0x2a   :  { %618 = vmatpush.msrb.mxu2 %v3676_v9 }
  0x2b   :  { %805 = vmatpush.msra.mxu1 %v3663_v5  ;;  %742 = vmatpush.msra.mxu0 %v3659_v4 }
  0x2d   :  { %806 = vmatpush.msra.mxu1 %v3667_v7  ;;  %743 = vmatpush.msra.mxu0 %v3665_v6 }
  0x2f   :  { %807 = vmatpush.msra.mxu1 %v3678_v10  ;;  %744 = vmatpush.msra.mxu0 %v3676_v9 }
  0x8c   :  { %v3719_v13 = vpop.permute.xlu0 %189 }
  0x8d   :  { %v220_v15 = vmul.f32 %v3724_v14, %v3719_v13 }
  0x8f   :  { %v221_v19 = vadd.f32 %v3731_v16, %v220_v15 }
  0x94   :  { %v3738_v18 = vpop.permute.xlu0 %120 }
  0x95   :  { %v126_v20 = vmul.f32 %v3736_v17, %v3738_v18 }
  0x97   :  { %v130_v24 = vadd.f32 %v3746_v21, %v126_v20 }
  0x9b   :  { %v247_v25 = vpop.f32.mrf.mxu0 }
  0x9c   :  { %v305_v22 = vpop.f32.mrf.mxu1  ;;  %v250_v26 = vadd.f32 %v247_v25, %v130_v24  ;;  %v3063_v24 = vld [vmem:[%s4674_s0 + $0x2] sm:$0x3] }
  0x9d   :  { %v308_v23 = vadd.f32 %v305_v22, %v221_v19  ;;  %v3068_v22 = vld [vmem:[%s4674_s0 + $0xc] sm:$0x3] }
  0x9e   :  { %v3070_v30 = vmul.f32 -1.442695, %v250_v26 }
  0x9f   :  { %3186 = vtanh.f32 %v308_v23  ;;  %v3071_v29 = vmul.f32 -1.442695, %v308_v23 }
  0xa0   :  { %3188 = vtanh.f32 %v250_v26 }
  0xa1   :  { %3190 = vpow2.f32 %v3071_v29 }
  0xa2   :  { %3192 = vpow2.f32 %v3070_v30 }
  0xa5   :  { %v3187_v27 = vpop.eup %3186 }
  0xa6   :  { %331 = vrot.lane.b32.xlu1 %v3187_v27, %s3558_s18  ;;  %v3189_v28 = vpop.eup %3188 }
  0xa7   :  { %v3191_v31 = vpop.eup %3190 }
  0xa8   :  { %v312_v32 = vadd.f32 1.0, %v3191_v31  ;;  %v3193_v33 = vpop.eup %3192 }
  0xa9   :  { %v254_v34 = vadd.f32 1.0, %v3193_v33 }
  0xaa   :  { %3194 = vrcp.f32 %v312_v32  ;;  %v324_v43 = vand.u32 2147483648, %v312_v32  ;;  %vm318_vm1 = vweird.f32 %v312_v32  ;;  %v322_v44 = vand.u32 2147483647, %v312_v32 }
  0xab   :  { %3196 = vrcp.f32 %v254_v34  ;;  %v266_v52 = vand.u32 2147483648, %v254_v34  ;;  %vm260_vm5 = vweird.f32 %v254_v34  ;;  %v264_v53 = vand.u32 2147483647, %v254_v34 }
  0xac   :  { %v325_v47 = vor.u32 1.1754944e-38, %v324_v43  ;;  %vm323_vm3 = vcmp.eq.f32.partialorder %v322_v44, 8.507059e+37 }
  0xad   :  { %v267_v55 = vor.u32 1.1754944e-38, %v266_v52  ;;  %vm265_vm7 = vcmp.eq.f32.partialorder %v264_v53, 8.507059e+37 }
  0xae   :  { %273 = vrot.lane.b32.xlu1 %v3189_v28, %s3558_s18 }
  0xb0   :  { %v3195_v35 = vpop.eup %3194 }
  0xb1   :  { %v314_v36 = vmul.f32 %v3195_v35, %v312_v32  ;;  %v3197_v38 = vpop.eup %3196  ;;  %vm319_vm0 = vweird.f32 %v3195_v35 }
  0xb2   :  { %v256_v40 = vmul.f32 %v3197_v38, %v254_v34  ;;  %vm320_vm2 = vmor %vm318_vm1, %vm319_vm0  ;;  %vm261_vm4 = vweird.f32 %v3197_v38 }
  0xb3   :  { %v315_v37 = vsub.f32 1.0, %v314_v36  ;;  %vm262_vm6 = vmor %vm260_vm5, %vm261_vm4 }
  0xb4   :  { %v257_v42 = vsub.f32 1.0, %v256_v40 }
  0xb5   :  { %v316_v39 = vmul.f32 %v3195_v35, %v315_v37 }
  0xb6   :  { %v258_v46 = vmul.f32 %v3197_v38, %v257_v42 }
  0xb7   :  { %v317_v41 = vadd.f32 %v3195_v35, %v316_v39 }
  0xb8   :  { %v259_v51 = vadd.f32 %v3197_v38, %v258_v46 }
  0xb9   :  { %v321_v45 = vsel %vm320_vm2, %v3195_v35, %v317_v41 }
  0xba   :  { %v326_v49 = vsel %vm323_vm3, %v325_v47, %v321_v45  ;;  %v263_v54 = vsel %vm262_vm6, %v3197_v38, %v259_v51 }
  0xbb   :  { %v268_v57 = vsel %vm265_vm7, %v267_v55, %v263_v54  ;;  %v329_v59 = vmul.f32 0.0, %v326_v49 }
  0xbc   :  { %v271_v62 = vmul.f32 0.0, %v268_v57 }
 0x118   :  { %v332_v48 = vpop.permute.xlu1 %331 }
 0x119   :  { %v334_v50 = vmul.f32 %v332_v48, %v326_v49 }
 0x11b   :  { %336 = vrot.lane.b32.xlu2 %v334_v50, %s3559_s5 }
 0x120   :  { %v274_v56 = vpop.permute.xlu1 %273 }
 0x121   :  { %v276_v58 = vmul.f32 %v274_v56, %v268_v57 }
 0x123   :  { %278 = vrot.lane.b32.xlu2 %v276_v58, %s3559_s5 }
 0x175   :  { %v337_v60 = vpop.permute.xlu2 %336 }
 0x176   :  { %v3753_v61 = vadd.f32 %v337_v60, %v329_v59 }
 0x178   :  { %3198 = vtanh.f32 %v3753_v61 }
 0x17d   :  { %v279_v63 = vpop.permute.xlu2 %278 }
 0x17e   :  { %v3199_v0 = vpop.eup %3198  ;;  %v3756_v1 = vadd.f32 %v279_v63, %v271_v62 }
 0x17f   :  { %342 = vrot.lane.b32.xlu0 %v3199_v0, %s3558_s18 }
 0x180   :  { %3200 = vtanh.f32 %v3756_v1 }
 0x186   :  { %v3201_v8 = vpop.eup %3200 }
 0x187   :  { %284 = vrot.lane.b32.xlu1 %v3201_v8, %s3558_s18 }
 0x18f   :  { %180 = vperm.xlu1 %3177, %v3068_v22  }
 0x1f1   :  { %v343_v12 = vpop.permute.xlu0 %342 }
 0x1f2   :  { %v345_v15 = vmul.f32 %v343_v12, %v326_v49 }
 0x1f4   :  { %410 = vrot.lane.b32.xlu2 %v345_v15, %s3559_s5 }
 0x1f9   :  { %v285_v19 = vpop.permute.xlu1 %284 }
 0x1fa   :  { %v287_v20 = vmul.f32 %v285_v19, %v268_v57 }
 0x1fc   :  { %347 = vrot.lane.b32.xlu0 %v287_v20, %s3559_s5  ;;  %135 = vperm.xlu2 %3178, %v3063_v24  }
 0x201   :  { %v3785_v26 = vpop.permute.xlu1 %180 }
 0x202   :  { %v218_v27 = vmul.f32 %v3724_v14, %v3785_v26 }
 0x204   :  { %v219_v28 = vadd.f32 %v3731_v16, %v218_v27 }
 0x24e   :  { %v3766_v23 = vpop.permute.xlu2 %410 }
 0x24f   :  { %3074 = vmatmul.msk.f32.vlgmr.msra.gmra.mxu3 %vm226_vm8, %v3766_v23 }
 0x250   :  { %930 = vmatpush.msra.mxu3 %v3657_v3 }
 0x252   :  { %931 = vmatpush.msra.mxu3 %v3663_v5 }
 0x254   :  { %932 = vmatpush.msra.mxu3 %v3667_v7 }
 0x256   :  { %933 = vmatpush.msra.mxu3 %v3678_v10  ;;  %v3791_v32 = vpop.permute.xlu2 %135 }
 0x257   :  { %v138_v33 = vmul.f32 %v3736_v17, %v3791_v32 }
 0x259   :  { %v139_v34 = vadd.f32 %v3746_v21, %v138_v33 }
 0x26e   :  { %v3777_v25 = vpop.permute.xlu0 %347 }
 0x26f   :  { %3072 = vmatmul.msk.f32.vlgmr.msra.gmra.mxu2 %vm226_vm8, %v3777_v25 }
 0x270   :  { %867 = vmatpush.msra.mxu2 %v3655_v2 }
 0x272   :  { %868 = vmatpush.msra.mxu2 %v3659_v4 }
 0x274   :  { %869 = vmatpush.msra.mxu2 %v3665_v6 }
 0x276   :  { %870 = vmatpush.msra.mxu2 %v3676_v9 }
 0x2d2   :  { %v431_v29 = vpop.f32.mrf.mxu3 }
 0x2d3   :  { %v434_v30 = vadd.f32 %v431_v29, %v219_v28 }
 0x2d5   :  { %3202 = vtanh.f32 %v434_v30  ;;  %v3075_v38 = vmul.f32 -1.442695, %v434_v30 }
 0x2db   :  { %v3203_v31 = vpop.eup %3202 }
 0x2dc   :  { %457 = vrot.lane.b32.xlu0 %v3203_v31, %s3558_s18 }
 0x2f2   :  { %v368_v35 = vpop.f32.mrf.mxu2 }
 0x2f3   :  { %v371_v36 = vadd.f32 %v368_v35, %v139_v34 }
 0x2f5   :  { %3204 = vtanh.f32 %v371_v36  ;;  %v3073_v44 = vmul.f32 -1.442695, %v371_v36 }
 0x2f6   :  { %3206 = vpow2.f32 %v3075_v38 }
 0x2fb   :  { %v3205_v37 = vpop.eup %3204 }
 0x2fc   :  { %394 = vrot.lane.b32.xlu1 %v3205_v37, %s3558_s18  ;;  %v3207_v39 = vpop.eup %3206 }
 0x2fd   :  { %v438_v40 = vadd.f32 1.0, %v3207_v39 }
 0x2ff   :  { %3208 = vrcp.f32 %v438_v40  ;;  %v450_v47 = vand.u32 2147483648, %v438_v40  ;;  %vm444_vm10 = vweird.f32 %v438_v40  ;;  %v448_v48 = vand.u32 2147483647, %v438_v40 }
 0x300   :  { %3210 = vpow2.f32 %v3073_v44 }
 0x301   :  { %v451_v51 = vor.u32 1.1754944e-38, %v450_v47  ;;  %vm449_vm12 = vcmp.eq.f32.partialorder %v448_v48, 8.507059e+37 }
 0x305   :  { %v3209_v41 = vpop.eup %3208 }
 0x306   :  { %v440_v42 = vmul.f32 %v3209_v41, %v438_v40  ;;  %vm445_vm9 = vweird.f32 %v3209_v41  ;;  %v3211_v49 = vpop.eup %3210 }
 0x307   :  { %vm446_vm11 = vmor %vm444_vm10, %vm445_vm9  ;;  %v375_v52 = vadd.f32 1.0, %v3211_v49 }
 0x308   :  { %v441_v43 = vsub.f32 1.0, %v440_v42 }
 0x309   :  { %3212 = vrcp.f32 %v375_v52  ;;  %v387_v62 = vand.u32 2147483648, %v375_v52  ;;  %vm381_vm14 = vweird.f32 %v375_v52  ;;  %v385_v63 = vand.u32 2147483647, %v375_v52 }
 0x30a   :  { %v442_v45 = vmul.f32 %v3209_v41, %v441_v43 }
 0x30b   :  { %v388_v8 = vor.u32 1.1754944e-38, %v387_v62  ;;  %vm386_vm0 = vcmp.eq.f32.partialorder %v385_v63, 8.507059e+37 }
 0x30c   :  { %v443_v46 = vadd.f32 %v3209_v41, %v442_v45 }
 0x30e   :  { %v447_v50 = vsel %vm446_vm11, %v3209_v41, %v443_v46 }
 0x30f   :  { %v452_v54 = vsel %vm449_vm12, %v451_v51, %v447_v50  ;;  %v3213_v56 = vpop.eup %3212 }
 0x310   :  { %v377_v57 = vmul.f32 %v3213_v56, %v375_v52  ;;  %vm382_vm13 = vweird.f32 %v3213_v56  ;;  %v455_v20 = vmul.f32 %v452_v54, %v3753_v61  ;;  %v3067_v61 = vld [vmem:[%s4674_s0 + $0xa] sm:$0x3] }
 0x311   :  { %vm383_vm15 = vmor %vm381_vm14, %vm382_vm13 }
 0x312   :  { %v378_v58 = vsub.f32 1.0, %v377_v57 }
 0x314   :  { %v379_v59 = vmul.f32 %v3213_v56, %v378_v58 }
 0x316   :  { %v380_v60 = vadd.f32 %v3213_v56, %v379_v59 }
 0x318   :  { %v384_v0 = vsel %vm383_vm15, %v3213_v56, %v380_v60 }
 0x319   :  { %v389_v12 = vsel %vm386_vm0, %v388_v8, %v384_v0 }
 0x31a   :  { %v392_v28 = vmul.f32 %v389_v12, %v3756_v1  ;;  %v3064_v1 = vld [vmem:[%s4674_s0 + $0x4] sm:$0x3] }
 0x34e   :  { %v458_v53 = vpop.permute.xlu0 %457 }
 0x34f   :  { %v460_v55 = vmul.f32 %v458_v53, %v452_v54 }
 0x351   :  { %462 = vrot.lane.b32.xlu2 %v460_v55, %s3559_s5 }
 0x36e   :  { %v395_v15 = vpop.permute.xlu1 %394 }
 0x36f   :  { %v397_v19 = vmul.f32 %v395_v15, %v389_v12 }
 0x371   :  { %399 = vrot.lane.b32.xlu0 %v397_v19, %s3559_s5 }
 0x3ab   :  { %v463_v22 = vpop.permute.xlu2 %462 }
 0x3ac   :  { %v3800_v24 = vadd.f32 %v463_v22, %v455_v20 }
 0x3ae   :  { %3214 = vtanh.f32 %v3800_v24 }
 0x3b4   :  { %v3215_v27 = vpop.eup %3214 }
 0x3b5   :  { %468 = vrot.lane.b32.xlu1 %v3215_v27, %s3558_s18 }
 0x3e3   :  { %v400_v29 = vpop.permute.xlu0 %399 }
 0x3e4   :  { %v3805_v30 = vadd.f32 %v400_v29, %v392_v28 }
 0x3e6   :  { %3216 = vtanh.f32 %v3805_v30 }
 0x3ec   :  { %v3217_v31 = vpop.eup %3216 }
 0x3ed   :  { %405 = vrot.lane.b32.xlu2 %v3217_v31, %s3558_s18 }
 0x3f5   :  { %171 = vperm.xlu2 %3178, %v3067_v61  }
 0x427   :  { %v469_v33 = vpop.permute.xlu1 %468 }
 0x428   :  { %v471_v34 = vmul.f32 %v469_v33, %v452_v54 }
 0x42a   :  { %536 = vrot.lane.b32.xlu0 %v471_v34, %s3559_s5 }
 0x432   :  { %144 = vperm.xlu0 %3176, %v3064_v1  }
 0x447   :  { %v406_v35 = vpop.permute.xlu2 %405 }
 0x448   :  { %v408_v36 = vmul.f32 %v406_v35, %v389_v12 }
 0x44a   :  { %473 = vrot.lane.b32.xlu1 %v408_v36, %s3559_s5 }
 0x44f   :  { %v3833_v39 = vpop.permute.xlu2 %171 }
 0x450   :  { %v216_v40 = vmul.f32 %v3724_v14, %v3833_v39 }
 0x452   :  { %v217_v41 = vadd.f32 %v3731_v16, %v216_v40 }
 0x49c   :  { %v3817_v37 = vpop.permute.xlu0 %536 }
 0x49d   :  { %3078 = vmatmul.msk.f32.vlgmr.msrb.gmra.mxu1 %vm226_vm8, %v3817_v37 }
 0x49e   :  { %1056 = vmatpush.msrb.mxu1 %v3657_v3 }
 0x4a0   :  { %1057 = vmatpush.msrb.mxu1 %v3663_v5 }
 0x4a2   :  { %1058 = vmatpush.msrb.mxu1 %v3667_v7 }
 0x4a4   :  { %1059 = vmatpush.msrb.mxu1 %v3678_v10  ;;  %v3839_v45 = vpop.permute.xlu0 %144 }
 0x4a5   :  { %v147_v46 = vmul.f32 %v3736_v17, %v3839_v45 }
 0x4a7   :  { %v148_v47 = vadd.f32 %v3746_v21, %v147_v46 }
 0x4bc   :  { %v3825_v38 = vpop.permute.xlu1 %473 }
 0x4bd   :  { %3076 = vmatmul.msk.f32.vlgmr.msrb.gmra.mxu0 %vm226_vm8, %v3825_v38 }
 0x4be   :  { %993 = vmatpush.msrb.mxu0 %v3655_v2 }
 0x4c0   :  { %994 = vmatpush.msrb.mxu0 %v3659_v4 }
 0x4c2   :  { %995 = vmatpush.msrb.mxu0 %v3665_v6 }
 0x4c4   :  { %996 = vmatpush.msrb.mxu0 %v3676_v9 }
 0x51a   :  { %v557_v42 = vpop.f32.mrf.mxu1 }
 0x51b   :  { %v560_v43 = vadd.f32 %v557_v42, %v217_v41 }
 0x51d   :  { %3218 = vtanh.f32 %v560_v43  ;;  %v3079_v51 = vmul.f32 -1.442695, %v560_v43 }
 0x523   :  { %v3219_v44 = vpop.eup %3218 }
 0x524   :  { %583 = vrot.lane.b32.xlu1 %v3219_v44, %s3558_s18 }
 0x53a   :  { %v494_v48 = vpop.f32.mrf.mxu0 }
 0x53b   :  { %v497_v49 = vadd.f32 %v494_v48, %v148_v47 }
 0x53d   :  { %3220 = vtanh.f32 %v497_v49  ;;  %v3077_v52 = vmul.f32 -1.442695, %v497_v49 }
 0x53e   :  { %3222 = vpow2.f32 %v3079_v51 }
 0x53f   :  { %3224 = vpow2.f32 %v3077_v52 }
 0x543   :  { %v3221_v50 = vpop.eup %3220 }
 0x544   :  { %520 = vrot.lane.b32.xlu2 %v3221_v50, %s3558_s18  ;;  %v3223_v53 = vpop.eup %3222 }
 0x545   :  { %v564_v54 = vadd.f32 1.0, %v3223_v53  ;;  %v3225_v55 = vpop.eup %3224 }
 0x546   :  { %v501_v56 = vadd.f32 1.0, %v3225_v55 }
 0x547   :  { %3226 = vrcp.f32 %v564_v54  ;;  %v576_v12 = vand.u32 2147483648, %v564_v54  ;;  %vm570_vm2 = vweird.f32 %v564_v54  ;;  %v574_v15 = vand.u32 2147483647, %v564_v54 }
 0x548   :  { %3228 = vrcp.f32 %v501_v56  ;;  %v513_v61 = vand.u32 2147483648, %v501_v56  ;;  %vm507_vm6 = vweird.f32 %v501_v56  ;;  %v511_v33 = vand.u32 2147483647, %v501_v56 }
 0x549   :  { %v577_v22 = vor.u32 1.1754944e-38, %v576_v12  ;;  %vm575_vm4 = vcmp.eq.f32.partialorder %v574_v15, 8.507059e+37 }
 0x54a   :  { %v514_v1 = vor.u32 1.1754944e-38, %v513_v61  ;;  %vm512_vm9 = vcmp.eq.f32.partialorder %v511_v33, 8.507059e+37 }
 0x54d   :  { %v3227_v57 = vpop.eup %3226 }
 0x54e   :  { %v566_v58 = vmul.f32 %v3227_v57, %v564_v54  ;;  %v3229_v60 = vpop.eup %3228  ;;  %vm571_vm1 = vweird.f32 %v3227_v57 }
 0x54f   :  { %v503_v63 = vmul.f32 %v3229_v60, %v501_v56  ;;  %vm572_vm3 = vmor %vm570_vm2, %vm571_vm1  ;;  %vm508_vm5 = vweird.f32 %v3229_v60 }
 0x550   :  { %v567_v59 = vsub.f32 1.0, %v566_v58  ;;  %vm509_vm7 = vmor %vm507_vm6, %vm508_vm5 }
 0x551   :  { %v504_v8 = vsub.f32 1.0, %v503_v63 }
 0x552   :  { %v568_v62 = vmul.f32 %v3227_v57, %v567_v59 }
 0x553   :  { %v505_v20 = vmul.f32 %v3229_v60, %v504_v8 }
 0x554   :  { %v569_v0 = vadd.f32 %v3227_v57, %v568_v62 }
 0x555   :  { %v506_v31 = vadd.f32 %v3229_v60, %v505_v20 }
 0x556   :  { %v573_v19 = vsel %vm572_vm3, %v3227_v57, %v569_v0 }
 0x557   :  { %v578_v27 = vsel %vm575_vm4, %v577_v22, %v573_v19  ;;  %v510_v34 = vsel %vm509_vm7, %v3229_v60, %v506_v31 }
 0x558   :  { %v515_v36 = vsel %vm512_vm9, %v514_v1, %v510_v34  ;;  %v581_v41 = vmul.f32 %v578_v27, %v3800_v24  ;;  %v3066_v24 = vld [vmem:[%s4674_s0 + $0x8] sm:$0x3] }
 0x559   :  { %v518_v44 = vmul.f32 %v515_v36, %v3805_v30  ;;  %v3065_v30 = vld [vmem:[%s4674_s0 + $0x6] sm:$0x3] }
 0x596   :  { %v584_v28 = vpop.permute.xlu1 %583 }
 0x597   :  { %v586_v29 = vmul.f32 %v584_v28, %v578_v27 }
 0x599   :  { %588 = vrot.lane.b32.xlu0 %v586_v29, %s3559_s5 }
 0x59e   :  { %v521_v35 = vpop.permute.xlu2 %520 }
 0x59f   :  { %v523_v40 = vmul.f32 %v521_v35, %v515_v36 }
 0x5a1   :  { %525 = vrot.lane.b32.xlu1 %v523_v40, %s3559_s5 }
 0x60b   :  { %v589_v42 = vpop.permute.xlu0 %588 }
 0x60c   :  { %v3848_v43 = vadd.f32 %v589_v42, %v581_v41 }
 0x60e   :  { %3230 = vtanh.f32 %v3848_v43 }
 0x613   :  { %v526_v46 = vpop.permute.xlu1 %525 }
 0x614   :  { %v3231_v47 = vpop.eup %3230  ;;  %v3852_v48 = vadd.f32 %v526_v46, %v518_v44 }
 0x615   :  { %594 = vrot.lane.b32.xlu2 %v3231_v47, %s3558_s18 }
 0x616   :  { %3232 = vtanh.f32 %v3852_v48 }
 0x61c   :  { %v3233_v49 = vpop.eup %3232 }
 0x61d   :  { %531 = vrot.lane.b32.xlu0 %v3233_v49, %s3558_s18 }
 0x625   :  { %162 = vperm.xlu0 %3176, %v3066_v24  }
 0x66f   :  { %v595_v50 = vpop.permute.xlu2 %594 }
 0x670   :  { %v597_v51 = vmul.f32 %v595_v50, %v578_v27 }
 0x672   :  { %662 = vrot.lane.b32.xlu1 %v597_v51, %s3559_s5 }
 0x67a   :  { %153 = vperm.xlu1 %3177, %v3065_v30  }
 0x68f   :  { %v532_v52 = vpop.permute.xlu0 %531 }
 0x690   :  { %v534_v53 = vmul.f32 %v532_v52, %v515_v36 }
 0x692   :  { %599 = vrot.lane.b32.xlu2 %v534_v53, %s3559_s5 }
 0x6e4   :  { %v3865_v54 = vpop.permute.xlu1 %662 }
 0x6e5   :  { %3082 = vmatmul.msk.f32.vlgmr.msrb.gmra.mxu3 %vm226_vm8, %v3865_v54 }
 0x6e6   :  { %1182 = vmatpush.msrb.mxu3 %v3657_v3  ;;  %v3881_v3 = vpop.permute.xlu0 %162 }
 0x6e8   :  { %1183 = vmatpush.msrb.mxu3 %v3663_v5  ;;  %v214_v5 = vmul.f32 %v3724_v14, %v3881_v3 }
 0x6ea   :  { %1184 = vmatpush.msrb.mxu3 %v3667_v7  ;;  %v215_v7 = vadd.f32 %v3731_v16, %v214_v5 }
 0x6ec   :  { %v3872_v55 = vpop.permute.xlu2 %599  ;;  %1185 = vmatpush.msrb.mxu3 %v3678_v10  ;;  %v3886_v56 = vpop.permute.xlu1 %153 }
 0x6ed   :  { %3080 = vmatmul.msk.f32.vlgmr.msrb.gmra.mxu2 %vm226_vm8, %v3872_v55 }
 0x6ee   :  { %1119 = vmatpush.msrb.mxu2 %v3655_v2  ;;  %v156_v2 = vmul.f32 %v3736_v17, %v3886_v56 }
 0x6f0   :  { %1120 = vmatpush.msrb.mxu2 %v3659_v4  ;;  %v157_v4 = vadd.f32 %v3746_v21, %v156_v2 }
 0x6f2   :  { %1121 = vmatpush.msrb.mxu2 %v3665_v6 }
 0x6f4   :  { %1122 = vmatpush.msrb.mxu2 %v3676_v9 }
 0x768   :  { %v683_v10 = vpop.f32.mrf.mxu3 }
 0x769   :  { %v686_v57 = vadd.f32 %v683_v10, %v215_v7 }
 0x76b   :  { %3234 = vtanh.f32 %v686_v57  ;;  %v3083_v60 = vmul.f32 -1.442695, %v686_v57 }
 0x770   :  { %v620_v6 = vpop.f32.mrf.mxu2 }
 0x771   :  { %v3235_v58 = vpop.eup %3234  ;;  %v623_v9 = vadd.f32 %v620_v6, %v157_v4 }
 0x772   :  { %709 = vrot.lane.b32.xlu2 %v3235_v58, %s3558_s18 }
 0x773   :  { %3236 = vtanh.f32 %v623_v9  ;;  %v3081_v15 = vmul.f32 -1.442695, %v623_v9 }
 0x774   :  { %3238 = vpow2.f32 %v3083_v60 }
 0x779   :  { %v3237_v59 = vpop.eup %3236 }
 0x77a   :  { %646 = vrot.lane.b32.xlu0 %v3237_v59, %s3558_s18  ;;  %v3239_v62 = vpop.eup %3238  ;;  %v212_v59 = vmul.f32 %v3724_v14, %v3886_v56 }
 0x77b   :  { %v690_v63 = vadd.f32 1.0, %v3239_v62 }
 0x77c   :  { %v213_v60 = vadd.f32 %v3731_v16, %v212_v59 }
 0x77d   :  { %3240 = vrcp.f32 %v690_v63  ;;  %v702_v22 = vand.u32 2147483648, %v690_v63  ;;  %vm696_vm11 = vweird.f32 %v690_v63  ;;  %v700_v27 = vand.u32 2147483647, %v690_v63 }
 0x77e   :  { %3242 = vpow2.f32 %v3081_v15 }
 0x77f   :  { %v703_v31 = vor.u32 1.1754944e-38, %v702_v22  ;;  %vm701_vm13 = vcmp.eq.f32.partialorder %v700_v27, 8.507059e+37 }
 0x783   :  { %v3241_v0 = vpop.eup %3240 }
 0x784   :  { %v692_v8 = vmul.f32 %v3241_v0, %v690_v63  ;;  %vm697_vm10 = vweird.f32 %v3241_v0  ;;  %v3243_v28 = vpop.eup %3242 }
 0x785   :  { %vm698_vm12 = vmor %vm696_vm11, %vm697_vm10  ;;  %v627_v61 = vadd.f32 1.0, %v3243_v28 }
 0x786   :  { %v693_v12 = vsub.f32 1.0, %v692_v8  ;;  %v165_v8 = vmul.f32 %v3736_v17, %v3881_v3 }
 0x787   :  { %3244 = vrcp.f32 %v627_v61  ;;  %v639_v44 = vand.u32 2147483648, %v627_v61  ;;  %vm633_vm15 = vweird.f32 %v627_v61  ;;  %v637_v46 = vand.u32 2147483647, %v627_v61 }
 0x788   :  { %v694_v19 = vmul.f32 %v3241_v0, %v693_v12  ;;  %v166_v12 = vadd.f32 %v3746_v21, %v165_v8 }
 0x789   :  { %v640_v49 = vor.u32 1.1754944e-38, %v639_v44  ;;  %vm638_vm1 = vcmp.eq.f32.partialorder %v637_v46, 8.507059e+37 }
 0x78a   :  { %v695_v20 = vadd.f32 %v3241_v0, %v694_v19 }
 0x78c   :  { %v699_v29 = vsel %vm698_vm12, %v3241_v0, %v695_v20 }
 0x78d   :  { %v704_v34 = vsel %vm701_vm13, %v703_v31, %v699_v29  ;;  %v3245_v35 = vpop.eup %3244 }
 0x78e   :  { %v629_v36 = vmul.f32 %v3245_v35, %v627_v61  ;;  %vm634_vm14 = vweird.f32 %v3245_v35  ;;  %v707_v30 = vmul.f32 %v704_v34, %v3848_v43 }
 0x78f   :  { %vm635_vm0 = vmor %vm633_vm15, %vm634_vm14 }
 0x790   :  { %v630_v40 = vsub.f32 1.0, %v629_v36 }
 0x792   :  { %v631_v41 = vmul.f32 %v3245_v35, %v630_v40 }
 0x794   :  { %v632_v42 = vadd.f32 %v3245_v35, %v631_v41 }
 0x796   :  { %v636_v47 = vsel %vm635_vm0, %v3245_v35, %v632_v42 }
 0x797   :  { %v641_v50 = vsel %vm638_vm1, %v640_v49, %v636_v47 }
 0x798   :  { %v644_v5 = vmul.f32 %v641_v50, %v3852_v48 }
 0x7cc   :  { %v710_v33 = vpop.permute.xlu2 %709 }
 0x7cd   :  { %v712_v1 = vmul.f32 %v710_v33, %v704_v34 }
 0x7cf   :  { %714 = vrot.lane.b32.xlu1 %v712_v1, %s3559_s5 }
 0x7ec   :  { %v647_v24 = vpop.permute.xlu0 %646 }
 0x7ed   :  { %v649_v51 = vmul.f32 %v647_v24, %v641_v50 }
 0x7ef   :  { %651 = vrot.lane.b32.xlu2 %v649_v51, %s3559_s5 }
 0x841   :  { %v715_v52 = vpop.permute.xlu1 %714 }
 0x842   :  { %v3896_v53 = vadd.f32 %v715_v52, %v707_v30 }
 0x844   :  { %3246 = vtanh.f32 %v3896_v53 }
 0x849   :  { %v652_v7 = vpop.permute.xlu2 %651 }
 0x84a   :  { %v3247_v10 = vpop.eup %3246  ;;  %v3900_v57 = vadd.f32 %v652_v7, %v644_v5 }
 0x84b   :  { %720 = vrot.lane.b32.xlu0 %v3247_v10, %s3558_s18 }
 0x84c   :  { %3248 = vtanh.f32 %v3900_v57 }
 0x852   :  { %v3249_v2 = vpop.eup %3248 }
 0x853   :  { %657 = vrot.lane.b32.xlu1 %v3249_v2, %s3558_s18 }
 0x8bd   :  { %v721_v4 = vpop.permute.xlu0 %720 }
 0x8be   :  { %v723_v43 = vmul.f32 %v721_v4, %v704_v34 }
 0x8c0   :  { %788 = vrot.lane.b32.xlu2 %v723_v43, %s3559_s5 }
 0x8c5   :  { %v658_v6 = vpop.permute.xlu1 %657 }
 0x8c6   :  { %v660_v58 = vmul.f32 %v658_v6, %v641_v50 }
 0x8c8   :  { %725 = vrot.lane.b32.xlu0 %v660_v58, %s3559_s5 }
 0x91a   :  { %v3907_v48 = vpop.permute.xlu2 %788 }
 0x91b   :  { %3086 = vmatmul.msk.f32.vlgmr.msra.gmra.mxu1 %vm226_vm8, %v3907_v48 }
 0x93a   :  { %v3911_v9 = vpop.permute.xlu0 %725 }
 0x93b   :  { %3084 = vmatmul.msk.f32.vlgmr.msra.gmra.mxu0 %vm226_vm8, %v3911_v9 }
 0x998   :  { %v809_v62 = vpop.f32.mrf.mxu1 }
 0x999   :  { %v812_v63 = vadd.f32 %v809_v62, %v213_v60 }
 0x99b   :  { %3250 = vtanh.f32 %v812_v63  ;;  %v3087_v56 = vmul.f32 -1.442695, %v812_v63 }
 0x9a1   :  { %v3251_v0 = vpop.eup %3250 }
 0x9a2   :  { %835 = vrot.lane.b32.xlu1 %v3251_v0, %s3558_s18 }
 0x9b8   :  { %v746_v15 = vpop.f32.mrf.mxu0 }
 0x9b9   :  { %v749_v19 = vadd.f32 %v746_v15, %v166_v12 }
 0x9bb   :  { %3252 = vtanh.f32 %v749_v19  ;;  %v3085_v22 = vmul.f32 -1.442695, %v749_v19 }
 0x9bc   :  { %3254 = vpow2.f32 %v3087_v56 }
 0x9bd   :  { %3256 = vpow2.f32 %v3085_v22 }
 0x9c1   :  { %v3253_v20 = vpop.eup %3252 }
 0x9c2   :  { %772 = vrot.lane.b32.xlu2 %v3253_v20, %s3558_s18  ;;  %v3255_v27 = vpop.eup %3254  ;;  %v210_v20 = vmul.f32 %v3724_v14, %v3839_v45 }
 0x9c3   :  { %v816_v28 = vadd.f32 1.0, %v3255_v27  ;;  %v3257_v29 = vpop.eup %3256 }
 0x9c4   :  { %v753_v31 = vadd.f32 1.0, %v3257_v29  ;;  %v211_v56 = vadd.f32 %v3731_v16, %v210_v20 }
 0x9c5   :  { %3258 = vrcp.f32 %v816_v28  ;;  %v828_v41 = vand.u32 2147483648, %v816_v28  ;;  %vm822_vm3 = vweird.f32 %v816_v28  ;;  %v826_v42 = vand.u32 2147483647, %v816_v28 }
 0x9c6   :  { %3260 = vrcp.f32 %v753_v31  ;;  %v765_v30 = vand.u32 2147483648, %v753_v31  ;;  %vm759_vm7 = vweird.f32 %v753_v31  ;;  %v763_v52 = vand.u32 2147483647, %v753_v31 }
 0x9c7   :  { %v829_v47 = vor.u32 1.1754944e-38, %v828_v41  ;;  %vm827_vm5 = vcmp.eq.f32.partialorder %v826_v42, 8.507059e+37 }
 0x9c8   :  { %v766_v7 = vor.u32 1.1754944e-38, %v765_v30  ;;  %vm764_vm10 = vcmp.eq.f32.partialorder %v763_v52, 8.507059e+37 }
 0x9cb   :  { %v3259_v61 = vpop.eup %3258 }
 0x9cc   :  { %v818_v3 = vmul.f32 %v3259_v61, %v816_v28  ;;  %v3261_v34 = vpop.eup %3260  ;;  %vm823_vm2 = vweird.f32 %v3259_v61  ;;  %v174_v28 = vmul.f32 %v3736_v17, %v3833_v39 }
 0x9cd   :  { %v755_v35 = vmul.f32 %v3261_v34, %v753_v31  ;;  %vm824_vm4 = vmor %vm822_vm3, %vm823_vm2  ;;  %vm760_vm6 = vweird.f32 %v3261_v34 }
 0x9ce   :  { %v819_v33 = vsub.f32 1.0, %v818_v3  ;;  %vm761_vm9 = vmor %vm759_vm7, %vm760_vm6  ;;  %v175_v29 = vadd.f32 %v3746_v21, %v174_v28  ;;  %v3975_v28 = vld [vmem:[%s4681_s7 + $0x10] sm:$0xff] }
 0x9cf   :  { %v756_v40 = vsub.f32 1.0, %v755_v35 }
 0x9d0   :  { %v820_v1 = vmul.f32 %v3259_v61, %v819_v33 }
 0x9d1   :  { %v757_v46 = vmul.f32 %v3261_v34, %v756_v40 }
 0x9d2   :  { %v821_v36 = vadd.f32 %v3259_v61, %v820_v1 }
 0x9d3   :  { %v758_v51 = vadd.f32 %v3261_v34, %v757_v46 }
 0x9d4   :  { %v825_v44 = vsel %vm824_vm4, %v3259_v61, %v821_v36 }
 0x9d5   :  { %v830_v49 = vsel %vm827_vm5, %v829_v47, %v825_v44  ;;  %v762_v5 = vsel %vm761_vm9, %v3261_v34, %v758_v51 }
 0x9d6   :  { %v767_v2 = vsel %vm764_vm10, %v766_v7, %v762_v5  ;;  %v833_v43 = vmul.f32 %v830_v49, %v3896_v53 }
 0x9d7   :  { %v770_v59 = vmul.f32 %v767_v2, %v3900_v57 }
 0xa14   :  { %v836_v24 = vpop.permute.xlu1 %835 }
 0xa15   :  { %v838_v50 = vmul.f32 %v836_v24, %v830_v49 }
 0xa17   :  { %840 = vrot.lane.b32.xlu0 %v838_v50, %s3559_s5 }
 0xa1c   :  { %v773_v10 = vpop.permute.xlu2 %772 }
 0xa1d   :  { %v775_v4 = vmul.f32 %v773_v10, %v767_v2 }
 0xa1f   :  { %777 = vrot.lane.b32.xlu1 %v775_v4, %s3559_s5 }
 0xa89   :  { %v841_v6 = vpop.permute.xlu0 %840 }
 0xa8a   :  { %v3926_v58 = vadd.f32 %v841_v6, %v833_v43 }
 0xa8c   :  { %3262 = vtanh.f32 %v3926_v58 }
 0xa91   :  { %v778_v60 = vpop.permute.xlu1 %777 }
 0xa92   :  { %v3263_v62 = vpop.eup %3262  ;;  %v3930_v63 = vadd.f32 %v778_v60, %v770_v59 }
 0xa93   :  { %846 = vrot.lane.b32.xlu2 %v3263_v62, %s3558_s18 }
 0xa94   :  { %3264 = vtanh.f32 %v3930_v63 }
 0xa9a   :  { %v3265_v0 = vpop.eup %3264 }
 0xa9b   :  { %783 = vrot.lane.b32.xlu0 %v3265_v0, %s3558_s18 }
 0xaed   :  { %v847_v8 = vpop.permute.xlu2 %846 }
 0xaee   :  { %v849_v53 = vmul.f32 %v847_v8, %v830_v49 }
 0xaf0   :  { %914 = vrot.lane.b32.xlu1 %v849_v53, %s3559_s5 }
 0xb0d   :  { %v784_v12 = vpop.permute.xlu0 %783 }
 0xb0e   :  { %v786_v15 = vmul.f32 %v784_v12, %v767_v2 }
 0xb10   :  { %851 = vrot.lane.b32.xlu2 %v786_v15, %s3559_s5 }
 0xb62   :  { %v3937_v57 = vpop.permute.xlu1 %914 }
 0xb63   :  { %3090 = vmatmul.msk.f32.vlgmr.msra.gmra.mxu3 %vm226_vm8, %v3937_v57 }
 0xb6a   :  { %v3941_v19 = vpop.permute.xlu2 %851 }
 0xb6b   :  { %3088 = vmatmul.msk.f32.vlgmr.msra.gmra.mxu2 %vm226_vm8, %v3941_v19 }
 0xbe6   :  { %v935_v22 = vpop.f32.mrf.mxu3 }
 0xbe7   :  { %v938_v27 = vadd.f32 %v935_v22, %v211_v56 }
 0xbe9   :  { %3266 = vtanh.f32 %v938_v27  ;;  %v3091_v14 = vmul.f32 -1.442695, %v938_v27 }
 0xbee   :  { %v872_v31 = vpop.f32.mrf.mxu2 }
 0xbef   :  { %v3267_v61 = vpop.eup %3266  ;;  %v875_v3 = vadd.f32 %v872_v31, %v175_v29  ;;  %v3982_v29 = vld [vmem:[%s4681_s7 + $0x8] sm:$0xff]  ;;  %v3989_v31 = vld [vmem:[%s4681_s7] sm:$0xff] }
 0xbf0   :  { %961 = vrot.lane.b32.xlu0 %v3267_v61, %s3558_s18 }
 0xbf1   :  { %3268 = vtanh.f32 %v875_v3  ;;  %v3089_v16 = vmul.f32 -1.442695, %v875_v3 }
 0xbf2   :  { %3270 = vpow2.f32 %v3091_v14 }
 0xbf3   :  { %3272 = vpow2.f32 %v3089_v16  ;;  %v4031_v16 = vld [vmem:[%s4680_s6] ss:$0 sm:$0xff] }
 0xbf7   :  { %v3269_v33 = vpop.eup %3268 }
 0xbf8   :  { %898 = vrot.lane.b32.xlu1 %v3269_v33, %s3558_s18  ;;  %v3271_v45 = vpop.eup %3270  ;;  %v4024_v33 = vld [vmem:[%s4678_s4] ss:$0 sm:$0xff] }
 0xbf9   :  { %v942_v34 = vadd.f32 1.0, %v3271_v45  ;;  %v3273_v17 = vpop.eup %3272  ;;  %v208_v14 = vmul.f32 %v4024_v33, %v3791_v32  ;;  %v4044_v32 = vld [vmem:[%s4677_s3] ss:$0 sm:$0xff] }
 0xbfa   :  { %v879_v39 = vadd.f32 1.0, %v3273_v17 }
 0xbfb   :  { %3274 = vrcp.f32 %v942_v34  ;;  %v954_v46 = vand.u32 2147483648, %v942_v34  ;;  %vm948_vm12 = vweird.f32 %v942_v34  ;;  %v952_v47 = vand.u32 2147483647, %v942_v34 }
 0xbfc   :  { %3276 = vrcp.f32 %v879_v39  ;;  %v891_v7 = vand.u32 2147483648, %v879_v39  ;;  %vm885_vm0 = vweird.f32 %v879_v39  ;;  %v889_v10 = vand.u32 2147483647, %v879_v39 }
 0xbfd   :  { %v955_v50 = vor.u32 1.1754944e-38, %v954_v46  ;;  %vm953_vm14 = vcmp.eq.f32.partialorder %v952_v47, 8.507059e+37  ;;  %v209_v45 = vadd.f32 %v4031_v16, %v208_v14 }
 0xbfe   :  { %v892_v4 = vor.u32 1.1754944e-38, %v891_v7  ;;  %vm890_vm2 = vcmp.eq.f32.partialorder %v889_v10, 8.507059e+37 }
 0xc01   :  { %v3275_v1 = vpop.eup %3274 }
 0xc02   :  { %v944_v21 = vmul.f32 %v3275_v1, %v942_v34  ;;  %v3277_v36 = vpop.eup %3276  ;;  %vm949_vm11 = vweird.f32 %v3275_v1 }
 0xc03   :  { %v881_v41 = vmul.f32 %v3277_v36, %v879_v39  ;;  %vm950_vm13 = vmor %vm948_vm12, %vm949_vm11  ;;  %vm886_vm15 = vweird.f32 %v3277_v36  ;;  %v4037_v39 = vld [vmem:[%s4675_s1] ss:$0 sm:$0xff] }
 0xc04   :  { %v945_v35 = vsub.f32 1.0, %v944_v21  ;;  %vm887_vm1 = vmor %vm885_vm0, %vm886_vm15 }
 0xc05   :  { %v882_v44 = vsub.f32 1.0, %v881_v41 }
 0xc06   :  { %v946_v40 = vmul.f32 %v3275_v1, %v945_v35 }
 0xc07   :  { %v883_v24 = vmul.f32 %v3277_v36, %v882_v44 }
 0xc08   :  { %v947_v42 = vadd.f32 %v3275_v1, %v946_v40 }
 0xc09   :  { %v884_v5 = vadd.f32 %v3277_v36, %v883_v24 }
 0xc0a   :  { %v951_v49 = vsel %vm950_vm13, %v3275_v1, %v947_v42  ;;  %v183_v1 = vmul.f32 %v4037_v39, %v3785_v26 }
 0xc0b   :  { %v956_v30 = vsel %vm953_vm14, %v955_v50, %v951_v49  ;;  %v888_v2 = vsel %vm887_vm1, %v3277_v36, %v884_v5 }
 0xc0c   :  { %v893_v43 = vsel %vm890_vm2, %v892_v4, %v888_v2  ;;  %v959_v60 = vmul.f32 %v956_v30, %v3926_v58  ;;  %v184_v21 = vadd.f32 %v4044_v32, %v183_v1 }
 0xc0d   :  { %v896_v53 = vmul.f32 %v893_v43, %v3930_v63  ;;  %v3970_v63 = vld [vmem:[%s4681_s7 + $0x18] sm:$0xff] }
 0xc0e   :  { %1249 = vmatpush.msra.mxu0 %v3970_v63  ;;  %1299 = vmatpush.msra.mxu2 %v3970_v63 }
 0xc10   :  { %1250 = vmatpush.msra.mxu0 %v3975_v28  ;;  %1300 = vmatpush.msra.mxu2 %v3975_v28 }
 0xc12   :  { %1251 = vmatpush.msra.mxu0 %v3982_v29  ;;  %1301 = vmatpush.msra.mxu2 %v3982_v29 }
 0xc14   :  { %1252 = vmatpush.msra.mxu0 %v3989_v31  ;;  %1302 = vmatpush.msra.mxu2 %v3989_v31 }
 0xc62   :  { %v962_v51 = vpop.permute.xlu0 %961 }
 0xc63   :  { %v964_v52 = vmul.f32 %v962_v51, %v956_v30 }
 0xc65   :  { %966 = vrot.lane.b32.xlu2 %v964_v52, %s3559_s5 }
 0xc6a   :  { %v899_v6 = vpop.permute.xlu1 %898 }
 0xc6b   :  { %v901_v59 = vmul.f32 %v899_v6, %v893_v43 }
 0xc6d   :  { %903 = vrot.lane.b32.xlu0 %v901_v59, %s3559_s5 }
 0xcbf   :  { %v967_v62 = vpop.permute.xlu2 %966 }
 0xcc0   :  { %v3956_v0 = vadd.f32 %v967_v62, %v959_v60 }
 0xcc2   :  { %3278 = vtanh.f32 %v3956_v0 }
 0xcc8   :  { %v3279_v8 = vpop.eup %3278 }
 0xcc9   :  { %972 = vrot.lane.b32.xlu1 %v3279_v8, %s3558_s18 }
 0xcdf   :  { %v904_v12 = vpop.permute.xlu0 %903 }
 0xce0   :  { %v3961_v15 = vadd.f32 %v904_v12, %v896_v53 }
 0xce2   :  { %3280 = vtanh.f32 %v3961_v15 }
 0xce8   :  { %v3281_v20 = vpop.eup %3280 }
 0xce9   :  { %909 = vrot.lane.b32.xlu2 %v3281_v20, %s3558_s18 }
 0xd3b   :  { %v973_v56 = vpop.permute.xlu1 %972 }
 0xd3c   :  { %v975_v58 = vmul.f32 %v973_v56, %v956_v30 }
 0xd3e   :  { %1040 = vrot.lane.b32.xlu0 %v975_v58, %s3559_s5 }
 0xd43   :  { %v910_v22 = vpop.permute.xlu2 %909 }
 0xd44   :  { %v912_v27 = vmul.f32 %v910_v22, %v893_v43 }
 0xd46   :  { %977 = vrot.lane.b32.xlu1 %v912_v27, %s3559_s5 }
 0xdb0   :  { %v3995_v61 = vpop.permute.xlu0 %1040 }
 0xdb1   :  { %3094 = vmatmul.msk.f32.vlgmr.msrb.gmra.mxu1 %vm226_vm8, %v3995_v61 }
 0xdb8   :  { %v3999_v3 = vpop.permute.xlu1 %977 }
 0xdb9   :  { %3092 = vmatmul.msk.f32.vlgmr.msrb.gmra.mxu0 %vm226_vm8, %v3999_v3 }
 0xdba   :  { %1341 = vmatpush.msrb.mxu0 %v3970_v63 }
 0xdbc   :  { %1342 = vmatpush.msrb.mxu0 %v3975_v28 }
 0xdbe   :  { %1343 = vmatpush.msrb.mxu0 %v3982_v29 }
 0xdc0   :  { %1344 = vmatpush.msrb.mxu0 %v3989_v31 }
 0xdc1   :  { %3100 = vmatmul.msk.f32.vlgmr.msra.gmra.mxu0 %vm226_vm8, %v3777_v25 }
 0xdc2   :  { %1425 = vmatpush.msra.mxu0 %v3970_v63 }
 0xdc4   :  { %1426 = vmatpush.msra.mxu0 %v3975_v28 }
 0xdc6   :  { %1427 = vmatpush.msra.mxu0 %v3982_v29 }
 0xdc8   :  { %1428 = vmatpush.msra.mxu0 %v3989_v31 }
 0xdc9   :  { %3104 = vmatmul.msk.f32.vlgmr.msrb.gmra.mxu0 %vm226_vm8, %v3872_v55 }
 0xdca   :  { %1509 = vmatpush.msrb.mxu0 %v3970_v63 }
 0xdcc   :  { %1510 = vmatpush.msrb.mxu0 %v3975_v28 }
 0xdce   :  { %1511 = vmatpush.msrb.mxu0 %v3982_v29 }
 0xdd0   :  { %1512 = vmatpush.msrb.mxu0 %v3989_v31 }
 0xdd1   :  { %3108 = vmatmul.msk.f32.vlgmr.msra.gmra.mxu0 %vm226_vm8, %v3941_v19 }
 0xe2e   :  { %v1061_v34 = vpop.f32.mrf.mxu1 }
 0xe2f   :  { %v1064_v17 = vadd.f32 %v1061_v34, %v209_v45 }
 0xe31   :  { %3282 = vtanh.f32 %v1064_v17  ;;  %v3095_v42 = vmul.f32 -1.442695, %v1064_v17 }
 0xe36   :  { %v998_v35 = vpop.f32.mrf.mxu0 }
 0xe37   :  { %v3283_v36 = vpop.eup %3282  ;;  %v1001_v40 = vadd.f32 %v998_v35, %v184_v21 }
 0xe38   :  { %1087 = vrot.lane.b32.xlu2 %v3283_v36, %s3558_s18 }
 0xe39   :  { %3284 = vtanh.f32 %v1001_v40  ;;  %v3093_v24 = vmul.f32 -1.442695, %v1001_v40 }
 0xe3a   :  { %3286 = vpow2.f32 %v3095_v42 }
 0xe3f   :  { %v3285_v41 = vpop.eup %3284 }
 0xe40   :  { %1024 = vrot.lane.b32.xlu0 %v3285_v41, %s3558_s18  ;;  %v3287_v26 = vpop.eup %3286 }
 0xe41   :  { %v1068_v44 = vadd.f32 1.0, %v3287_v26 }
 0xe43   :  { %3288 = vrcp.f32 %v1068_v44  ;;  %v1080_v30 = vand.u32 2147483648, %v1068_v44  ;;  %vm1074_vm4 = vweird.f32 %v1068_v44  ;;  %v1078_v52 = vand.u32 2147483647, %v1068_v44 }
 0xe44   :  { %3290 = vpow2.f32 %v3093_v24  ;;  %v4100_v24 = vld [vmem:[%s4684_s10 + $0x18] sm:$0xff] }
 0xe45   :  { %v1081_v10 = vor.u32 1.1754944e-38, %v1080_v30  ;;  %vm1079_vm6 = vcmp.eq.f32.partialorder %v1078_v52, 8.507059e+37  ;;  %1611 = vmatpush.msra.mxu0 %v4100_v24  ;;  %v4119_v30 = vld [vmem:[%s4684_s10] sm:$0xff]  ;;  %v4137_v52 = vld [vmem:[%s4684_s10 + $0x38] sm:$0xff] }
 0xe49   :  { %v3289_v46 = vpop.eup %3288 }
 0xe4a   :  { %v1070_v47 = vmul.f32 %v3289_v46, %v1068_v44  ;;  %vm1075_vm3 = vweird.f32 %v3289_v46  ;;  %v3291_v5 = vpop.eup %3290  ;;  %v4071_v44 = vld [vmem:[%s4681_s7 + $0x30] sm:$0xff] }
 0xe4b   :  { %vm1076_vm5 = vmor %vm1074_vm4, %vm1075_vm3  ;;  %v1005_v2 = vadd.f32 1.0, %v3291_v5  ;;  %v4145_v5 = vld [vmem:[%s4684_s10 + $0x30] sm:$0xff] }
 0xe4c   :  { %v1071_v49 = vsub.f32 1.0, %v1070_v47  ;;  %v4085_v47 = vld [vmem:[%s4681_s7 + $0x20] sm:$0xff] }
 0xe4d   :  { %3292 = vrcp.f32 %v1005_v2  ;;  %v1017_v12 = vand.u32 2147483648, %v1005_v2  ;;  %vm1011_vm9 = vweird.f32 %v1005_v2  ;;  %v1015_v20 = vand.u32 2147483647, %v1005_v2 }
 0xe4e   :  { %v1072_v50 = vmul.f32 %v3289_v46, %v1071_v49 }
 0xe4f   :  { %v1018_v58 = vor.u32 1.1754944e-38, %v1017_v12  ;;  %vm1016_vm11 = vcmp.eq.f32.partialorder %v1015_v20, 8.507059e+37 }
 0xe50   :  { %v1073_v51 = vadd.f32 %v3289_v46, %v1072_v50  ;;  %v4105_v50 = vld [vmem:[%s4684_s10 + $0x10] sm:$0xff] }
 0xe51   :  { %1612 = vmatpush.msra.mxu0 %v4105_v50 }
 0xe52   :  { %v1077_v7 = vsel %vm1076_vm5, %v3289_v46, %v1073_v51  ;;  %v4078_v46 = vld [vmem:[%s4681_s7 + $0x28] sm:$0xff] }
 0xe53   :  { %v1082_v43 = vsel %vm1079_vm6, %v1081_v10, %v1077_v7  ;;  %v3293_v59 = vpop.eup %3292  ;;  %v4112_v51 = vld [vmem:[%s4684_s10 + $0x8] sm:$0xff]  ;;  %v4157_v10 = vld [vmem:[%s4684_s10 + $0x20] sm:$0xff] }
 0xe54   :  { %v1007_v60 = vmul.f32 %v3293_v59, %v1005_v2  ;;  %vm1012_vm7 = vweird.f32 %v3293_v59  ;;  %v1085_v45 = vmul.f32 %v1082_v43, %v3956_v0  ;;  %1613 = vmatpush.msra.mxu0 %v4112_v51  ;;  %v4151_v7 = vld [vmem:[%s4684_s10 + $0x28] sm:$0xff] }
 0xe55   :  { %vm1013_vm10 = vmor %vm1011_vm9, %vm1012_vm7 }
 0xe56   :  { %v1008_v62 = vsub.f32 1.0, %v1007_v60  ;;  %1614 = vmatpush.msra.mxu0 %v4119_v30 }
 0xe58   :  { %v1009_v8 = vmul.f32 %v3293_v59, %v1008_v62 }
 0xe5a   :  { %v1010_v53 = vadd.f32 %v3293_v59, %v1009_v8 }
 0xe5c   :  { %v1014_v56 = vsel %vm1013_vm10, %v3293_v59, %v1010_v53 }
 0xe5d   :  { %v1019_v27 = vsel %vm1016_vm11, %v1018_v58, %v1014_v56 }
 0xe5e   :  { %v1022_v1 = vmul.f32 %v1019_v27, %v3961_v15  ;;  %v4066_v15 = vld [vmem:[%s4681_s7 + $0x38] sm:$0xff] }
 0xe5f   :  { %1320 = vmatpush.msra.mxu3 %v4066_v15  ;;  %1278 = vmatpush.msra.mxu1 %v4066_v15 }
 0xe61   :  { %1321 = vmatpush.msra.mxu3 %v4071_v44  ;;  %1279 = vmatpush.msra.mxu1 %v4071_v44 }
 0xe63   :  { %1322 = vmatpush.msra.mxu3 %v4078_v46  ;;  %1280 = vmatpush.msra.mxu1 %v4078_v46 }
 0xe65   :  { %1323 = vmatpush.msra.mxu3 %v4085_v47  ;;  %1281 = vmatpush.msra.mxu1 %v4085_v47 }
 0xe67   :  { %1362 = vmatpush.msrb.mxu1 %v4066_v15 }
 0xe69   :  { %1363 = vmatpush.msrb.mxu1 %v4071_v44 }
 0xe6b   :  { %1364 = vmatpush.msrb.mxu1 %v4078_v46 }
 0xe6d   :  { %1365 = vmatpush.msrb.mxu1 %v4085_v47 }
 0xe92   :  { %v1088_v4 = vpop.permute.xlu2 %1087 }
 0xe93   :  { %v1090_v6 = vmul.f32 %v1088_v4, %v1082_v43 }
 0xe95   :  { %1092 = vrot.lane.b32.xlu1 %v1090_v6, %s3559_s5 }
 0xeb2   :  { %v1025_v22 = vpop.permute.xlu0 %1024 }
 0xeb3   :  { %v1027_v14 = vmul.f32 %v1025_v22, %v1019_v27 }
 0xeb5   :  { %1029 = vrot.lane.b32.xlu2 %v1027_v14, %s3559_s5 }
 0xf07   :  { %v1093_v34 = vpop.permute.xlu1 %1092 }
 0xf08   :  { %v4052_v17 = vadd.f32 %v1093_v34, %v1085_v45 }
 0xf0a   :  { %3294 = vtanh.f32 %v4052_v17 }
 0xf0f   :  { %v1030_v21 = vpop.permute.xlu2 %1029 }
 0xf10   :  { %v3295_v35 = vpop.eup %3294  ;;  %v4056_v36 = vadd.f32 %v1030_v21, %v1022_v1 }
 0xf11   :  { %1098 = vrot.lane.b32.xlu0 %v3295_v35, %s3558_s18 }
 0xf12   :  { %3296 = vtanh.f32 %v4056_v36 }
 0xf18   :  { %v3297_v40 = vpop.eup %3296 }
 0xf19   :  { %1035 = vrot.lane.b32.xlu1 %v3297_v40, %s3558_s18 }
 0xf83   :  { %v1099_v41 = vpop.permute.xlu0 %1098 }
 0xf84   :  { %v1101_v0 = vmul.f32 %v1099_v41, %v1082_v43 }
 0xf86   :  { %1166 = vrot.lane.b32.xlu2 %v1101_v0, %s3559_s5 }
 0xf8b   :  { %v1036_v42 = vpop.permute.xlu1 %1035 }
 0xf8c   :  { %v1038_v26 = vmul.f32 %v1036_v42, %v1019_v27 }
 0xf8e   :  { %1103 = vrot.lane.b32.xlu0 %v1038_v26, %s3559_s5 }
 0xfe0   :  { %v1167_v49 = vpop.permute.xlu2 %1166 }
 0xfe1   :  { %3098 = vmatmul.msk.f32.vlgmr.msrb.gmra.mxu3 %vm226_vm8, %v1167_v49 }
 0xfe2   :  { %1404 = vmatpush.msrb.mxu3 %v4066_v15 }
 0xfe4   :  { %1405 = vmatpush.msrb.mxu3 %v4071_v44 }
 0xfe6   :  { %1406 = vmatpush.msrb.mxu3 %v4078_v46 }
 0xfe8   :  { %1407 = vmatpush.msrb.mxu3 %v4085_v47 }
 0xfe9   :  { %3103 = vmatmul.msk.f32.vlgmr.msra.gmra.mxu3 %vm226_vm8, %v1167_v49 }
 0xfea   :  { %1488 = vmatpush.msra.mxu3 %v4066_v15 }
 0xfec   :  { %1489 = vmatpush.msra.mxu3 %v4071_v44 }
 0xfee   :  { %1490 = vmatpush.msra.mxu3 %v4078_v46 }
 0xff0   :  { %1491 = vmatpush.msra.mxu3 %v4085_v47 }
 0xff1   :  { %3107 = vmatmul.msk.f32.vlgmr.msrb.gmra.mxu3 %vm226_vm8, %v3937_v57 }
 0xff2   :  { %1577 = vmatpush.msrb.mxu3 %v4066_v15 }
 0xff4   :  { %1578 = vmatpush.msrb.mxu3 %v4071_v44 }
 0xff6   :  { %1579 = vmatpush.msrb.mxu3 %v4078_v46 }
 0xff8   :  { %1580 = vmatpush.msrb.mxu3 %v4085_v47 }
 0xff9   :  { %3111 = vmatmul.msk.f32.vlgmr.msra.gmra.mxu3 %vm226_vm8, %v3865_v54 }
 0xffa   :  { %1677 = vmatpush.msra.mxu3 %v4137_v52 }
 0xffc   :  { %1678 = vmatpush.msra.mxu3 %v4145_v5 }
 0xffe   :  { %1679 = vmatpush.msra.mxu3 %v4151_v7 }
0x1000   :  { %v1104_v2 = vpop.permute.xlu0 %1103  ;;  %1680 = vmatpush.msra.mxu3 %v4157_v10 }
0x1001   :  { %3096 = vmatmul.msk.f32.vlgmr.msrb.gmra.mxu2 %vm226_vm8, %v1104_v2  ;;  %3112 = vmatmul.msk.f32.vlgmr.msrb.gmra.mxu0 %vm226_vm8, %v1104_v2 }
0x1002   :  { %3115 = vmatmul.msk.f32.vlgmr.msrb.gmra.mxu3 %vm226_vm8, %v3766_v23  ;;  %1383 = vmatpush.msrb.mxu2 %v3970_v63 }
0x1003   :  { %1698 = vmatpush.msrb.mxu0 %v4100_v24  ;;  %1761 = vmatpush.msrb.mxu3 %v4137_v52 }
0x1004   :  { %1384 = vmatpush.msrb.mxu2 %v3975_v28 }
0x1005   :  { %1699 = vmatpush.msrb.mxu0 %v4105_v50  ;;  %1762 = vmatpush.msrb.mxu3 %v4145_v5 }
0x1006   :  { %1385 = vmatpush.msrb.mxu2 %v3982_v29 }
0x1007   :  { %1700 = vmatpush.msrb.mxu0 %v4112_v51  ;;  %1763 = vmatpush.msrb.mxu3 %v4151_v7 }
0x1008   :  { %1386 = vmatpush.msrb.mxu2 %v3989_v31 }
0x1009   :  { %3102 = vmatmul.msk.f32.vlgmr.msra.gmra.mxu2 %vm226_vm8, %v3825_v38  ;;  %3116 = vmatmul.msk.f32.vlgmr.msra.gmra.mxu0 %vm226_vm8, %v3777_v25  ;;  %v203_v25 = vmul.f32 %v4024_v33, %v3738_v18  ;;  %v4235_v18 = vld [vmem:[%s4683_s9] ss:$0 sm:$0xff] }
0x100a   :  { %3119 = vmatmul.msk.f32.vlgmr.msra.gmra.mxu3 %vm226_vm8, %v1167_v49  ;;  %1701 = vmatpush.msrb.mxu0 %v4119_v30 }
0x100b   :  { %1764 = vmatpush.msrb.mxu3 %v4157_v10  ;;  %1467 = vmatpush.msra.mxu2 %v3970_v63 }
0x100c   :  { %1782 = vmatpush.msra.mxu0 %v4100_v24 }
0x100d   :  { %1845 = vmatpush.msra.mxu3 %v4137_v52  ;;  %1468 = vmatpush.msra.mxu2 %v3975_v28 }
0x100e   :  { %1783 = vmatpush.msra.mxu0 %v4105_v50 }
0x100f   :  { %1846 = vmatpush.msra.mxu3 %v4145_v5  ;;  %1469 = vmatpush.msra.mxu2 %v3982_v29 }
0x1010   :  { %1784 = vmatpush.msra.mxu0 %v4112_v51 }
0x1011   :  { %1847 = vmatpush.msra.mxu3 %v4151_v7  ;;  %3106 = vmatmul.msk.f32.vlgmr.msrb.gmra.mxu2 %vm226_vm8, %v3911_v9 }
0x1012   :  { %3120 = vmatmul.msk.f32.vlgmr.msrb.gmra.mxu0 %vm226_vm8, %v3872_v55  ;;  %3123 = vmatmul.msk.f32.vlgmr.msrb.gmra.mxu3 %vm226_vm8, %v3937_v57 }
0x1013   :  { %1470 = vmatpush.msra.mxu2 %v3989_v31  ;;  %1785 = vmatpush.msra.mxu0 %v4119_v30 }
0x1014   :  { %1848 = vmatpush.msra.mxu3 %v4157_v10 }
0x1015   :  { %1866 = vmatpush.msrb.mxu0 %v4100_v24  ;;  %1556 = vmatpush.msrb.mxu2 %v3970_v63  ;;  %v192_v63 = vmul.f32 %v4037_v39, %v3719_v13 }
0x1016   :  { %1929 = vmatpush.msrb.mxu3 %v4137_v52 }
0x1017   :  { %1867 = vmatpush.msrb.mxu0 %v4105_v50  ;;  %1557 = vmatpush.msrb.mxu2 %v3975_v28 }
0x1018   :  { %1930 = vmatpush.msrb.mxu3 %v4145_v5 }
0x1019   :  { %1868 = vmatpush.msrb.mxu0 %v4112_v51  ;;  %3110 = vmatmul.msk.f32.vlgmr.msra.gmra.mxu2 %vm226_vm8, %v3999_v3 }
0x101a   :  { %1931 = vmatpush.msrb.mxu3 %v4151_v7  ;;  %3124 = vmatmul.msk.f32.vlgmr.msra.gmra.mxu0 %vm226_vm8, %v3941_v19 }
0x101b   :  { %3127 = vmatmul.msk.f32.vlgmr.msra.gmra.mxu3 %vm226_vm8, %v3865_v54  ;;  %1869 = vmatpush.msrb.mxu0 %v4119_v30  ;;  %v207_v54 = vadd.f32 %v4031_v16, %v203_v25 }
0x101c   :  { %1932 = vmatpush.msrb.mxu3 %v4157_v10  ;;  %1558 = vmatpush.msrb.mxu2 %v3982_v29 }
0x101e   :  { %1559 = vmatpush.msrb.mxu2 %v3989_v31 }
0x1020   :  { %1656 = vmatpush.msra.mxu2 %v4100_v24 }
0x1022   :  { %1657 = vmatpush.msra.mxu2 %v4105_v50  ;;  %3128 = vmatmul.msk.f32.vlgmr.msrb.gmra.mxu0 %vm226_vm8, %v1104_v2 }
0x1023   :  { %3131 = vmatmul.msk.f32.vlgmr.msrb.gmra.mxu3 %vm226_vm8, %v3766_v23  ;;  %v193_v23 = vadd.f32 %v4044_v32, %v192_v63 }
0x1024   :  { %1658 = vmatpush.msra.mxu2 %v4112_v51 }
0x1026   :  { %1659 = vmatpush.msra.mxu2 %v4119_v30 }
0x1064   :  { %v1187_v55 = vpop.f32.mrf.mxu3 }
0x1065   :  { %v1190_v57 = vadd.f32 %v1187_v55, %v207_v54 }
0x1067   :  { %3298 = vtanh.f32 %v1190_v57  ;;  %v3099_v59 = vmul.f32 -1.442695, %v1190_v57 }
0x106c   :  { %v1325_v31 = vpop.f32.mrf.mxu3 }
0x106d   :  { %v3299_v19 = vpop.eup %3298 }
0x106e   :  { %1213 = vrot.lane.b32.xlu1 %v3299_v19, %s3558_s18 }
0x1074   :  { %v1409_v32 = vpop.f32.mrf.mxu3 }
0x1084   :  { %v1124_v28 = vpop.f32.mrf.mxu2 }
0x1085   :  { %v1127_v29 = vadd.f32 %v1124_v28, %v193_v23 }
0x1087   :  { %3300 = vtanh.f32 %v1127_v29  ;;  %v3097_v60 = vmul.f32 -1.442695, %v1127_v29 }
0x1088   :  { %3302 = vpow2.f32 %v3099_v59  ;;  %v4251_v59 = vld [vmem:[#allocation7 + $0x18] sm:$0xff] }
0x1089   :  { %3304 = vpow2.f32 %v3097_v60  ;;  %1954 = vmatpush.msra.mxu0 %v4251_v59 }
0x108c   :  { %v1304_v33 = vpop.f32.mrf.mxu2 }
0x108d   :  { %v3301_v16 = vpop.eup %3300  ;;  %v1307_v4 = vadd.f32 %v4235_v18, %v1304_v33 }
0x108e   :  { %1150 = vrot.lane.b32.xlu2 %v3301_v16, %s3558_s18  ;;  %v3303_v62 = vpop.eup %3302 }
0x108f   :  { %v4239_v43 = vadd.f32 %v1325_v31, %v1307_v4  ;;  %v1194_v8 = vadd.f32 1.0, %v3303_v62  ;;  %v3305_v53 = vpop.eup %3304 }
0x1090   :  { %v1131_v12 = vadd.f32 1.0, %v3305_v53 }
0x1091   :  { %3306 = vrcp.f32 %v1194_v8  ;;  %v1206_v1 = vand.u32 2147483648, %v1194_v8  ;;  %vm1200_vm13 = vweird.f32 %v1194_v8  ;;  %v1204_v21 = vand.u32 2147483647, %v1194_v8 }
0x1092   :  { %3308 = vrcp.f32 %v1131_v12  ;;  %v1143_v2 = vand.u32 2147483648, %v1131_v12  ;;  %vm1137_vm1 = vweird.f32 %v1131_v12  ;;  %v1141_v25 = vand.u32 2147483647, %v1131_v12 }
0x1093   :  { %v1207_v41 = vor.u32 1.1754944e-38, %v1206_v1  ;;  %vm1205_vm15 = vcmp.eq.f32.partialorder %v1204_v21, 8.507059e+37 }
0x1094   :  { %v1388_v13 = vpop.f32.mrf.mxu2  ;;  %v1144_v55 = vor.u32 1.1754944e-38, %v1143_v2  ;;  %vm1142_vm3 = vcmp.eq.f32.partialorder %v1141_v25, 8.507059e+37 }
0x1095   :  { %v1391_v39 = vadd.f32 %v4235_v18, %v1388_v13 }
0x1097   :  { %v4242_v6 = vadd.f32 %v1409_v32, %v1391_v39  ;;  %v3307_v20 = vpop.eup %3306 }
0x1098   :  { %v1196_v56 = vmul.f32 %v3307_v20, %v1194_v8  ;;  %v3309_v22 = vpop.eup %3308  ;;  %vm1201_vm12 = vweird.f32 %v3307_v20  ;;  %v4261_v8 = vld [vmem:[#allocation7] sm:$0xff] }
0x1099   :  { %v1133_v14 = vmul.f32 %v3309_v22, %v1131_v12  ;;  %vm1202_vm14 = vmor %vm1200_vm13, %vm1201_vm12  ;;  %vm1138_vm0 = vweird.f32 %v3309_v22 }
0x109a   :  { %v1197_v58 = vsub.f32 1.0, %v1196_v56  ;;  %vm1139_vm2 = vmor %vm1137_vm1, %vm1138_vm0 }
0x109b   :  { %v1134_v34 = vsub.f32 1.0, %v1133_v14 }
0x109c   :  { %v1198_v27 = vmul.f32 %v3307_v20, %v1197_v58 }
0x109d   :  { %v1135_v40 = vmul.f32 %v3309_v22, %v1134_v34 }
0x109e   :  { %v1199_v45 = vadd.f32 %v3307_v20, %v1198_v27 }
0x109f   :  { %v1136_v49 = vadd.f32 %v3309_v22, %v1135_v40  ;;  %v4395_v40 = vld [vmem:[%s4686_s12] ss:$0 sm:$0xff] }
0x10a0   :  { %v1203_v35 = vsel %vm1202_vm14, %v3307_v20, %v1199_v45 }
0x10a1   :  { %v1208_v0 = vsel %vm1205_vm15, %v1207_v41, %v1203_v35  ;;  %v1140_v54 = vsel %vm1139_vm2, %v3309_v22, %v1136_v49  ;;  %v4378_v22 = vpop.f32.mrf.mxu3 }
0x10a2   :  { %v1145_v19 = vsel %vm1142_vm3, %v1144_v55, %v1140_v54  ;;  %v1211_v23 = vmul.f32 %v1208_v0, %v4052_v17  ;;  %v4253_v17 = vld [vmem:[#allocation7 + $0x10] sm:$0xff] }
0x10a3   :  { %v1148_v31 = vmul.f32 %v1145_v19, %v4056_v36  ;;  %v4256_v36 = vld [vmem:[#allocation7 + $0x8] sm:$0xff]  ;;  %1955 = vmatpush.msra.mxu0 %v4253_v17 }
0x10a5   :  { %1956 = vmatpush.msra.mxu0 %v4256_v36 }
0x10a7   :  { %1957 = vmatpush.msra.mxu0 %v4261_v8 }
0x10a8   :  { %1958 = vmatmul.f32.vlgmr.msra.gmra.mxu0 %v3557_v11 }
0x10a9   :  { %2201 = vmatpush.msrb.mxu0 %v4251_v59  ;;  %v4385_v45 = vpop.f32.mrf.mxu3 }
0x10ab   :  { %2202 = vmatpush.msrb.mxu0 %v4253_v17 }
0x10ad   :  { %2203 = vmatpush.msrb.mxu0 %v4256_v36 }
0x10af   :  { %2204 = vmatpush.msrb.mxu0 %v4261_v8 }
0x10b1   :  { %2453 = vmatpush.msra.mxu0 %v4251_v59 }
0x10b3   :  { %2454 = vmatpush.msra.mxu0 %v4253_v17 }
0x10b5   :  { %2455 = vmatpush.msra.mxu0 %v4256_v36 }
0x10b7   :  { %2456 = vmatpush.msra.mxu0 %v4261_v8 }
0x10e0   :  { %v1214_v42 = vpop.permute.xlu1 %1213 }
0x10e1   :  { %v1216_v26 = vmul.f32 %v1214_v42, %v1208_v0 }
0x10e3   :  { %1218 = vrot.lane.b32.xlu0 %v1216_v26, %s3559_s5 }
0x10e8   :  { %v1151_v57 = vpop.permute.xlu2 %1150 }
0x10e9   :  { %v1153_v63 = vmul.f32 %v1151_v57, %v1145_v19 }
0x10eb   :  { %1155 = vrot.lane.b32.xlu1 %v1153_v63, %s3559_s5 }
0x1155   :  { %v1219_v28 = vpop.permute.xlu0 %1218 }
0x1156   :  { %v1221_v29 = vadd.f32 %v1219_v28, %v1211_v23 }
0x1158   :  { %3310 = vtanh.f32 %v1221_v29 }
0x115d   :  { %v1156_v33 = vpop.permute.xlu1 %1155 }
0x115e   :  { %v3311_v16 = vpop.eup %3310  ;;  %v1158_v4 = vadd.f32 %v1156_v33, %v1148_v31 }
0x115f   :  { %1224 = vrot.lane.b32.xlu2 %v3311_v16, %s3558_s18 }
0x1160   :  { %3312 = vtanh.f32 %v1158_v4 }
0x1166   :  { %v3313_v13 = vpop.eup %3312 }
0x1167   :  { %1161 = vrot.lane.b32.xlu0 %v3313_v13, %s3558_s18 }
0x11b9   :  { %v1225_v39 = vpop.permute.xlu2 %1224 }
0x11ba   :  { %v1227_v32 = vmul.f32 %v1225_v39, %v1208_v0  ;;  %v4398_v0 = vpop.f32.mrf.mxu3 }
0x11bc   :  { %1262 = vrot.lane.b32.xlu1 %v1227_v32, %s3559_s5 }
0x11c2   :  { %v4407_v54 = vpop.f32.mrf.mxu3 }
0x11ca   :  { %v4414_v23 = vpop.f32.mrf.mxu3 }
0x11d2   :  { %v1934_v33 = vpop.f32.mrf.mxu3 }
0x11d9   :  { %v1162_v60 = vpop.permute.xlu0 %1161 }
0x11da   :  { %v1164_v62 = vmul.f32 %v1162_v60, %v1145_v19 }
0x11dc   :  { %1540 = vrot.lane.b32.xlu2 %v1164_v62, %s3559_s5 }
0x122e   :  { %v1263_v53 = vpop.permute.xlu1 %1262 }
0x122f   :  { %3101 = vmatmul.msk.f32.vlgmr.msra.gmra.mxu1 %vm226_vm8, %v1263_v53 }
0x1230   :  { %1446 = vmatpush.msra.mxu1 %v4066_v15 }
0x1232   :  { %1447 = vmatpush.msra.mxu1 %v4071_v44 }
0x1234   :  { %1448 = vmatpush.msra.mxu1 %v4078_v46 }
0x1236   :  { %v1541_v12 = vpop.permute.xlu2 %1540  ;;  %1449 = vmatpush.msra.mxu1 %v4085_v47 }
0x1237   :  { %3105 = vmatmul.msk.f32.vlgmr.msrb.gmra.mxu1 %vm226_vm8, %v3995_v61  ;;  %3114 = vmatmul.msk.f32.vlgmr.msrb.gmra.mxu2 %vm226_vm8, %v1541_v12 }
0x1238   :  { %1530 = vmatpush.msrb.mxu1 %v4066_v15  ;;  %1740 = vmatpush.msrb.mxu2 %v4100_v24  ;;  %v4312_v15 = vld [vmem:[#allocation8 + $0x10] sm:$0xff] }
0x123a   :  { %1531 = vmatpush.msrb.mxu1 %v4071_v44  ;;  %1741 = vmatpush.msrb.mxu2 %v4105_v50  ;;  %v4326_v44 = vld [vmem:[#allocation8] sm:$0xff] }
0x123c   :  { %1532 = vmatpush.msrb.mxu1 %v4078_v46  ;;  %1742 = vmatpush.msrb.mxu2 %v4112_v51 }
0x123e   :  { %1533 = vmatpush.msrb.mxu1 %v4085_v47  ;;  %1743 = vmatpush.msrb.mxu2 %v4119_v30 }
0x123f   :  { %3109 = vmatmul.msk.f32.vlgmr.msra.gmra.mxu1 %vm226_vm8, %v3907_v48  ;;  %3118 = vmatmul.msk.f32.vlgmr.msra.gmra.mxu2 %vm226_vm8, %v3825_v38  ;;  %v4307_v38 = vld [vmem:[#allocation8 + $0x18] sm:$0xff] }
0x1240   :  { %1635 = vmatpush.msra.mxu1 %v4137_v52  ;;  %1824 = vmatpush.msra.mxu2 %v4100_v24 }
0x1241   :  { %2138 = vmatpush.msra.mxu3 %v4307_v38 }
0x1242   :  { %1636 = vmatpush.msra.mxu1 %v4145_v5  ;;  %1825 = vmatpush.msra.mxu2 %v4105_v50 }
0x1243   :  { %2139 = vmatpush.msra.mxu3 %v4312_v15 }
0x1244   :  { %1637 = vmatpush.msra.mxu1 %v4151_v7  ;;  %1826 = vmatpush.msra.mxu2 %v4112_v51 }
0x1246   :  { %1638 = vmatpush.msra.mxu1 %v4157_v10  ;;  %1827 = vmatpush.msra.mxu2 %v4119_v30 }
0x1247   :  { %3113 = vmatmul.msk.f32.vlgmr.msrb.gmra.mxu1 %vm226_vm8, %v3817_v37  ;;  %3122 = vmatmul.msk.f32.vlgmr.msrb.gmra.mxu2 %vm226_vm8, %v3911_v9  ;;  %v4317_v9 = vld [vmem:[#allocation8 + $0x8] sm:$0xff] }
0x1248   :  { %1719 = vmatpush.msrb.mxu1 %v4137_v52  ;;  %1908 = vmatpush.msrb.mxu2 %v4100_v24 }
0x1249   :  { %2140 = vmatpush.msra.mxu3 %v4317_v9 }
0x124a   :  { %1720 = vmatpush.msrb.mxu1 %v4145_v5  ;;  %1909 = vmatpush.msrb.mxu2 %v4105_v50 }
0x124b   :  { %2141 = vmatpush.msra.mxu3 %v4326_v44 }
0x124c   :  { %1721 = vmatpush.msrb.mxu1 %v4151_v7  ;;  %1910 = vmatpush.msrb.mxu2 %v4112_v51 }
0x124d   :  { %2390 = vmatpush.msrb.mxu3 %v4307_v38 }
0x124e   :  { %1722 = vmatpush.msrb.mxu1 %v4157_v10  ;;  %1911 = vmatpush.msrb.mxu2 %v4119_v30 }
0x124f   :  { %3117 = vmatmul.msk.f32.vlgmr.msra.gmra.mxu1 %vm226_vm8, %v1263_v53  ;;  %3126 = vmatmul.msk.f32.vlgmr.msra.gmra.mxu2 %vm226_vm8, %v3999_v3 }
0x1250   :  { %1803 = vmatpush.msra.mxu1 %v4137_v52  ;;  %2075 = vmatpush.msra.mxu2 %v4251_v59 }
0x1251   :  { %2391 = vmatpush.msrb.mxu3 %v4312_v15 }
0x1252   :  { %1804 = vmatpush.msra.mxu1 %v4145_v5  ;;  %2076 = vmatpush.msra.mxu2 %v4253_v17 }
0x1253   :  { %2392 = vmatpush.msrb.mxu3 %v4317_v9 }
0x1254   :  { %1805 = vmatpush.msra.mxu1 %v4151_v7  ;;  %2077 = vmatpush.msra.mxu2 %v4256_v36 }
0x1255   :  { %2393 = vmatpush.msrb.mxu3 %v4326_v44 }
0x1256   :  { %1806 = vmatpush.msra.mxu1 %v4157_v10  ;;  %2078 = vmatpush.msra.mxu2 %v4261_v8 }
0x1257   :  { %3121 = vmatmul.msk.f32.vlgmr.msrb.gmra.mxu1 %vm226_vm8, %v3995_v61  ;;  %3130 = vmatmul.msk.f32.vlgmr.msrb.gmra.mxu2 %vm226_vm8, %v1541_v12  ;;  %v1254_v61 = vpop.f32.mrf.mxu0 }
0x1258   :  { %1887 = vmatpush.msrb.mxu1 %v4137_v52  ;;  %2327 = vmatpush.msrb.mxu2 %v4251_v59  ;;  %v1260_v51 = vadd.f32 %v4235_v18, %v1254_v61 }
0x125a   :  { %1888 = vmatpush.msrb.mxu1 %v4145_v5  ;;  %2328 = vmatpush.msrb.mxu2 %v4253_v17 }
0x125c   :  { %1889 = vmatpush.msrb.mxu1 %v4151_v7  ;;  %2329 = vmatpush.msrb.mxu2 %v4256_v36 }
0x125e   :  { %1890 = vmatpush.msrb.mxu1 %v4157_v10  ;;  %2330 = vmatpush.msrb.mxu2 %v4261_v8  ;;  %v4374_v10 = vpop.f32.mrf.mxu2 }
0x125f   :  { %3125 = vmatmul.msk.f32.vlgmr.msra.gmra.mxu1 %vm226_vm8, %v3907_v48  ;;  %v1346_v3 = vpop.f32.mrf.mxu0 }
0x1260   :  { %2012 = vmatpush.msra.mxu1 %v4307_v38  ;;  %v1349_v7 = vadd.f32 %v4235_v18, %v1346_v3 }
0x1262   :  { %2013 = vmatpush.msra.mxu1 %v4312_v15 }
0x1264   :  { %2014 = vmatpush.msra.mxu1 %v4317_v9 }
0x1266   :  { %2015 = vmatpush.msra.mxu1 %v4326_v44 }
0x1267   :  { %3129 = vmatmul.msk.f32.vlgmr.msrb.gmra.mxu1 %vm226_vm8, %v3817_v37  ;;  %v4366_v48 = vpop.f32.mrf.mxu0 }
0x1268   :  { %2264 = vmatpush.msrb.mxu1 %v4307_v38 }
0x126a   :  { %2265 = vmatpush.msrb.mxu1 %v4312_v15 }
0x126c   :  { %2266 = vmatpush.msrb.mxu1 %v4317_v9 }
0x126e   :  { %2267 = vmatpush.msrb.mxu1 %v4326_v44 }
0x126f   :  { %2016 = vmatmul.f32.vlgmr.msra.gmra.mxu1 %v3557_v11  ;;  %v1514_v37 = vpop.f32.mrf.mxu0 }
0x1270   :  { %2516 = vmatpush.msra.mxu1 %v4307_v38  ;;  %v1517_v34 = vadd.f32 %v4235_v18, %v1514_v37 }
0x1272   :  { %2517 = vmatpush.msra.mxu1 %v4312_v15 }
0x1274   :  { %2518 = vmatpush.msra.mxu1 %v4317_v9 }
0x1276   :  { %2519 = vmatpush.msra.mxu1 %v4326_v44 }
0x1277   :  { %v1616_v46 = vpop.f32.mrf.mxu0 }
0x1278   :  { %v1622_v41 = vadd.f32 %v4395_v40, %v1616_v46 }
0x127f   :  { %v1703_v47 = vpop.f32.mrf.mxu0 }
0x1280   :  { %v1706_v18 = vadd.f32 %v4395_v40, %v1703_v47 }
0x1287   :  { %v1787_v24 = vpop.f32.mrf.mxu0 }
0x1288   :  { %v1790_v57 = vadd.f32 %v4395_v40, %v1787_v24 }
0x128f   :  { %v4370_v50 = vpop.f32.mrf.mxu0 }
0x1297   :  { %v1959_v11 = vpop.f32.mrf.mxu0 }
0x12ac   :  { %v1283_v30 = vpop.f32.mrf.mxu1 }
0x12ad   :  { %v1286_v52 = vadd.f32 %v1283_v30, %v1260_v51 }
0x12af   :  { %v1962_v5 = vadd.f32 %v1959_v11, %v1286_v52 }
0x12b1   :  { %3314 = vtanh.f32 %v1962_v5  ;;  %v3132_v32 = vmul.f32 -1.442695, %v1962_v5 }
0x12b4   :  { %v1367_v20 = vpop.f32.mrf.mxu1 }
0x12b5   :  { %v4376_v56 = vadd.f32 %v1367_v20, %v1349_v7 }
0x12b7   :  { %v3315_v58 = vpop.eup %3314 }
0x12b8   :  { %1985 = vrot.lane.b32.xlu0 %v3315_v58, %s3558_s18 }
0x12ba   :  { %v4381_v27 = vpop.f32.mrf.mxu2 }
0x12bc   :  { %v4383_v14 = vpop.f32.mrf.mxu1 }
0x12c2   :  { %v4390_v35 = vpop.f32.mrf.mxu2 }
0x12c4   :  { %v1535_v1 = vpop.f32.mrf.mxu1 }
0x12c5   :  { %v4388_v21 = vadd.f32 %v1535_v1, %v1517_v34 }
0x12ca   :  { %v4402_v49 = vpop.f32.mrf.mxu2 }
0x12cc   :  { %v1640_v42 = vpop.f32.mrf.mxu1 }
0x12cd   :  { %v4400_v26 = vadd.f32 %v1640_v42, %v1622_v41 }
0x12d2   :  { %v4409_v55 = vpop.f32.mrf.mxu2 }
0x12d4   :  { %v1724_v2 = vpop.f32.mrf.mxu1 }
0x12d5   :  { %v4405_v25 = vadd.f32 %v1724_v2, %v1706_v18 }
0x12da   :  { %v1913_v28 = vpop.f32.mrf.mxu2 }
0x12db   :  { %v1916_v31 = vadd.f32 %v4395_v40, %v1913_v28 }
0x12dc   :  { %v1808_v19 = vpop.f32.mrf.mxu1 }
0x12dd   :  { %v4412_v63 = vadd.f32 %v1808_v19, %v1790_v57  ;;  %v1937_v16 = vadd.f32 %v1934_v33, %v1916_v31 }
0x12e4   :  { %v4416_v29 = vpop.f32.mrf.mxu1 }
0x12ec   :  { %v2017_v4 = vpop.f32.mrf.mxu1 }
0x12ed   :  { %v2020_v13 = vadd.f32 %v2017_v4, %v1937_v16 }
0x12ef   :  { %3316 = vtanh.f32 %v2020_v13  ;;  %v3133_v5 = vmul.f32 -1.442695, %v2020_v13 }
0x12f0   :  { %3318 = vpow2.f32 %v3132_v32 }
0x12f5   :  { %v3317_v39 = vpop.eup %3316 }
0x12f6   :  { %2043 = vrot.lane.b32.xlu1 %v3317_v39, %s3558_s18  ;;  %v3319_v60 = vpop.eup %3318 }
0x12f7   :  { %v1966_v62 = vadd.f32 1.0, %v3319_v60 }
0x12f9   :  { %3320 = vrcp.f32 %v1966_v62  ;;  %v1978_v46 = vand.u32 2147483648, %v1966_v62  ;;  %vm1972_vm5 = vweird.f32 %v1966_v62  ;;  %v1976_v47 = vand.u32 2147483647, %v1966_v62 }
0x12fa   :  { %3322 = vpow2.f32 %v3133_v5 }
0x12fb   :  { %v1979_v51 = vor.u32 1.1754944e-38, %v1978_v46  ;;  %vm1977_vm7 = vcmp.eq.f32.partialorder %v1976_v47, 8.507059e+37 }
0x12ff   :  { %v3321_v53 = vpop.eup %3320 }
0x1300   :  { %v1968_v12 = vmul.f32 %v3321_v53, %v1966_v62  ;;  %vm1973_vm4 = vweird.f32 %v3321_v53  ;;  %v3323_v7 = vpop.eup %3322 }
0x1301   :  { %vm1974_vm6 = vmor %vm1972_vm5, %vm1973_vm4  ;;  %v2024_v20 = vadd.f32 1.0, %v3323_v7 }
0x1302   :  { %v1969_v61 = vsub.f32 1.0, %v1968_v12 }
0x1303   :  { %3324 = vrcp.f32 %v2024_v20  ;;  %v2036_v18 = vand.u32 2147483648, %v2024_v20  ;;  %vm2030_vm10 = vweird.f32 %v2024_v20  ;;  %v2034_v2 = vand.u32 2147483647, %v2024_v20 }
0x1304   :  { %v1970_v3 = vmul.f32 %v3321_v53, %v1969_v61 }
0x1305   :  { %v2037_v19 = vor.u32 1.1754944e-38, %v2036_v18  ;;  %vm2035_vm12 = vcmp.eq.f32.partialorder %v2034_v2, 8.507059e+37 }
0x1306   :  { %v1971_v37 = vadd.f32 %v3321_v53, %v1970_v3 }
0x1308   :  { %v1975_v24 = vsel %vm1974_vm6, %v3321_v53, %v1971_v37 }
0x1309   :  { %v1980_v11 = vsel %vm1977_vm7, %v1979_v51, %v1975_v24  ;;  %v3325_v58 = vpop.eup %3324 }
0x130a   :  { %v2026_v34 = vmul.f32 %v3325_v58, %v2024_v20  ;;  %vm2031_vm9 = vweird.f32 %v3325_v58  ;;  %v1983_v16 = vmul.f32 0.0, %v1980_v11 }
0x130b   :  { %vm2032_vm11 = vmor %vm2030_vm10, %vm2031_vm9 }
0x130c   :  { %v2027_v1 = vsub.f32 1.0, %v2026_v34 }
0x130e   :  { %v2028_v41 = vmul.f32 %v3325_v58, %v2027_v1 }
0x1310   :  { %v2029_v42 = vadd.f32 %v3325_v58, %v2028_v41 }
0x1312   :  { %v2033_v57 = vsel %vm2032_vm11, %v3325_v58, %v2029_v42 }
0x1313   :  { %v2038_v31 = vsel %vm2035_vm12, %v2037_v19, %v2033_v57 }
0x1314   :  { %v2041_v32 = vmul.f32 0.0, %v2038_v31 }
0x132a   :  { %v1986_v30 = vpop.permute.xlu0 %1985 }
0x132b   :  { %v1988_v52 = vmul.f32 %v1986_v30, %v1980_v11 }
0x132d   :  { %1990 = vrot.lane.b32.xlu2 %v1988_v52, %s3559_s5  ;;  %v1874_v52 = vadd.f32 %v4395_v40, %v4370_v50 }
0x132f   :  { %v1895_v5 = vadd.f32 %v4416_v29, %v1874_v52 }
0x1368   :  { %v2044_v28 = vpop.permute.xlu1 %2043 }
0x1369   :  { %v2046_v33 = vmul.f32 %v2044_v28, %v2038_v31 }
0x136b   :  { %2048 = vrot.lane.b32.xlu0 %v2046_v33, %s3559_s5 }
0x1387   :  { %v1991_v4 = vpop.permute.xlu2 %1990 }
0x1388   :  { %v4422_v13 = vadd.f32 %v1991_v4, %v1983_v16 }
0x138a   :  { %3326 = vtanh.f32 %v4422_v13 }
0x1390   :  { %v3327_v39 = vpop.eup %3326 }
0x1391   :  { %1996 = vrot.lane.b32.xlu1 %v3327_v39, %s3558_s18 }
0x13dd   :  { %v2049_v60 = vpop.permute.xlu0 %2048 }
0x13de   :  { %v4426_v62 = vadd.f32 %v2049_v60, %v2041_v32 }
0x13e0   :  { %3328 = vtanh.f32 %v4426_v62 }
0x13e6   :  { %v3329_v53 = vpop.eup %3328 }
0x13e7   :  { %2054 = vrot.lane.b32.xlu2 %v3329_v53, %s3558_s18 }
0x1403   :  { %v1997_v12 = vpop.permute.xlu1 %1996 }
0x1404   :  { %v1999_v61 = vmul.f32 %v1997_v12, %v1980_v11 }
0x1406   :  { %2059 = vrot.lane.b32.xlu0 %v1999_v61, %s3559_s5 }
0x1441   :  { %v2055_v3 = vpop.permute.xlu2 %2054 }
0x1442   :  { %v2057_v37 = vmul.f32 %v2055_v3, %v2038_v31 }
0x1444   :  { %2122 = vrot.lane.b32.xlu1 %v2057_v37, %s3559_s5 }
0x1478   :  { %v4432_v46 = vpop.permute.xlu0 %2059 }
0x1479   :  { %3134 = vmatmul.msk.f32.vlgmr.msra.gmra.mxu2 %vm226_vm8, %v4432_v46 }
0x147a   :  { %2579 = vmatpush.msra.mxu2 %v4251_v59 }
0x147c   :  { %2580 = vmatpush.msra.mxu2 %v4253_v17 }
0x147e   :  { %2581 = vmatpush.msra.mxu2 %v4256_v36 }
0x1480   :  { %2582 = vmatpush.msra.mxu2 %v4261_v8 }
0x14b6   :  { %v4440_v47 = vpop.permute.xlu1 %2122 }
0x14b7   :  { %3136 = vmatmul.msk.f32.vlgmr.msra.gmra.mxu3 %vm226_vm8, %v4440_v47 }
0x14b8   :  { %2642 = vmatpush.msra.mxu3 %v4307_v38 }
0x14ba   :  { %2643 = vmatpush.msra.mxu3 %v4312_v15 }
0x14bc   :  { %2644 = vmatpush.msra.mxu3 %v4317_v9 }
0x14be   :  { %2645 = vmatpush.msra.mxu3 %v4326_v44 }
0x14fc   :  { %v2080_v24 = vpop.f32.mrf.mxu2 }
0x14fd   :  { %v2083_v51 = vadd.f32 %v2080_v24, %v4239_v43 }
0x14ff   :  { %3330 = vtanh.f32 %v2083_v51  ;;  %v3135_v11 = vmul.f32 -1.442695, %v2083_v51 }
0x1501   :  { %3332 = vpow2.f32 %v3135_v11 }
0x1505   :  { %v3331_v30 = vpop.eup %3330 }
0x1506   :  { %2106 = vrot.lane.b32.xlu2 %v3331_v30, %s3558_s18 }
0x1507   :  { %v3333_v58 = vpop.eup %3332 }
0x1508   :  { %v2087_v34 = vadd.f32 1.0, %v3333_v58 }
0x150a   :  { %v2099_v57 = vand.u32 2147483648, %v2087_v34  ;;  %vm2093_vm14 = vweird.f32 %v2087_v34  ;;  %v2097_v50 = vand.u32 2147483647, %v2087_v34 }
0x150c   :  { %v2100_v19 = vor.u32 1.1754944e-38, %v2099_v57  ;;  %vm2098_vm0 = vcmp.eq.f32.partialorder %v2097_v50, 8.507059e+37 }
0x153a   :  { %v2143_v7 = vpop.f32.mrf.mxu3 }
0x153b   :  { %v2146_v20 = vadd.f32 %v2143_v7, %v1895_v5 }
0x153d   :  { %3334 = vtanh.f32 %v2146_v20  ;;  %v3137_v16 = vmul.f32 -1.442695, %v2146_v20 }
0x153e   :  { %3336 = vrcp.f32 %v2087_v34 }
0x153f   :  { %3338 = vpow2.f32 %v3137_v16 }
0x1543   :  { %v3335_v1 = vpop.eup %3334 }
0x1544   :  { %2169 = vrot.lane.b32.xlu0 %v3335_v1, %s3558_s18  ;;  %v3337_v43 = vpop.eup %3336 }
0x1545   :  { %v2089_v41 = vmul.f32 %v3337_v43, %v2087_v34  ;;  %vm2094_vm13 = vweird.f32 %v3337_v43  ;;  %v3339_v4 = vpop.eup %3338 }
0x1546   :  { %vm2095_vm15 = vmor %vm2093_vm14, %vm2094_vm13  ;;  %v2150_v39 = vadd.f32 1.0, %v3339_v4 }
0x1547   :  { %v2090_v42 = vsub.f32 1.0, %v2089_v41 }
0x1548   :  { %3340 = vrcp.f32 %v2150_v39  ;;  %v2162_v3 = vand.u32 2147483648, %v2150_v39  ;;  %vm2156_vm2 = vweird.f32 %v2150_v39  ;;  %v2160_v37 = vand.u32 2147483647, %v2150_v39 }
0x1549   :  { %v2091_v18 = vmul.f32 %v3337_v43, %v2090_v42 }
0x154a   :  { %v2163_v51 = vor.u32 1.1754944e-38, %v2162_v3  ;;  %vm2161_vm4 = vcmp.eq.f32.partialorder %v2160_v37, 8.507059e+37 }
0x154b   :  { %v2092_v2 = vadd.f32 %v3337_v43, %v2091_v18 }
0x154d   :  { %v2096_v29 = vsel %vm2095_vm15, %v3337_v43, %v2092_v2 }
0x154e   :  { %v2101_v31 = vsel %vm2098_vm0, %v2100_v19, %v2096_v29  ;;  %v3341_v32 = vpop.eup %3340 }
0x154f   :  { %v2152_v60 = vmul.f32 %v3341_v32, %v2150_v39  ;;  %vm2157_vm1 = vweird.f32 %v3341_v32  ;;  %v2104_v5 = vmul.f32 %v2101_v31, %v4422_v13 }
0x1550   :  { %vm2158_vm3 = vmor %vm2156_vm2, %vm2157_vm1 }
0x1551   :  { %v2153_v53 = vsub.f32 1.0, %v2152_v60 }
0x1553   :  { %v2154_v12 = vmul.f32 %v3341_v32, %v2153_v53 }
0x1555   :  { %v2155_v61 = vadd.f32 %v3341_v32, %v2154_v12 }
0x1557   :  { %v2159_v24 = vsel %vm2158_vm3, %v3341_v32, %v2155_v61 }
0x1558   :  { %v2164_v11 = vsel %vm2161_vm4, %v2163_v51, %v2159_v24 }
0x1559   :  { %v2167_v34 = vmul.f32 %v2164_v11, %v4426_v62 }
0x1560   :  { %v2107_v28 = vpop.permute.xlu2 %2106 }
0x1561   :  { %v2109_v33 = vmul.f32 %v2107_v28, %v2101_v31 }
0x1563   :  { %2111 = vrot.lane.b32.xlu1 %v2109_v33, %s3559_s5 }
0x15b6   :  { %v2170_v30 = vpop.permute.xlu0 %2169 }
0x15b7   :  { %v2172_v52 = vmul.f32 %v2170_v30, %v2164_v11 }
0x15b9   :  { %2174 = vrot.lane.b32.xlu2 %v2172_v52, %s3559_s5 }
0x15d5   :  { %v2112_v7 = vpop.permute.xlu1 %2111 }
0x15d6   :  { %v4457_v20 = vadd.f32 %v2112_v7, %v2104_v5 }
0x15d8   :  { %3342 = vtanh.f32 %v4457_v20 }
0x15de   :  { %v3343_v58 = vpop.eup %3342 }
0x15df   :  { %2117 = vrot.lane.b32.xlu0 %v3343_v58, %s3558_s18 }
0x1613   :  { %v2175_v1 = vpop.permute.xlu2 %2174 }
0x1614   :  { %v4462_v43 = vadd.f32 %v2175_v1, %v2167_v34 }
0x1616   :  { %3344 = vtanh.f32 %v4462_v43 }
0x161c   :  { %v3345_v41 = vpop.eup %3344 }
0x161d   :  { %2180 = vrot.lane.b32.xlu1 %v3345_v41, %s3558_s18 }
0x1651   :  { %v2118_v42 = vpop.permute.xlu0 %2117 }
0x1652   :  { %v2120_v13 = vmul.f32 %v2118_v42, %v2101_v31  ;;  %v1832_v31 = vadd.f32 %v4395_v40, %v4409_v55 }
0x1654   :  { %2185 = vrot.lane.b32.xlu2 %v2120_v13, %s3559_s5  ;;  %v1853_v33 = vadd.f32 %v4414_v23, %v1832_v31 }
0x168f   :  { %v2181_v18 = vpop.permute.xlu1 %2180 }
0x1690   :  { %v2183_v2 = vmul.f32 %v2181_v18, %v2164_v11 }
0x1692   :  { %2248 = vrot.lane.b32.xlu0 %v2183_v2, %s3559_s5 }
0x16ae   :  { %v2186_v57 = vpop.permute.xlu2 %2185 }
0x16af   :  { %3138 = vmatmul.msk.f32.vlgmr.msrb.gmra.mxu0 %vm226_vm8, %v2186_v57 }
0x16b0   :  { %2705 = vmatpush.msrb.mxu0 %v4251_v59 }
0x16b2   :  { %2706 = vmatpush.msrb.mxu0 %v4253_v17 }
0x16b4   :  { %2707 = vmatpush.msrb.mxu0 %v4256_v36 }
0x16b6   :  { %2708 = vmatpush.msrb.mxu0 %v4261_v8 }
0x1704   :  { %v2249_v62 = vpop.permute.xlu0 %2248 }
0x1705   :  { %3140 = vmatmul.msk.f32.vlgmr.msrb.gmra.mxu1 %vm226_vm8, %v2249_v62 }
0x1706   :  { %2768 = vmatpush.msrb.mxu1 %v4307_v38 }
0x1708   :  { %2769 = vmatpush.msrb.mxu1 %v4312_v15 }
0x170a   :  { %2770 = vmatpush.msrb.mxu1 %v4317_v9 }
0x170c   :  { %2771 = vmatpush.msrb.mxu1 %v4326_v44 }
0x172c   :  { %v2206_v50 = vpop.f32.mrf.mxu0 }
0x172d   :  { %v2209_v29 = vadd.f32 %v2206_v50, %v4376_v56 }
0x172f   :  { %3346 = vtanh.f32 %v2209_v29  ;;  %v3139_v28 = vmul.f32 -1.442695, %v2209_v29 }
0x1731   :  { %3348 = vpow2.f32 %v3139_v28 }
0x1735   :  { %v3347_v19 = vpop.eup %3346 }
0x1736   :  { %2232 = vrot.lane.b32.xlu1 %v3347_v19, %s3558_s18 }
0x1737   :  { %v3349_v39 = vpop.eup %3348 }
0x1738   :  { %v2213_v32 = vadd.f32 1.0, %v3349_v39 }
0x173a   :  { %v2225_v37 = vand.u32 2147483648, %v2213_v32  ;;  %vm2219_vm6 = vweird.f32 %v2213_v32  ;;  %v2223_v55 = vand.u32 2147483647, %v2213_v32 }
0x173c   :  { %v2226_v24 = vor.u32 1.1754944e-38, %v2225_v37  ;;  %vm2224_vm9 = vcmp.eq.f32.partialorder %v2223_v55, 8.507059e+37 }
0x1782   :  { %v2269_v16 = vpop.f32.mrf.mxu1 }
0x1783   :  { %v2272_v4 = vadd.f32 %v2269_v16, %v1853_v33 }
0x1785   :  { %3350 = vtanh.f32 %v2272_v4  ;;  %v3141_v52 = vmul.f32 -1.442695, %v2272_v4 }
0x1786   :  { %3352 = vrcp.f32 %v2213_v32 }
0x1787   :  { %3354 = vpow2.f32 %v3141_v52 }
0x178b   :  { %v3351_v60 = vpop.eup %3350 }
0x178c   :  { %2295 = vrot.lane.b32.xlu2 %v3351_v60, %s3558_s18  ;;  %v3353_v56 = vpop.eup %3352 }
0x178d   :  { %v2215_v53 = vmul.f32 %v3353_v56, %v2213_v32  ;;  %vm2220_vm5 = vweird.f32 %v3353_v56  ;;  %v3355_v5 = vpop.eup %3354 }
0x178e   :  { %vm2221_vm7 = vmor %vm2219_vm6, %vm2220_vm5  ;;  %v2276_v7 = vadd.f32 1.0, %v3355_v5 }
0x178f   :  { %v2216_v12 = vsub.f32 1.0, %v2215_v53 }
0x1790   :  { %3356 = vrcp.f32 %v2276_v7  ;;  %v2288_v13 = vand.u32 2147483648, %v2276_v7  ;;  %vm2282_vm11 = vweird.f32 %v2276_v7  ;;  %v2286_v18 = vand.u32 2147483647, %v2276_v7 }
0x1791   :  { %v2217_v61 = vmul.f32 %v3353_v56, %v2216_v12 }
0x1792   :  { %v2289_v57 = vor.u32 1.1754944e-38, %v2288_v13  ;;  %vm2287_vm13 = vcmp.eq.f32.partialorder %v2286_v18, 8.507059e+37 }
0x1793   :  { %v2218_v3 = vadd.f32 %v3353_v56, %v2217_v61 }
0x1795   :  { %v2222_v23 = vsel %vm2221_vm7, %v3353_v56, %v2218_v3 }
0x1796   :  { %v2227_v51 = vsel %vm2224_vm9, %v2226_v24, %v2222_v23  ;;  %v3357_v58 = vpop.eup %3356 }
0x1797   :  { %v2278_v34 = vmul.f32 %v3357_v58, %v2276_v7  ;;  %vm2283_vm10 = vweird.f32 %v3357_v58  ;;  %v2230_v19 = vmul.f32 %v2227_v51, %v4457_v20 }
0x1798   :  { %vm2284_vm12 = vmor %vm2282_vm11, %vm2283_vm10 }
0x1799   :  { %v2279_v1 = vsub.f32 1.0, %v2278_v34 }
0x179b   :  { %v2280_v41 = vmul.f32 %v3357_v58, %v2279_v1 }
0x179d   :  { %v2281_v42 = vadd.f32 %v3357_v58, %v2280_v41 }
0x179f   :  { %v2285_v2 = vsel %vm2284_vm12, %v3357_v58, %v2281_v42 }
0x17a0   :  { %v2290_v50 = vsel %vm2287_vm13, %v2289_v57, %v2285_v2 }
0x17a1   :  { %v2293_v16 = vmul.f32 %v2290_v50, %v4462_v43 }
0x17a8   :  { %v2233_v30 = vpop.permute.xlu1 %2232 }
0x17a9   :  { %v2235_v11 = vmul.f32 %v2233_v30, %v2227_v51 }
0x17ab   :  { %2237 = vrot.lane.b32.xlu0 %v2235_v11, %s3559_s5 }
0x17e6   :  { %v2296_v62 = vpop.permute.xlu2 %2295 }
0x17e7   :  { %v2298_v29 = vmul.f32 %v2296_v62, %v2290_v50 }
0x17e9   :  { %2300 = vrot.lane.b32.xlu1 %v2298_v29, %s3559_s5 }
0x181d   :  { %v2238_v28 = vpop.permute.xlu0 %2237 }
0x181e   :  { %v4487_v31 = vadd.f32 %v2238_v28, %v2230_v19 }
0x1820   :  { %3358 = vtanh.f32 %v4487_v31 }
0x1826   :  { %v3359_v33 = vpop.eup %3358 }
0x1827   :  { %2243 = vrot.lane.b32.xlu2 %v3359_v33, %s3558_s18 }
0x185b   :  { %v2301_v4 = vpop.permute.xlu1 %2300 }
0x185c   :  { %v4492_v39 = vadd.f32 %v2301_v4, %v2293_v16 }
0x185e   :  { %3360 = vtanh.f32 %v4492_v39 }
0x1864   :  { %v3361_v32 = vpop.eup %3360 }
0x1865   :  { %2306 = vrot.lane.b32.xlu0 %v3361_v32, %s3558_s18 }
0x1881   :  { %v2244_v60 = vpop.permute.xlu2 %2243 }
0x1882   :  { %v2246_v20 = vmul.f32 %v2244_v60, %v2227_v51 }
0x1884   :  { %2311 = vrot.lane.b32.xlu1 %v2246_v20, %s3559_s5 }
0x18d7   :  { %v2307_v56 = vpop.permute.xlu0 %2306 }
0x18d8   :  { %v2309_v53 = vmul.f32 %v2307_v56, %v2290_v50 }
0x18da   :  { %2374 = vrot.lane.b32.xlu2 %v2309_v53, %s3559_s5 }
0x18f6   :  { %v2312_v12 = vpop.permute.xlu1 %2311 }
0x18f7   :  { %3142 = vmatmul.msk.f32.vlgmr.msrb.gmra.mxu2 %vm226_vm8, %v2312_v12 }
0x18f8   :  { %2831 = vmatpush.msrb.mxu2 %v4251_v59 }
0x18fa   :  { %2832 = vmatpush.msrb.mxu2 %v4253_v17 }
0x18fc   :  { %2833 = vmatpush.msrb.mxu2 %v4256_v36 }
0x18fe   :  { %2834 = vmatpush.msrb.mxu2 %v4261_v8 }
0x1934   :  { %v2375_v43 = vpop.permute.xlu2 %2374 }
0x1935   :  { %3144 = vmatmul.msk.f32.vlgmr.msrb.gmra.mxu3 %vm226_vm8, %v2375_v43 }
0x1936   :  { %2894 = vmatpush.msrb.mxu3 %v4307_v38 }
0x1938   :  { %2895 = vmatpush.msrb.mxu3 %v4312_v15 }
0x193a   :  { %2896 = vmatpush.msrb.mxu3 %v4317_v9 }
0x193c   :  { %2897 = vmatpush.msrb.mxu3 %v4326_v44 }
0x197a   :  { %v2332_v61 = vpop.f32.mrf.mxu2 }
0x197b   :  { %v2335_v59 = vadd.f32 %v2332_v61, %v4242_v6 }
0x197d   :  { %3362 = vtanh.f32 %v2335_v59  ;;  %v3143_v38 = vmul.f32 -1.442695, %v2335_v59 }
0x1983   :  { %v3363_v17 = vpop.eup %3362 }
0x1984   :  { %2358 = vrot.lane.b32.xlu0 %v3363_v17, %s3558_s18  ;;  %v4531_v17 = vld [vmem:[%s4683_s9] ss:$0 sm:$0xff] }
0x19b8   :  { %v2395_v36 = vpop.f32.mrf.mxu3 }
0x19b9   :  { %v2398_v8 = vadd.f32 %v2395_v36, %v4412_v63  ;;  %v1433_v36 = vadd.f32 %v4531_v17, %v4366_v48 }
0x19bb   :  { %3364 = vtanh.f32 %v2398_v8  ;;  %v3145_v7 = vmul.f32 -1.442695, %v2398_v8  ;;  %v1454_v8 = vadd.f32 %v4383_v14, %v1433_v36 }
0x19bc   :  { %3366 = vpow2.f32 %v3143_v38 }
0x19c1   :  { %v3365_v3 = vpop.eup %3364 }
0x19c2   :  { %2421 = vrot.lane.b32.xlu1 %v3365_v3, %s3558_s18  ;;  %v3367_v15 = vpop.eup %3366 }
0x19c3   :  { %v2339_v9 = vadd.f32 1.0, %v3367_v15 }
0x19c5   :  { %3368 = vrcp.f32 %v2339_v9  ;;  %v2351_v24 = vand.u32 2147483648, %v2339_v9  ;;  %vm2345_vm15 = vweird.f32 %v2339_v9  ;;  %v2349_v51 = vand.u32 2147483647, %v2339_v9 }
0x19c6   :  { %3370 = vpow2.f32 %v3145_v7 }
0x19c7   :  { %v2352_v30 = vor.u32 1.1754944e-38, %v2351_v24  ;;  %vm2350_vm1 = vcmp.eq.f32.partialorder %v2349_v51, 8.507059e+37 }
0x19cb   :  { %v3369_v44 = vpop.eup %3368 }
0x19cc   :  { %v2341_v37 = vmul.f32 %v3369_v44, %v2339_v9  ;;  %vm2346_vm14 = vweird.f32 %v3369_v44  ;;  %v3371_v58 = vpop.eup %3370 }
0x19cd   :  { %vm2347_vm0 = vmor %vm2345_vm15, %vm2346_vm14  ;;  %v2402_v34 = vadd.f32 1.0, %v3371_v58 }
0x19ce   :  { %v2342_v55 = vsub.f32 1.0, %v2341_v37 }
0x19cf   :  { %3372 = vrcp.f32 %v2402_v34  ;;  %v2414_v2 = vand.u32 2147483648, %v2402_v34  ;;  %vm2408_vm3 = vweird.f32 %v2402_v34  ;;  %v2412_v57 = vand.u32 2147483647, %v2402_v34 }
0x19d0   :  { %v2343_v6 = vmul.f32 %v3369_v44, %v2342_v55 }
0x19d1   :  { %v2415_v50 = vor.u32 1.1754944e-38, %v2414_v2  ;;  %vm2413_vm5 = vcmp.eq.f32.partialorder %v2412_v57, 8.507059e+37 }
0x19d2   :  { %v2344_v23 = vadd.f32 %v3369_v44, %v2343_v6 }
0x19d4   :  { %v2348_v63 = vsel %vm2347_vm0, %v3369_v44, %v2344_v23  ;;  %v1748_v44 = vadd.f32 %v4395_v40, %v4402_v49 }
0x19d5   :  { %v2353_v52 = vsel %vm2350_vm1, %v2352_v30, %v2348_v63  ;;  %v3373_v1 = vpop.eup %3372 }
0x19d6   :  { %v2404_v41 = vmul.f32 %v3373_v1, %v2402_v34  ;;  %vm2409_vm2 = vweird.f32 %v3373_v1  ;;  %v2356_v33 = vmul.f32 %v2353_v52, %v4487_v31  ;;  %v1769_v37 = vadd.f32 %v4407_v54, %v1748_v44 }
0x19d7   :  { %vm2410_vm4 = vmor %vm2408_vm3, %vm2409_vm2 }
0x19d8   :  { %v2405_v42 = vsub.f32 1.0, %v2404_v41 }
0x19da   :  { %v2406_v13 = vmul.f32 %v3373_v1, %v2405_v42 }
0x19dc   :  { %v2407_v18 = vadd.f32 %v3373_v1, %v2406_v13 }
0x19de   :  { %v2411_v62 = vsel %vm2410_vm4, %v3373_v1, %v2407_v18 }
0x19df   :  { %v2416_v29 = vsel %vm2413_vm5, %v2415_v50, %v2411_v62 }
0x19e0   :  { %v2419_v60 = vmul.f32 %v2416_v29, %v4492_v39 }
0x19f6   :  { %v2359_v11 = vpop.permute.xlu0 %2358 }
0x19f7   :  { %v2361_v5 = vmul.f32 %v2359_v11, %v2353_v52 }
0x19f9   :  { %2363 = vrot.lane.b32.xlu2 %v2361_v5, %s3559_s5 }
0x1a34   :  { %v2422_v19 = vpop.permute.xlu1 %2421 }
0x1a35   :  { %v2424_v28 = vmul.f32 %v2422_v19, %v2416_v29 }
0x1a37   :  { %2426 = vrot.lane.b32.xlu0 %v2424_v28, %s3559_s5 }
0x1a53   :  { %v2364_v16 = vpop.permute.xlu2 %2363 }
0x1a54   :  { %v4515_v4 = vadd.f32 %v2364_v16, %v2356_v33 }
0x1a56   :  { %3374 = vtanh.f32 %v4515_v4 }
0x1a5c   :  { %v3375_v32 = vpop.eup %3374 }
0x1a5d   :  { %2369 = vrot.lane.b32.xlu1 %v3375_v32, %s3558_s18 }
0x1aa9   :  { %v2427_v20 = vpop.permute.xlu0 %2426 }
0x1aaa   :  { %v4520_v56 = vadd.f32 %v2427_v20, %v2419_v60 }
0x1aac   :  { %3376 = vtanh.f32 %v4520_v56 }
0x1ab2   :  { %v3377_v53 = vpop.eup %3376 }
0x1ab3   :  { %2432 = vrot.lane.b32.xlu2 %v3377_v53, %s3558_s18 }
0x1acf   :  { %v2370_v12 = vpop.permute.xlu1 %2369 }
0x1ad0   :  { %v2372_v31 = vmul.f32 %v2370_v12, %v2353_v52 }
0x1ad2   :  { %2437 = vrot.lane.b32.xlu0 %v2372_v31, %s3559_s5 }
0x1b0d   :  { %v2433_v43 = vpop.permute.xlu2 %2432 }
0x1b0e   :  { %v2435_v61 = vmul.f32 %v2433_v43, %v2416_v29 }
0x1b10   :  { %2500 = vrot.lane.b32.xlu1 %v2435_v61, %s3559_s5 }
0x1b44   :  { %v2438_v59 = vpop.permute.xlu0 %2437 }
0x1b45   :  { %3146 = vmatmul.msk.f32.vlgmr.msra.gmra.mxu0 %vm226_vm8, %v2438_v59 }
0x1b82   :  { %v2501_v39 = vpop.permute.xlu1 %2500 }
0x1b83   :  { %3148 = vmatmul.msk.f32.vlgmr.msra.gmra.mxu1 %vm226_vm8, %v2501_v39 }
0x1bc2   :  { %v2458_v3 = vpop.f32.mrf.mxu0 }
0x1bc3   :  { %v2461_v38 = vadd.f32 %v2458_v3, %v1454_v8  ;;  %v1475_v3 = vadd.f32 %v4531_v17, %v4374_v10 }
0x1bc5   :  { %3378 = vtanh.f32 %v2461_v38  ;;  %v3147_v9 = vmul.f32 -1.442695, %v2461_v38  ;;  %v1496_v38 = vadd.f32 %v4378_v22, %v1475_v3 }
0x1bc7   :  { %3380 = vpow2.f32 %v3147_v9 }
0x1bcb   :  { %v3379_v15 = vpop.eup %3378 }
0x1bcc   :  { %2484 = vrot.lane.b32.xlu2 %v3379_v15, %s3558_s18 }
0x1bcd   :  { %v3381_v23 = vpop.eup %3380 }
0x1bce   :  { %v2465_v48 = vadd.f32 1.0, %v3381_v23 }
0x1bd0   :  { %v2477_v52 = vand.u32 2147483648, %v2465_v48  ;;  %vm2471_vm7 = vweird.f32 %v2465_v48  ;;  %v2475_v40 = vand.u32 2147483647, %v2465_v48 }
0x1bd2   :  { %v2478_v54 = vor.u32 1.1754944e-38, %v2477_v52  ;;  %vm2476_vm10 = vcmp.eq.f32.partialorder %v2475_v40, 8.507059e+37 }
0x1c00   :  { %v2521_v55 = vpop.f32.mrf.mxu1 }
0x1c01   :  { %v2524_v6 = vadd.f32 %v2521_v55, %v1769_v37 }
0x1c03   :  { %3382 = vtanh.f32 %v2524_v6  ;;  %v3149_v34 = vmul.f32 -1.442695, %v2524_v6 }
0x1c04   :  { %3384 = vrcp.f32 %v2465_v48 }
0x1c05   :  { %3386 = vpow2.f32 %v3149_v34 }
0x1c09   :  { %v3383_v24 = vpop.eup %3382 }
0x1c0a   :  { %2547 = vrot.lane.b32.xlu0 %v3383_v24, %s3558_s18  ;;  %v3385_v14 = vpop.eup %3384 }
0x1c0b   :  { %v2467_v51 = vmul.f32 %v3385_v14, %v2465_v48  ;;  %vm2472_vm6 = vweird.f32 %v3385_v14  ;;  %v3387_v1 = vpop.eup %3386 }
0x1c0c   :  { %vm2473_vm9 = vmor %vm2471_vm7, %vm2472_vm6  ;;  %v2528_v41 = vadd.f32 1.0, %v3387_v1 }
0x1c0d   :  { %v2468_v63 = vsub.f32 1.0, %v2467_v51 }
0x1c0e   :  { %3388 = vrcp.f32 %v2528_v41  ;;  %v2540_v62 = vand.u32 2147483648, %v2528_v41  ;;  %vm2534_vm12 = vweird.f32 %v2528_v41  ;;  %v2538_v50 = vand.u32 2147483647, %v2528_v41 }
0x1c0f   :  { %v2469_v30 = vmul.f32 %v3385_v14, %v2468_v63 }
0x1c10   :  { %v2541_v19 = vor.u32 1.1754944e-38, %v2540_v62  ;;  %vm2539_vm14 = vcmp.eq.f32.partialorder %v2538_v50, 8.507059e+37 }
0x1c11   :  { %v2470_v11 = vadd.f32 %v3385_v14, %v2469_v30 }
0x1c13   :  { %v2474_v49 = vsel %vm2473_vm9, %v3385_v14, %v2470_v11 }
0x1c14   :  { %v2479_v7 = vsel %vm2476_vm10, %v2478_v54, %v2474_v49  ;;  %v3389_v42 = vpop.eup %3388 }
0x1c15   :  { %v2530_v13 = vmul.f32 %v3389_v42, %v2528_v41  ;;  %vm2535_vm11 = vweird.f32 %v3389_v42  ;;  %v2482_v32 = vmul.f32 %v2479_v7, %v4515_v4 }
0x1c16   :  { %vm2536_vm13 = vmor %vm2534_vm12, %vm2535_vm11 }
0x1c17   :  { %v2531_v18 = vsub.f32 1.0, %v2530_v13 }
0x1c19   :  { %v2532_v2 = vmul.f32 %v3389_v42, %v2531_v18 }
0x1c1b   :  { %v2533_v57 = vadd.f32 %v3389_v42, %v2532_v2 }
0x1c1d   :  { %v2537_v29 = vsel %vm2536_vm13, %v3389_v42, %v2533_v57 }
0x1c1e   :  { %v2542_v33 = vsel %vm2539_vm14, %v2541_v19, %v2537_v29 }
0x1c1f   :  { %v2545_v12 = vmul.f32 %v2542_v33, %v4520_v56 }
0x1c26   :  { %v2485_v5 = vpop.permute.xlu2 %2484 }
0x1c27   :  { %v2487_v58 = vmul.f32 %v2485_v5, %v2479_v7 }
0x1c29   :  { %2489 = vrot.lane.b32.xlu1 %v2487_v58, %s3559_s5 }
0x1c7c   :  { %v2548_v28 = vpop.permute.xlu0 %2547 }
0x1c7d   :  { %v2550_v16 = vmul.f32 %v2548_v28, %v2542_v33 }
0x1c7f   :  { %2552 = vrot.lane.b32.xlu2 %v2550_v16, %s3559_s5 }
0x1c9b   :  { %v2490_v60 = vpop.permute.xlu1 %2489 }
0x1c9c   :  { %v4544_v20 = vadd.f32 %v2490_v60, %v2482_v32 }
0x1c9e   :  { %3390 = vtanh.f32 %v4544_v20 }
0x1ca4   :  { %v3391_v53 = vpop.eup %3390 }
0x1ca5   :  { %2495 = vrot.lane.b32.xlu0 %v3391_v53, %s3558_s18 }
0x1cd9   :  { %v2553_v31 = vpop.permute.xlu2 %2552 }
0x1cda   :  { %v4549_v43 = vadd.f32 %v2553_v31, %v2545_v12 }
0x1cdc   :  { %3392 = vtanh.f32 %v4549_v43 }
0x1ce2   :  { %v3393_v61 = vpop.eup %3392 }
0x1ce3   :  { %2558 = vrot.lane.b32.xlu1 %v3393_v61, %s3558_s18 }
0x1d17   :  { %v2496_v59 = vpop.permute.xlu0 %2495 }
0x1d18   :  { %v2498_v4 = vmul.f32 %v2496_v59, %v2479_v7 }
0x1d1a   :  { %2563 = vrot.lane.b32.xlu2 %v2498_v4, %s3559_s5  ;;  %v2943_v4 = vld [vmem:[%s4687_s13 + $0x18] sm:$0xff] }
0x1d1b   :  { %2969 = vmatpush.msra.mxu0 %v2943_v4 }
0x1d55   :  { %v2559_v39 = vpop.permute.xlu1 %2558 }
0x1d56   :  { %v2561_v36 = vmul.f32 %v2559_v39, %v2542_v33 }
0x1d58   :  { %2626 = vrot.lane.b32.xlu0 %v2561_v36, %s3559_s5  ;;  %v2941_v36 = vld [vmem:[%s4687_s13 + $0x8] sm:$0xff] }
0x1d74   :  { %v2564_v8 = vpop.permute.xlu2 %2563 }
0x1d75   :  { %3150 = vmatmul.msk.f32.vlgmr.msra.gmra.mxu2 %vm226_vm8, %v2564_v8  ;;  %v2940_v8 = vld [vmem:[%s4687_s13] sm:$0xff] }
0x1dca   :  { %v2627_v56 = vpop.permute.xlu0 %2626 }
0x1dcb   :  { %3152 = vmatmul.msk.f32.vlgmr.msra.gmra.mxu3 %vm226_vm8, %v2627_v56 }
0x1df8   :  { %v2584_v15 = vpop.f32.mrf.mxu2 }
0x1df9   :  { %v2587_v9 = vadd.f32 %v2584_v15, %v1496_v38 }
0x1dfb   :  { %3394 = vtanh.f32 %v2587_v9  ;;  %v3151_v37 = vmul.f32 -1.442695, %v2587_v9 }
0x1dfd   :  { %3396 = vpow2.f32 %v3151_v37 }
0x1e01   :  { %v3395_v44 = vpop.eup %3394 }
0x1e02   :  { %2610 = vrot.lane.b32.xlu1 %v3395_v44, %s3558_s18  ;;  %v3447_v44 = vld [vmem:[%s4686_s12] ss:$0 sm:$0xff] }
0x1e03   :  { %v3397_v23 = vpop.eup %3396  ;;  %v1664_v37 = vadd.f32 %v3447_v44, %v4390_v35 }
0x1e04   :  { %v2591_v48 = vadd.f32 1.0, %v3397_v23 }
0x1e06   :  { %v2603_v30 = vand.u32 2147483648, %v2591_v48  ;;  %vm2597_vm0 = vweird.f32 %v2591_v48  ;;  %v2601_v11 = vand.u32 2147483647, %v2591_v48 }
0x1e08   :  { %v2604_v40 = vor.u32 1.1754944e-38, %v2603_v30  ;;  %vm2602_vm2 = vcmp.eq.f32.partialorder %v2601_v11, 8.507059e+37 }
0x1e4e   :  { %v2647_v55 = vpop.f32.mrf.mxu3 }
0x1e4f   :  { %v2650_v6 = vadd.f32 %v2647_v55, %v4405_v25  ;;  %v1685_v55 = vadd.f32 %v4398_v0, %v1664_v37 }
0x1e51   :  { %3398 = vtanh.f32 %v2650_v6  ;;  %v3153_v5 = vmul.f32 -1.442695, %v2650_v6 }
0x1e52   :  { %3400 = vrcp.f32 %v2591_v48 }
0x1e53   :  { %3402 = vpow2.f32 %v3153_v5 }
0x1e57   :  { %v3399_v24 = vpop.eup %3398 }
0x1e58   :  { %2673 = vrot.lane.b32.xlu2 %v3399_v24, %s3558_s18  ;;  %v3401_v10 = vpop.eup %3400 }
0x1e59   :  { %v2593_v22 = vmul.f32 %v3401_v10, %v2591_v48  ;;  %vm2598_vm15 = vweird.f32 %v3401_v10  ;;  %v3403_v7 = vpop.eup %3402 }
0x1e5a   :  { %vm2599_vm1 = vmor %vm2597_vm0, %vm2598_vm15  ;;  %v2654_v58 = vadd.f32 1.0, %v3403_v7 }
0x1e5b   :  { %v2594_v14 = vsub.f32 1.0, %v2593_v22 }
0x1e5c   :  { %3404 = vrcp.f32 %v2654_v58  ;;  %v2666_v18 = vand.u32 2147483648, %v2654_v58  ;;  %vm2660_vm4 = vweird.f32 %v2654_v58  ;;  %v2664_v2 = vand.u32 2147483647, %v2654_v58 }
0x1e5d   :  { %v2595_v51 = vmul.f32 %v3401_v10, %v2594_v14 }
0x1e5e   :  { %v2667_v62 = vor.u32 1.1754944e-38, %v2666_v18  ;;  %vm2665_vm6 = vcmp.eq.f32.partialorder %v2664_v2, 8.507059e+37 }
0x1e5f   :  { %v2596_v63 = vadd.f32 %v3401_v10, %v2595_v51 }
0x1e61   :  { %v2600_v52 = vsel %vm2599_vm1, %v3401_v10, %v2596_v63 }
0x1e62   :  { %v2605_v25 = vsel %vm2602_vm2, %v2604_v40, %v2600_v52  ;;  %v3405_v34 = vpop.eup %3404 }
0x1e63   :  { %v2656_v1 = vmul.f32 %v3405_v34, %v2654_v58  ;;  %vm2661_vm3 = vweird.f32 %v3405_v34  ;;  %v2608_v28 = vmul.f32 %v2605_v25, %v4544_v20 }
0x1e64   :  { %vm2662_vm5 = vmor %vm2660_vm4, %vm2661_vm3 }
0x1e65   :  { %v2657_v41 = vsub.f32 1.0, %v2656_v1 }
0x1e67   :  { %v2658_v42 = vmul.f32 %v3405_v34, %v2657_v41 }
0x1e69   :  { %v2659_v13 = vadd.f32 %v3405_v34, %v2658_v42 }
0x1e6b   :  { %v2663_v57 = vsel %vm2662_vm5, %v3405_v34, %v2659_v13 }
0x1e6c   :  { %v2668_v29 = vsel %vm2665_vm6, %v2667_v62, %v2663_v57 }
0x1e6d   :  { %v2671_v60 = vmul.f32 %v2668_v29, %v4549_v43  ;;  %v2942_v43 = vld [vmem:[%s4687_s13 + $0x10] sm:$0xff] }
0x1e6e   :  { %2970 = vmatpush.msra.mxu0 %v2942_v43  ;;  %v2954_v43 = vld [vmem:[%s4687_s13 + $0x70] sm:$0xff] }
0x1e70   :  { %2971 = vmatpush.msra.mxu0 %v2941_v36  ;;  %v2952_v36 = vld [vmem:[%s4687_s13 + $0x60] sm:$0xff] }
0x1e72   :  { %2972 = vmatpush.msra.mxu0 %v2940_v8 }
0x1e74   :  { %v2611_v49 = vpop.permute.xlu1 %2610 }
0x1e75   :  { %v2613_v54 = vmul.f32 %v2611_v49, %v2605_v25 }
0x1e77   :  { %2615 = vrot.lane.b32.xlu0 %v2613_v54, %s3559_s5 }
0x1eb2   :  { %v2674_v50 = vpop.permute.xlu2 %2673 }
0x1eb3   :  { %v2676_v19 = vmul.f32 %v2674_v50, %v2668_v29 }
0x1eb5   :  { %2678 = vrot.lane.b32.xlu1 %v2676_v19, %s3559_s5 }
0x1ee9   :  { %v2616_v33 = vpop.permute.xlu0 %2615 }
0x1eea   :  { %v4566_v16 = vadd.f32 %v2616_v33, %v2608_v28 }
0x1eec   :  { %3406 = vtanh.f32 %v4566_v16 }
0x1ef2   :  { %v3407_v32 = vpop.eup %3406 }
0x1ef3   :  { %2621 = vrot.lane.b32.xlu2 %v3407_v32, %s3558_s18 }
0x1f27   :  { %v2679_v53 = vpop.permute.xlu1 %2678 }
0x1f28   :  { %v4571_v12 = vadd.f32 %v2679_v53, %v2671_v60 }
0x1f2a   :  { %3408 = vtanh.f32 %v4571_v12 }
0x1f30   :  { %v3409_v31 = vpop.eup %3408 }
0x1f31   :  { %2684 = vrot.lane.b32.xlu0 %v3409_v31, %s3558_s18 }
0x1f4d   :  { %v2622_v61 = vpop.permute.xlu2 %2621 }
0x1f4e   :  { %v2624_v20 = vmul.f32 %v2622_v61, %v2605_v25 }
0x1f50   :  { %2689 = vrot.lane.b32.xlu1 %v2624_v20, %s3559_s5 }
0x1fa3   :  { %v2685_v59 = vpop.permute.xlu0 %2684 }
0x1fa4   :  { %v2687_v39 = vmul.f32 %v2685_v59, %v2668_v29 }
0x1fa6   :  { %2752 = vrot.lane.b32.xlu2 %v2687_v39, %s3559_s5  ;;  %v2953_v39 = vld [vmem:[%s4687_s13 + $0x68] sm:$0xff] }
0x1fc2   :  { %v2690_v56 = vpop.permute.xlu1 %2689 }
0x1fc3   :  { %3154 = vmatmul.msk.f32.vlgmr.msrb.gmra.mxu0 %vm226_vm8, %v2690_v56  ;;  %v1564_v56 = vadd.f32 %v4531_v17, %v4381_v27 }
0x1fcb   :  { %3162 = vmatmul.msk.f32.vlgmr.msra.gmra.mxu0 %vm226_vm8, %v4432_v46 }
0x2000   :  { %v2753_v3 = vpop.permute.xlu2 %2752 }
0x2001   :  { %3156 = vmatmul.msk.f32.vlgmr.msrb.gmra.mxu1 %vm226_vm8, %v2753_v3  ;;  %v1585_v3 = vadd.f32 %v4385_v45, %v1564_v56 }
0x2040   :  { %v2710_v38 = vpop.f32.mrf.mxu0 }
0x2041   :  { %v2713_v15 = vadd.f32 %v2710_v38, %v4388_v21 }
0x2043   :  { %3410 = vtanh.f32 %v2713_v15  ;;  %v3155_v48 = vmul.f32 -1.442695, %v2713_v15 }
0x2049   :  { %v3411_v9 = vpop.eup %3410 }
0x204a   :  { %2736 = vrot.lane.b32.xlu0 %v3411_v9, %s3558_s18 }
0x207e   :  { %v2773_v6 = vpop.f32.mrf.mxu1 }
0x207f   :  { %v2776_v46 = vadd.f32 %v2773_v6, %v1685_v55 }
0x2081   :  { %3412 = vtanh.f32 %v2776_v46  ;;  %v3157_v49 = vmul.f32 -1.442695, %v2776_v46 }
0x2082   :  { %3414 = vpow2.f32 %v3155_v48 }
0x2087   :  { %v3413_v23 = vpop.eup %3412 }
0x2088   :  { %2799 = vrot.lane.b32.xlu1 %v3413_v23, %s3558_s18  ;;  %v3415_v21 = vpop.eup %3414 }
0x2089   :  { %v2717_v24 = vadd.f32 1.0, %v3415_v21 }
0x208b   :  { %3416 = vrcp.f32 %v2717_v24  ;;  %v2729_v35 = vand.u32 2147483648, %v2717_v24  ;;  %vm2723_vm9 = vweird.f32 %v2717_v24  ;;  %v2727_v0 = vand.u32 2147483647, %v2717_v24 }
0x208c   :  { %3418 = vpow2.f32 %v3157_v49 }
0x208d   :  { %v2730_v11 = vor.u32 1.1754944e-38, %v2729_v35  ;;  %vm2728_vm11 = vcmp.eq.f32.partialorder %v2727_v0, 8.507059e+37 }
0x2091   :  { %v3417_v10 = vpop.eup %3416 }
0x2092   :  { %v2719_v22 = vmul.f32 %v3417_v10, %v2717_v24  ;;  %vm2724_vm7 = vweird.f32 %v3417_v10  ;;  %v3419_v54 = vpop.eup %3418 }
0x2093   :  { %vm2725_vm10 = vmor %vm2723_vm9, %vm2724_vm7  ;;  %v2780_v5 = vadd.f32 1.0, %v3419_v54  ;;  %vm3054_vm9 = vcmask 1024  }
0x2094   :  { %v2720_v14 = vsub.f32 1.0, %v2719_v22 }
0x2095   :  { %3420 = vrcp.f32 %v2780_v5  ;;  %v2792_v42 = vand.u32 2147483648, %v2780_v5  ;;  %vm2786_vm13 = vweird.f32 %v2780_v5  ;;  %v2790_v13 = vand.u32 2147483647, %v2780_v5 }
0x2096   :  { %v2721_v51 = vmul.f32 %v3417_v10, %v2720_v14 }
0x2097   :  { %v2793_v2 = vor.u32 1.1754944e-38, %v2792_v42  ;;  %vm2791_vm15 = vcmp.eq.f32.partialorder %v2790_v13, 8.507059e+37 }
0x2098   :  { %v2722_v63 = vadd.f32 %v3417_v10, %v2721_v51 }
0x209a   :  { %v2726_v30 = vsel %vm2725_vm10, %v3417_v10, %v2722_v63 }
0x209b   :  { %v2731_v40 = vsel %vm2728_vm11, %v2730_v11, %v2726_v30  ;;  %v3421_v7 = vpop.eup %3420 }
0x209c   :  { %v2782_v58 = vmul.f32 %v3421_v7, %v2780_v5  ;;  %vm2787_vm12 = vweird.f32 %v3421_v7  ;;  %v2734_v29 = vmul.f32 %v2731_v40, %v4566_v16 }
0x209d   :  { %vm2788_vm14 = vmor %vm2786_vm13, %vm2787_vm12 }
0x209e   :  { %v2783_v34 = vsub.f32 1.0, %v2782_v58 }
0x20a0   :  { %v2784_v1 = vmul.f32 %v3421_v7, %v2783_v34 }
0x20a2   :  { %v2785_v41 = vadd.f32 %v3421_v7, %v2784_v1 }
0x20a4   :  { %v2789_v18 = vsel %vm2788_vm14, %v3421_v7, %v2785_v41 }
0x20a5   :  { %v2794_v57 = vsel %vm2791_vm15, %v2793_v2, %v2789_v18 }
0x20a6   :  { %v2797_v32 = vmul.f32 %v2794_v57, %v4571_v12  ;;  %v2955_v12 = vld [vmem:[%s4687_s13 + $0x78] sm:$0xff] }
0x20a7   :  { %3045 = vmatpush.msra.mxu3 %v2955_v12 }
0x20a9   :  { %3046 = vmatpush.msra.mxu3 %v2954_v43  ;;  %v3185_v43 = vld [vmem:[#allocation2] ss:$0 sm:$0xff] }
0x20ab   :  { %3047 = vmatpush.msra.mxu3 %v2953_v39  ;;  %v2974_v39 = vpop.f32.mrf.mxu0 }
0x20ad   :  { %3048 = vmatpush.msra.mxu3 %v2952_v36  ;;  %v2980_v36 = vadd.f32 %v3185_v43, %v2974_v39 }
0x20bc   :  { %v2737_v52 = vpop.permute.xlu0 %2736 }
0x20bd   :  { %v2739_v25 = vmul.f32 %v2737_v52, %v2731_v40 }
0x20bf   :  { %2741 = vrot.lane.b32.xlu2 %v2739_v25, %s3559_s5 }
0x20fa   :  { %v2800_v62 = vpop.permute.xlu1 %2799 }
0x20fb   :  { %v2802_v50 = vmul.f32 %v2800_v62, %v2794_v57 }
0x20fd   :  { %2804 = vrot.lane.b32.xlu0 %v2802_v50, %s3559_s5 }
0x2119   :  { %v2742_v19 = vpop.permute.xlu2 %2741 }
0x211a   :  { %v4604_v28 = vadd.f32 %v2742_v19, %v2734_v29 }
0x211c   :  { %3422 = vtanh.f32 %v4604_v28 }
0x2122   :  { %v3423_v33 = vpop.eup %3422 }
0x2123   :  { %2747 = vrot.lane.b32.xlu1 %v3423_v33, %s3558_s18  ;;  %v2950_v33 = vld [vmem:[%s4687_s13 + $0x50] sm:$0xff] }
0x216f   :  { %v2805_v60 = vpop.permute.xlu0 %2804 }
0x2170   :  { %v4609_v53 = vadd.f32 %v2805_v60, %v2797_v32  ;;  %v2949_v32 = vld [vmem:[%s4687_s13 + $0x48] sm:$0xff]  ;;  %v2948_v60 = vld [vmem:[%s4687_s13 + $0x40] sm:$0xff] }
0x2172   :  { %3424 = vtanh.f32 %v4609_v53 }
0x2178   :  { %v3425_v31 = vpop.eup %3424 }
0x2179   :  { %2810 = vrot.lane.b32.xlu2 %v3425_v31, %s3558_s18  ;;  %v2947_v31 = vld [vmem:[%s4687_s13 + $0x38] sm:$0xff] }
0x217a   :  { %2998 = vmatpush.msra.mxu1 %v2947_v31 }
0x2195   :  { %v2748_v61 = vpop.permute.xlu1 %2747 }
0x2196   :  { %v2750_v16 = vmul.f32 %v2748_v61, %v2731_v40  ;;  %v2946_v61 = vld [vmem:[%s4687_s13 + $0x30] sm:$0xff] }
0x2197   :  { %2999 = vmatpush.msra.mxu1 %v2946_v61 }
0x2198   :  { %2815 = vrot.lane.b32.xlu0 %v2750_v16, %s3559_s5 }
0x21d3   :  { %v2811_v20 = vpop.permute.xlu2 %2810 }
0x21d4   :  { %v2813_v59 = vmul.f32 %v2811_v20, %v2794_v57  ;;  %v2945_v20 = vld [vmem:[%s4687_s13 + $0x28] sm:$0xff] }
0x21d5   :  { %3000 = vmatpush.msra.mxu1 %v2945_v20 }
0x21d6   :  { %2878 = vrot.lane.b32.xlu1 %v2813_v59, %s3559_s5  ;;  %v2944_v59 = vld [vmem:[%s4687_s13 + $0x20] sm:$0xff] }
0x21d7   :  { %3001 = vmatpush.msra.mxu1 %v2944_v59 }
0x220a   :  { %v2816_v4 = vpop.permute.xlu0 %2815 }
0x220b   :  { %3158 = vmatmul.msk.f32.vlgmr.msrb.gmra.mxu2 %vm226_vm8, %v2816_v4 }
0x2248   :  { %v2879_v8 = vpop.permute.xlu1 %2878 }
0x2249   :  { %3160 = vmatmul.msk.f32.vlgmr.msrb.gmra.mxu3 %vm226_vm8, %v2879_v8 }
0x2251   :  { %3165 = vmatmul.msk.f32.vlgmr.msra.gmra.mxu3 %vm226_vm8, %v4440_v47 }
0x228e   :  { %v2836_v38 = vpop.f32.mrf.mxu2 }
0x228f   :  { %v2839_v15 = vadd.f32 %v2836_v38, %v1585_v3 }
0x2291   :  { %3426 = vtanh.f32 %v2839_v15  ;;  %v3159_v44 = vmul.f32 -1.442695, %v2839_v15 }
0x2293   :  { %3428 = vpow2.f32 %v3159_v44 }
0x2297   :  { %v3427_v9 = vpop.eup %3426 }
0x2298   :  { %2862 = vrot.lane.b32.xlu2 %v3427_v9, %s3558_s18 }
0x2299   :  { %v3429_v6 = vpop.eup %3428 }
0x229a   :  { %v2843_v46 = vadd.f32 1.0, %v3429_v6 }
0x229c   :  { %v2855_v21 = vand.u32 2147483648, %v2843_v46  ;;  %vm2849_vm1 = vweird.f32 %v2843_v46  ;;  %v2853_v24 = vand.u32 2147483647, %v2843_v46 }
0x229e   :  { %v2856_v22 = vor.u32 1.1754944e-38, %v2855_v21  ;;  %vm2854_vm3 = vcmp.eq.f32.partialorder %v2853_v24, 8.507059e+37 }
0x22cc   :  { %v2899_v37 = vpop.f32.mrf.mxu3 }
0x22cd   :  { %v2902_v55 = vadd.f32 %v2899_v37, %v4400_v26 }
0x22cf   :  { %3430 = vtanh.f32 %v2902_v55  ;;  %v3161_v63 = vmul.f32 -1.442695, %v2902_v55 }
0x22d0   :  { %3432 = vrcp.f32 %v2843_v46 }
0x22d1   :  { %3434 = vpow2.f32 %v3161_v63 }
0x22d4   :  { %v3050_v15 = vpop.f32.mrf.mxu3 }
0x22d5   :  { %v3431_v47 = vpop.eup %3430 }
0x22d6   :  { %2925 = vrot.lane.b32.xlu0 %v3431_v47, %s3558_s18  ;;  %v3433_v27 = vpop.eup %3432 }
0x22d7   :  { %v2845_v45 = vmul.f32 %v3433_v27, %v2843_v46  ;;  %vm2850_vm0 = vweird.f32 %v3433_v27  ;;  %v3435_v35 = vpop.eup %3434 }
0x22d8   :  { %vm2851_vm2 = vmor %vm2849_vm1, %vm2850_vm0  ;;  %v2906_v0 = vadd.f32 1.0, %v3435_v35 }
0x22d9   :  { %v2846_v17 = vsub.f32 1.0, %v2845_v45 }
0x22da   :  { %3436 = vrcp.f32 %v2906_v0  ;;  %v2918_v49 = vand.u32 2147483648, %v2906_v0  ;;  %vm2912_vm5 = vweird.f32 %v2906_v0  ;;  %v2916_v54 = vand.u32 2147483647, %v2906_v0 }
0x22db   :  { %v2847_v23 = vmul.f32 %v3433_v27, %v2846_v17 }
0x22dc   :  { %v2919_v7 = vor.u32 1.1754944e-38, %v2918_v49  ;;  %vm2917_vm7 = vcmp.eq.f32.partialorder %v2916_v54, 8.507059e+37 }
0x22dd   :  { %v2848_v48 = vadd.f32 %v3433_v27, %v2847_v23 }
0x22df   :  { %v2852_v10 = vsel %vm2851_vm2, %v3433_v27, %v2848_v48 }
0x22e0   :  { %v2857_v14 = vsel %vm2854_vm3, %v2856_v22, %v2852_v10  ;;  %v3437_v30 = vpop.eup %3436 }
0x22e1   :  { %v2908_v11 = vmul.f32 %v3437_v30, %v2906_v0  ;;  %vm2913_vm4 = vweird.f32 %v3437_v30  ;;  %v2860_v41 = vmul.f32 %v2857_v14, %v4604_v28  ;;  %v2951_v28 = vld [vmem:[%s4687_s13 + $0x58] sm:$0xff] }
0x22e2   :  { %vm2914_vm6 = vmor %vm2912_vm5, %vm2913_vm4  ;;  %3024 = vmatpush.msra.mxu2 %v2951_v28 }
0x22e3   :  { %v2909_v52 = vsub.f32 1.0, %v2908_v11 }
0x22e4   :  { %3025 = vmatpush.msra.mxu2 %v2950_v33 }
0x22e5   :  { %v2910_v40 = vmul.f32 %v3437_v30, %v2909_v52 }
0x22e6   :  { %3026 = vmatpush.msra.mxu2 %v2949_v32 }
0x22e7   :  { %v2911_v25 = vadd.f32 %v3437_v30, %v2910_v40 }
0x22e8   :  { %3027 = vmatpush.msra.mxu2 %v2948_v60 }
0x22e9   :  { %v2915_v5 = vsel %vm2914_vm6, %v3437_v30, %v2911_v25 }
0x22ea   :  { %v2920_v34 = vsel %vm2917_vm7, %v2919_v7, %v2915_v5 }
0x22eb   :  { %v2923_v2 = vmul.f32 %v2920_v34, %v4609_v53 }
0x22f2   :  { %v2863_v26 = vpop.permute.xlu2 %2862 }
0x22f3   :  { %v2865_v51 = vmul.f32 %v2863_v26, %v2857_v14 }
0x22f5   :  { %2867 = vrot.lane.b32.xlu1 %v2865_v51, %s3559_s5 }
0x2348   :  { %v2926_v58 = vpop.permute.xlu0 %2925 }
0x2349   :  { %v2928_v1 = vmul.f32 %v2926_v58, %v2920_v34 }
0x234b   :  { %2930 = vrot.lane.b32.xlu2 %v2928_v1, %s3559_s5 }
0x2367   :  { %v2868_v42 = vpop.permute.xlu1 %2867 }
0x2368   :  { %v2870_v13 = vadd.f32 %v2868_v42, %v2860_v41 }
0x236a   :  { %3438 = vtanh.f32 %v2870_v13 }
0x2370   :  { %v3439_v18 = vpop.eup %3438 }
0x2371   :  { %2873 = vrot.lane.b32.xlu0 %v3439_v18, %s3558_s18 }
0x23a5   :  { %v2931_v57 = vpop.permute.xlu2 %2930 }
0x23a6   :  { %v2933_v62 = vadd.f32 %v2931_v57, %v2923_v2 }
0x23a8   :  { %3440 = vtanh.f32 %v2933_v62 }
0x23ae   :  { %v3441_v50 = vpop.eup %3440 }
0x23af   :  { %2936 = vrot.lane.b32.xlu1 %v3441_v50, %s3558_s18 }
0x23e3   :  { %v2874_v29 = vpop.permute.xlu0 %2873 }
0x23e4   :  { %v2876_v19 = vmul.f32 %v2874_v29, %v2857_v14 }
0x23e6   :  { %3008 = vrot.lane.b32.xlu2 %v2876_v19, %s3559_s5 }
0x2421   :  { %v2937_v53 = vpop.permute.xlu1 %2936 }
0x2422   :  { %v2939_v16 = vmul.f32 %v2937_v53, %v2920_v34 }
0x2424   :  { %2982 = vrot.lane.b32.xlu0 %v2939_v16, %s3559_s5 }
0x2440   :  { %v3009_v4 = vpop.permute.xlu2 %3008 }
0x2441   :  { %3164 = vmatmul.msk.f32.vlgmr.msra.gmra.mxu2 %vm226_vm8, %v3009_v4 }
0x2496   :  { %v2983_v12 = vpop.permute.xlu0 %2982 }
0x2497   :  { %3163 = vmatmul.msk.f32.vlgmr.msra.gmra.mxu1 %vm226_vm8, %v2983_v12 }
0x24c4   :  { %v3029_v3 = vpop.f32.mrf.mxu2 }
0x2514   :  { %v3003_v8 = vpop.f32.mrf.mxu1 }
0x2515   :  { %v3006_v56 = vadd.f32 %v3003_v8, %v2980_v36 }
0x2517   :  { %v3032_v38 = vadd.f32 %v3029_v3, %v3006_v56 }
0x2519   :  { %v3053_v9 = vadd.f32 %v3050_v15, %v3032_v38 }
0x251b   :  { %3055 = vst.msk [vmem:[%s4689_s15] sm:$0x3] %vm3054_vm9, %v3053_v9 }
0x251c   :  { %3060 = vsyncpa [#allocation4], 1 }
0x251d   :  { %3061 = vsyncpa [#allocation6], 1 }
0x251e   :  { %3062 = vsyncpa [#allocation9], 1 }

</bundles_post_ra>
